<compile_context>
chip_gen: v5e
topology: v5e:2x2
jax: 0.10.0
libtpu: 0.0.40
codegen_flags: <defaults>
</compile_context>

<pallas_src>
import functools

import jax
import jax.numpy as jnp
from jax.experimental import pallas as pl
from jax.experimental.pallas import tpu as pltpu

BAND_COUNT = 4
IDX_INTER = 64        # LearnedIndices conv1 output channels
IDX_OUT = 32          # LearnedIndices output channels
OUT_CH = 2            # CheapLab out_channels
BN_EPS = 1e-5
DIV_EPS = 1e-7


# --------------------------------------------------------------------------
# small helpers
# --------------------------------------------------------------------------
def _pad_mat(a, rows, cols):
    return jnp.pad(a, ((0, rows - a.shape[0]), (0, cols - a.shape[1])))


def _pad_vec(v, num):
    return jnp.pad(v, (0, num - v.shape[0]))


def _choose_tile(hw, target):
    """Largest pixel tile (multiple of 128) <= target.  Prefers an exact
    divisor of hw (no padding); otherwise the caller pads hw up to a multiple
    of the returned tile."""
    target = max(128, (target // 128) * 128)
    hw128 = -(-hw // 128) * 128
    if hw128 <= target:
        return hw128
    t = target
    while t >= 128:
        if hw % t == 0:
            return t
        t -= 128
    return target


def _choose_par(n_tiles):
    # Small parallel split of the tile axis so v7x's 2 TensorCores get work
    # even at batch 1.  Must divide n_tiles.
    for d in (2, 3):
        if n_tiles >= 2 and n_tiles % d == 0:
            return d
    return 1


# --------------------------------------------------------------------------
# Per-pixel forward on a (channels, tile_p) block.
#   depth 0 -> quotient q                 (32, T)
#   depth 1 -> nugget-1 pre-BN            (16, T)
#   depth 2 -> nugget-2 pre-BN            (8, T)
#   depth 3 -> nugget-3 pre-BN            (8, T)  rows 4..7 are zero padding
#   depth 4 -> nugget-4 pre-BN            (8, T)  rows 2..7 are zero padding
#   depth 5 -> final out_conv output      (8, T)  rows 2..7 are zero padding
# x is bf16, weights are bf16, biases/affines + all arithmetic results are f32.
# --------------------------------------------------------------------------
def _forward_stage(x, ws, depth):
    w_qf, b_den = ws[0], ws[1]
    u = jnp.dot(w_qf, x, preferred_element_type=jnp.float32)      # (64, T) f32
    num = u[:IDX_OUT, :]
    den = u[IDX_OUT:, :] + b_den
    # EUP approximate reciprocal instead of a VALU divide (f32 throughout).
    q = num * pl.reciprocal(den + DIV_EPS, approx=True)
    if depth == 0:
        return q

    w1q, w1x, b1 = ws[2], ws[3], ws[4]
    z = (jnp.dot(w1q, q, preferred_element_type=jnp.float32)
         + jnp.dot(w1x, x, preferred_element_type=jnp.float32)
         + b1)
    if depth == 1:
        return z

    k = 5
    for _ in range(depth - 1):
        alpha, shift, w, b = ws[k], ws[k + 1], ws[k + 2], ws[k + 3]
        a = jnp.maximum(z * alpha + shift, 0.0)       # fused BatchNorm + ReLU
        z = jnp.dot(w, a, preferred_element_type=jnp.float32) + b
        k += 4
    return z


def _make_stats_kernel(depth, n_w, tile_p, hw, needs_mask):
    n_chunks = tile_p // 128

    def kernel(x_ref, *refs):
        ws = [refs[i][...] for i in range(n_w)]
        sum_ref, ssq_ref = refs[n_w], refs[n_w + 1]
        j = pl.program_id(2)

        @pl.when(j == 0)
        def _():
            sum_ref[...] = jnp.zeros_like(sum_ref)
            ssq_ref[...] = jnp.zeros_like(ssq_ref)

        x = x_ref[...]                                    # (cin, tile_p) bf16
        v = _forward_stage(x, ws, depth)                  # (c, tile_p) f32
        if needs_mask:
            p = pl.program_id(1)
            inner = pl.num_programs(2)
            start = (p * inner + j) * tile_p
            lane = jax.lax.broadcasted_iota(jnp.int32, (1, tile_p), 1)
            v = jnp.where(start + lane < hw, v, 0.0)

        # Lane-partial reduction: elementwise adds of 128-lane chunks (VALU
        # only, no cross-lane XLU work), accumulated into the resident output.
        ps = v[:, 0:128]
        pq = ps * ps
        for k in range(1, n_chunks):
            chunk = v[:, k * 128:(k + 1) * 128]
            ps = ps + chunk
            pq = pq + chunk * chunk
        sum_ref[...] += ps
        ssq_ref[...] += pq

    return kernel


def _make_output_kernel(n_w, out_ch):
    def kernel(x_ref, *refs):
        ws = [refs[i][...] for i in range(n_w)]
        out_ref = refs[n_w]
        v = _forward_stage(x_ref[...], ws, 5)             # (8, tile_p) f32
        out_ref[...] = v[:out_ch, :].astype(out_ref.dtype)
    return kernel


# --------------------------------------------------------------------------
# pallas_call wrappers
# --------------------------------------------------------------------------
def _stats_pass(x3, weights, depth, c_out, tile_p, hw, par):
    n, cin, hw_pad = x3.shape
    n_tiles = hw_pad // tile_p
    inner = n_tiles // par
    needs_mask = hw_pad != hw
    kernel = _make_stats_kernel(depth, len(weights), tile_p, hw, needs_mask)

    x_spec = pl.BlockSpec((pl.Squeezed(), cin, tile_p),
                          lambda i, p, j: (i, 0, p * inner + j))
    w_specs = [pl.BlockSpec(w.shape, lambda i, p, j: (0, 0)) for w in weights]

    def stat_spec():
        return pl.BlockSpec((pl.Squeezed(), pl.Squeezed(), c_out, 128),
                            lambda i, p, j: (i, p, 0, 0))

    sums, ssqs = pl.pallas_call(
        kernel,
        grid=(n, par, inner),
        in_specs=[x_spec] + w_specs,
        out_specs=(stat_spec(), stat_spec()),
        out_shape=(jax.ShapeDtypeStruct((n, par, c_out, 128), jnp.float32),
                   jax.ShapeDtypeStruct((n, par, c_out, 128), jnp.float32)),
        compiler_params=pltpu.CompilerParams(
            dimension_semantics=("parallel", "parallel", "arbitrary")),
    )(x3, *weights)
    # Tiny wrapper-side reduction of per-(batch, split, lane) partials.
    s = jnp.sum(sums, axis=(0, 1, 3))
    ss = jnp.sum(ssqs, axis=(0, 1, 3))
    return s, ss


def _output_pass(x3, weights, tile_p, par, out_ch):
    n, cin, hw_pad = x3.shape
    n_tiles = hw_pad // tile_p
    inner = n_tiles // par
    kernel = _make_output_kernel(len(weights), out_ch)
    return pl.pallas_call(
        kernel,
        grid=(n, par, inner),
        in_specs=[pl.BlockSpec((pl.Squeezed(), cin, tile_p),
                               lambda i, p, j: (i, 0, p * inner + j))]
                 + [pl.BlockSpec(w.shape, lambda i, p, j: (0, 0))
                    for w in weights],
        out_specs=pl.BlockSpec((pl.Squeezed(), out_ch, tile_p),
                               lambda i, p, j: (i, 0, p * inner + j)),
        out_shape=jax.ShapeDtypeStruct((n, out_ch, hw_pad), jnp.float32),
        compiler_params=pltpu.CompilerParams(
            dimension_semantics=("parallel", "parallel", "parallel")),
    )(x3, *weights)


def _bn_affine(s, ss, count, gamma, beta):
    mean = s / count
    var = jnp.maximum(ss / count - mean * mean, 0.0)   # biased (training mode)
    inv = jax.lax.rsqrt(var + BN_EPS)
    alpha = gamma * inv
    shift = beta - mean * alpha
    return alpha, shift


def _prepare_input(x_nchw, tile_target):
    n, cin, h, w = x_nchw.shape
    hw = h * w
    tile_p = _choose_tile(hw, tile_target)
    hw_pad = -(-hw // tile_p) * tile_p
    par = _choose_par(hw_pad // tile_p)
    # NCHW -> (N, C, H*W): pure reshape, pixels on lanes; stream in bf16.
    x3 = x_nchw.reshape(n, cin, hw).astype(jnp.bfloat16)
    if hw_pad != hw:
        x3 = jnp.pad(x3, ((0, 0), (0, 0), (0, hw_pad - hw)))
    return x3, hw, hw_pad, tile_p, par


def _bf(a):
    return a.astype(jnp.bfloat16)


# --------------------------------------------------------------------------
# Full CheapLab forward (training-mode BatchNorm, batch statistics)
# --------------------------------------------------------------------------
@functools.partial(jax.jit, static_argnames=("tile_target",))
def cheaplab_forward(x_nchw, params, tile_target=8192):
    n, cin, h, w = x_nchw.shape
    x3, hw, hw_pad, tile_p, par = _prepare_input(x_nchw, tile_target)
    count = n * hw

    # Fold conv1 into numerator/denominator (exact: 1x1 convs, no nonlinearity)
    w_num = params["num_w"] @ params["conv1_w"]                   # (32, cin)
    w_den = params["den_w"] @ params["conv1_w"]                   # (32, cin)
    w_qf = _bf(jnp.concatenate([w_num, w_den], axis=0))           # (64, cin)
    b_den = params["den_b"].astype(jnp.float32)[:, None]          # (32, 1)
    weights = [w_qf, b_den]

    # Pass 0: batch stats of the quotient q.
    s, ss = _stats_pass(x3, weights, 0, IDX_OUT, tile_p, hw, par)
    al0, sh0 = _bn_affine(s, ss, count, params["bn0_g"], params["bn0_b"])
    # Fold BN0 into the nugget-1 conv over cat([bn(q), x]).
    w1 = params["n1_w"]                                           # (16, 32+cin)
    w1q = _bf(w1[:, :IDX_OUT] * al0[None, :])
    w1x = _bf(w1[:, IDX_OUT:])
    b1 = (params["n1_b"] + w1[:, :IDX_OUT] @ sh0)[:, None]
    weights += [w1q, w1x, b1]

    # Pass 1: stats of nugget-1 pre-BN (16 ch).
    s, ss = _stats_pass(x3, weights, 1, 16, tile_p, hw, par)
    al, sh = _bn_affine(s, ss, count, params["bn1_g"], params["bn1_b"])
    weights += [al[:, None], sh[:, None],
                _bf(params["n2_w"]), params["n2_b"][:, None]]

    # Pass 2: stats of nugget-2 pre-BN (8 ch).
    s, ss = _stats_pass(x3, weights, 2, 8, tile_p, hw, par)
    al, sh = _bn_affine(s, ss, count, params["bn2_g"], params["bn2_b"])
    weights += [al[:, None], sh[:, None],
                _bf(_pad_mat(params["n3_w"], 8, 8)),
                _pad_vec(params["n3_b"], 8)[:, None]]

    # Pass 3: stats of nugget-3 pre-BN (4 real ch, zero-padded to 8).
    s, ss = _stats_pass(x3, weights, 3, 8, tile_p, hw, par)
    al, sh = _bn_affine(s[:4], ss[:4], count,
                        params["bn3_g"], params["bn3_b"])
    weights += [_pad_vec(al, 8)[:, None], _pad_vec(sh, 8)[:, None],
                _bf(_pad_mat(params["n4_w"], 8, 8)),
                _pad_vec(params["n4_b"], 8)[:, None]]

    # Pass 4: stats of nugget-4 pre-BN (2 real ch, zero-padded to 8).
    s, ss = _stats_pass(x3, weights, 4, 8, tile_p, hw, par)
    al, sh = _bn_affine(s[:OUT_CH], ss[:OUT_CH], count,
                        params["bn4_g"], params["bn4_b"])
    weights += [_pad_vec(al, 8)[:, None], _pad_vec(sh, 8)[:, None],
                _bf(_pad_mat(params["out_w"], 8, 8)),
                _pad_vec(params["out_b"], 8)[:, None]]

    # Pass 5: fused full forward, writes only the final output.
    y3 = _output_pass(x3, weights, tile_p, par, OUT_CH)
    if hw_pad != hw:
        y3 = y3[:, :, :hw]
    return {"out": y3.reshape(n, OUT_CH, h, w)}


# --------------------------------------------------------------------------
# Eval-mode fast path: BN affines from running statistics -> one fused pass.
# --------------------------------------------------------------------------
@functools.partial(jax.jit, static_argnames=("tile_target",))
def cheaplab_forward_inference(x_nchw, params, running_stats, tile_target=8192):
    n, cin, h, w = x_nchw.shape
    x3, hw, hw_pad, tile_p, par = _prepare_input(x_nchw, tile_target)

    def aff(i):
        m = running_stats[f"bn{i}_mean"]
        v = running_stats[f"bn{i}_var"]
        a = params[f"bn{i}_g"] * jax.lax.rsqrt(v + BN_EPS)
        return a, params[f"bn{i}_b"] - m * a

    w_qf = _bf(jnp.concatenate([params["num_w"] @ params["conv1_w"],
                                params["den_w"] @ params["conv1_w"]], axis=0))
    weights = [w_qf, params["den_b"].astype(jnp.float32)[:, None]]
    al0, sh0 = aff(0)
    w1 = params["n1_w"]
    weights += [_bf(w1[:, :IDX_OUT] * al0[None, :]), _bf(w1[:, IDX_OUT:]),
                (params["n1_b"] + w1[:, :IDX_OUT] @ sh0)[:, None]]
    al, sh = aff(1)
    weights += [al[:, None], sh[:, None],
                _bf(params["n2_w"]), params["n2_b"][:, None]]
    al, sh = aff(2)
    weights += [al[:, None], sh[:, None],
                _bf(_pad_mat(params["n3_w"], 8, 8)),
                _pad_vec(params["n3_b"], 8)[:, None]]
    al, sh = aff(3)
    weights += [_pad_vec(al, 8)[:, None], _pad_vec(sh, 8)[:, None],
                _bf(_pad_mat(params["n4_w"], 8, 8)),
                _pad_vec(params["n4_b"], 8)[:, None]]
    al, sh = aff(4)
    weights += [_pad_vec(al, 8)[:, None], _pad_vec(sh, 8)[:, None],
                _bf(_pad_mat(params["out_w"], 8, 8)),
                _pad_vec(params["out_b"], 8)[:, None]]

    y3 = _output_pass(x3, weights, tile_p, par, OUT_CH)
    if hw_pad != hw:
        y3 = y3[:, :, :hw]
    return {"out": y3.reshape(n, OUT_CH, h, w)}


# --------------------------------------------------------------------------
# Pure-JAX f32 reference (mirrors the PyTorch module, unfolded)
# --------------------------------------------------------------------------
def _reference(x_nchw, params):
    n, cin, h, w = x_nchw.shape
    xf = x_nchw.reshape(n, cin, h * w).astype(jnp.float32)

    def conv(wt, b, v):
        out = jnp.einsum("oi,nip->nop", wt, v)
        return out if b is None else out + b[None, :, None]

    def bn(v, g, b):
        mean = v.mean(axis=(0, 2), keepdims=True)
        var = ((v - mean) ** 2).mean(axis=(0, 2), keepdims=True)
        return ((v - mean) / jnp.sqrt(var + BN_EPS)
                * g[None, :, None] + b[None, :, None])

    hh = conv(params["conv1_w"], None, xf)
    num = conv(params["num_w"], None, hh)
    den = conv(params["den_w"], params["den_b"], hh)
    v = bn(num / (den + DIV_EPS), params["bn0_g"], params["bn0_b"])
    v = jnp.concatenate([v, xf], axis=1)
    for i in range(1, 5):
        v = conv(params[f"n{i}_w"], params[f"n{i}_b"], v)
        v = jnp.maximum(bn(v, params[f"bn{i}_g"], params[f"bn{i}_b"]), 0.0)
    v = conv(params["out_w"], params["out_b"], v)
    return v.reshape(n, OUT_CH, h, w)


def init_params(key, band_count):
    ks = jax.random.split(key, 16)

    def nrm(k, shape, scale):
        return scale * jax.random.normal(k, shape, jnp.float32)

    p = {
        "conv1_w": nrm(ks[0], (IDX_INTER, band_count), 0.2),
        "num_w": nrm(ks[1], (IDX_OUT, IDX_INTER), 0.1),
        "den_w": nrm(ks[2], (IDX_OUT, IDX_INTER), 0.05),
        # Positive-biased denominator keeps the quotient numerically tame.
        "den_b": 1.0 + nrm(ks[3], (IDX_OUT,), 0.05),
        "bn0_g": jnp.ones((IDX_OUT,), jnp.float32),
        "bn0_b": jnp.zeros((IDX_OUT,), jnp.float32),
    }
    in_ch = [IDX_OUT + band_count, 16, 8, 4]
    out_ch = [16, 8, 4, OUT_CH]
    ki = 4
    for i in range(4):
        p[f"n{i+1}_w"] = nrm(ks[ki], (out_ch[i], in_ch[i]), 0.3); ki += 1
        p[f"n{i+1}_b"] = nrm(ks[ki], (out_ch[i],), 0.1); ki += 1
        p[f"bn{i+1}_g"] = jnp.ones((out_ch[i],), jnp.float32)
        p[f"bn{i+1}_b"] = jnp.zeros((out_ch[i],), jnp.float32)
    p["out_w"] = nrm(ks[ki], (OUT_CH, OUT_CH), 0.5); ki += 1
    p["out_b"] = nrm(ks[ki], (OUT_CH,), 0.1)
    return p


if __name__ == "__main__":
    key = jax.random.PRNGKey(0)
    kx, kp = jax.random.split(key)

    N, C, H, W = 2, BAND_COUNT, 16, 16
    x = jax.random.normal(kx, (N, C, H, W), jnp.float32)
    params = init_params(kp, C)

    y = cheaplab_forward(x, params)["out"]
    y = jax.block_until_ready(y)

    y_ref = _reference(x, params)
    assert y.shape == (N, OUT_CH, H, W)
    max_err = float(jnp.max(jnp.abs(y - y_ref)))
    # bf16-streamed input / bf16 weights bound the expected deviation at ~1%
    # relative of the per-layer scale; the reference is full f32, so validate
    # at a bf16-appropriate tolerance.
    assert jnp.allclose(y, y_ref, rtol=4e-2, atol=4e-2), (
        f"mismatch vs reference, max abs err = {max_err}")
    print("KERNEL_OK")
</pallas_src>

<mosaic_0001>
module attributes {stable_mosaic.version = 11 : i64} {
  func.func @kernel(%arg0: i32, %arg1: i32, %arg2: i32, %arg3: memref<1x4x256xbf16, #tpu.memory_space<vmem>>, %arg4: memref<64x4xbf16, #tpu.memory_space<vmem>>, %arg5: memref<32x1xf32, #tpu.memory_space<vmem>>, %arg6: memref<16x32xbf16, #tpu.memory_space<vmem>>, %arg7: memref<16x4xbf16, #tpu.memory_space<vmem>>, %arg8: memref<16x1xf32, #tpu.memory_space<vmem>>, %arg9: memref<1x1x16x128xf32, #tpu.memory_space<vmem>>, %arg10: memref<1x1x16x128xf32, #tpu.memory_space<vmem>>) attributes {dimension_semantics = [#tpu.dimension_semantics<parallel>, #tpu.dimension_semantics<parallel>, #tpu.dimension_semantics<arbitrary>], iteration_bounds = array<i64: 2, 1, 1>, scalar_prefetch = 0 : i64, scratch_operands = 0 : i64, tpu.core_type = #tpu.core_type<tc>, window_params = [{transform_indices = @transform_0, window_bounds = array<i64: 1, 4, 256>}, {pipeline_mode = #tpu.pipeline_mode<synchronous>, transform_indices = @transform_1, window_bounds = array<i64: 64, 4>}, {pipeline_mode = #tpu.pipeline_mode<synchronous>, transform_indices = @transform_2, window_bounds = array<i64: 32, 1>}, {pipeline_mode = #tpu.pipeline_mode<synchronous>, transform_indices = @transform_3, window_bounds = array<i64: 16, 32>}, {pipeline_mode = #tpu.pipeline_mode<synchronous>, transform_indices = @transform_4, window_bounds = array<i64: 16, 4>}, {pipeline_mode = #tpu.pipeline_mode<synchronous>, transform_indices = @transform_5, window_bounds = array<i64: 16, 1>}, {transform_indices = @transform_6, window_bounds = array<i64: 1, 1, 16, 128>}, {transform_indices = @transform_7, window_bounds = array<i64: 1, 1, 16, 128>}]} {
    %c0 = arith.constant 0 : index
    %c0_0 = arith.constant 0 : index
    %0 = vector.load %arg4[%c0, %c0_0] : memref<64x4xbf16, #tpu.memory_space<vmem>>, vector<64x4xbf16>
    %c0_1 = arith.constant 0 : index
    %c0_2 = arith.constant 0 : index
    %1 = vector.load %arg5[%c0_1, %c0_2] : memref<32x1xf32, #tpu.memory_space<vmem>>, vector<32x1xf32>
    %c0_3 = arith.constant 0 : index
    %c0_4 = arith.constant 0 : index
    %2 = vector.load %arg6[%c0_3, %c0_4] : memref<16x32xbf16, #tpu.memory_space<vmem>>, vector<16x32xbf16>
    %c0_5 = arith.constant 0 : index
    %c0_6 = arith.constant 0 : index
    %3 = vector.load %arg7[%c0_5, %c0_6] : memref<16x4xbf16, #tpu.memory_space<vmem>>, vector<16x4xbf16>
    %c0_7 = arith.constant 0 : index
    %c0_8 = arith.constant 0 : index
    %4 = vector.load %arg8[%c0_7, %c0_8] : memref<16x1xf32, #tpu.memory_space<vmem>>, vector<16x1xf32>
    %c0_i32 = arith.constant 0 : i32
    %5 = arith.cmpi eq, %arg2, %c0_i32 : i32
    %6 = arith.extui %5 : i1 to i32
    %c0_i32_9 = arith.constant 0 : i32
    %7 = arith.cmpi ne, %6, %c0_i32_9 : i32
    scf.if %7 {
      %cst_32 = arith.constant 0.000000e+00 : f32
      %42 = vector.broadcast %cst_32 : f32 to vector<16x128xf32>
      %c0_33 = arith.constant 0 : index
      %c0_34 = arith.constant 0 : index
      %c0_35 = arith.constant 0 : index
      %c0_36 = arith.constant 0 : index
      %43 = vector.load %arg9[%c0_33, %c0_34, %c0_35, %c0_36] : memref<1x1x16x128xf32, #tpu.memory_space<vmem>>, vector<1x1x16x128xf32>
      %44 = vector.shape_cast %43 : vector<1x1x16x128xf32> to vector<16x128xf32>
      %45 = vector.shape_cast %42 : vector<16x128xf32> to vector<1x1x16x128xf32>
      tpu.vector_store %arg9[%c0_33, %c0_34, %c0_35, %c0_36], %45 {strides = array<i32>} : memref<1x1x16x128xf32, #tpu.memory_space<vmem>>, vector<1x1x16x128xf32>,
      %cst_37 = arith.constant 0.000000e+00 : f32
      %46 = vector.broadcast %cst_37 : f32 to vector<16x128xf32>
      %c0_38 = arith.constant 0 : index
      %c0_39 = arith.constant 0 : index
      %c0_40 = arith.constant 0 : index
      %c0_41 = arith.constant 0 : index
      %47 = vector.load %arg10[%c0_38, %c0_39, %c0_40, %c0_41] : memref<1x1x16x128xf32, #tpu.memory_space<vmem>>, vector<1x1x16x128xf32>
      %48 = vector.shape_cast %47 : vector<1x1x16x128xf32> to vector<16x128xf32>
      %49 = vector.shape_cast %46 : vector<16x128xf32> to vector<1x1x16x128xf32>
      tpu.vector_store %arg10[%c0_38, %c0_39, %c0_40, %c0_41], %49 {strides = array<i32>} : memref<1x1x16x128xf32, #tpu.memory_space<vmem>>, vector<1x1x16x128xf32>,
    } else {
    }
    %c0_10 = arith.constant 0 : index
    %c0_11 = arith.constant 0 : index
    %c0_12 = arith.constant 0 : index
    %8 = vector.load %arg3[%c0_10, %c0_11, %c0_12] : memref<1x4x256xbf16, #tpu.memory_space<vmem>>, vector<1x4x256xbf16>
    %9 = vector.shape_cast %8 : vector<1x4x256xbf16> to vector<4x256xbf16>
    %cst = arith.constant dense<0.000000e+00> : vector<64x256xf32>
    %10 = tpu.matmul %0, %9, %cst {dimension_numbers = #tpu.dot_dimension_numbers<[1], [0], [0], [1], [0, 0, 1, 1], [], []>} : vector<64x4xbf16>, vector<4x256xbf16>, vector<64x256xf32> -> vector<64x256xf32>
    %11 = vector.extract_strided_slice %10 {offsets = [0, 0], sizes = [32, 256], strides = [1, 1]} : vector<64x256xf32> to vector<32x256xf32>
    %12 = vector.extract_strided_slice %10 {offsets = [32, 0], sizes = [32, 256], strides = [1, 1]} : vector<64x256xf32> to vector<32x256xf32>
    %13 = vector.broadcast %1 : vector<32x1xf32> to vector<32x256xf32>
    %14 = arith.addf %12, %13 : vector<32x256xf32>
    %cst_13 = arith.constant 1.000000e-07 : f32
    %15 = vector.broadcast %cst_13 : f32 to vector<32x256xf32>
    %16 = arith.addf %14, %15 : vector<32x256xf32>
    %17 = tpu.reciprocal %16 {approx = true} : vector<32x256xf32> -> vector<32x256xf32>
    %18 = arith.mulf %11, %17 : vector<32x256xf32>
    %cst_14 = arith.constant dense<0.000000e+00> : vector<16x256xf32>
    %19 = tpu.matmul %2, %18, %cst_14 {dimension_numbers = #tpu.dot_dimension_numbers<[1], [0], [0], [1], [0, 0, 1, 1], [], []>} : vector<16x32xbf16>, vector<32x256xf32>, vector<16x256xf32> -> vector<16x256xf32>
    %cst_15 = arith.constant dense<0.000000e+00> : vector<16x256xf32>
    %20 = tpu.matmul %3, %9, %cst_15 {dimension_numbers = #tpu.dot_dimension_numbers<[1], [0], [0], [1], [0, 0, 1, 1], [], []>} : vector<16x4xbf16>, vector<4x256xbf16>, vector<16x256xf32> -> vector<16x256xf32>
    %21 = arith.addf %19, %20 : vector<16x256xf32>
    %22 = vector.broadcast %4 : vector<16x1xf32> to vector<16x256xf32>
    %23 = arith.addf %21, %22 : vector<16x256xf32>
    %24 = vector.extract_strided_slice %23 {offsets = [0, 0], sizes = [16, 128], strides = [1, 1]} : vector<16x256xf32> to vector<16x128xf32>
    %25 = arith.mulf %24, %24 : vector<16x128xf32>
    %26 = vector.extract_strided_slice %23 {offsets = [0, 128], sizes = [16, 128], strides = [1, 1]} : vector<16x256xf32> to vector<16x128xf32>
    %27 = arith.addf %24, %26 : vector<16x128xf32>
    %28 = arith.mulf %26, %26 : vector<16x128xf32>
    %29 = arith.addf %25, %28 : vector<16x128xf32>
    %c0_16 = arith.constant 0 : index
    %c0_17 = arith.constant 0 : index
    %c0_18 = arith.constant 0 : index
    %c0_19 = arith.constant 0 : index
    %30 = vector.load %arg9[%c0_16, %c0_17, %c0_18, %c0_19] : memref<1x1x16x128xf32, #tpu.memory_space<vmem>>, vector<1x1x16x128xf32>
    %31 = vector.shape_cast %30 : vector<1x1x16x128xf32> to vector<16x128xf32>
    %32 = arith.addf %31, %27 : vector<16x128xf32>
    %c0_20 = arith.constant 0 : index
    %c0_21 = arith.constant 0 : index
    %c0_22 = arith.constant 0 : index
    %c0_23 = arith.constant 0 : index
    %33 = vector.load %arg9[%c0_20, %c0_21, %c0_22, %c0_23] : memref<1x1x16x128xf32, #tpu.memory_space<vmem>>, vector<1x1x16x128xf32>
    %34 = vector.shape_cast %33 : vector<1x1x16x128xf32> to vector<16x128xf32>
    %35 = vector.shape_cast %32 : vector<16x128xf32> to vector<1x1x16x128xf32>
    tpu.vector_store %arg9[%c0_20, %c0_21, %c0_22, %c0_23], %35 {strides = array<i32>} : memref<1x1x16x128xf32, #tpu.memory_space<vmem>>, vector<1x1x16x128xf32>,
    %c0_24 = arith.constant 0 : index
    %c0_25 = arith.constant 0 : index
    %c0_26 = arith.constant 0 : index
    %c0_27 = arith.constant 0 : index
    %36 = vector.load %arg10[%c0_24, %c0_25, %c0_26, %c0_27] : memref<1x1x16x128xf32, #tpu.memory_space<vmem>>, vector<1x1x16x128xf32>
    %37 = vector.shape_cast %36 : vector<1x1x16x128xf32> to vector<16x128xf32>
    %38 = arith.addf %37, %29 : vector<16x128xf32>
    %c0_28 = arith.constant 0 : index
    %c0_29 = arith.constant 0 : index
    %c0_30 = arith.constant 0 : index
    %c0_31 = arith.constant 0 : index
    %39 = vector.load %arg10[%c0_28, %c0_29, %c0_30, %c0_31] : memref<1x1x16x128xf32, #tpu.memory_space<vmem>>, vector<1x1x16x128xf32>
    %40 = vector.shape_cast %39 : vector<1x1x16x128xf32> to vector<16x128xf32>
    %41 = vector.shape_cast %38 : vector<16x128xf32> to vector<1x1x16x128xf32>
    tpu.vector_store %arg10[%c0_28, %c0_29, %c0_30, %c0_31], %41 {strides = array<i32>} : memref<1x1x16x128xf32, #tpu.memory_space<vmem>>, vector<1x1x16x128xf32>,
    return
  }
  func.func @transform_0(%arg0: i32, %arg1: i32, %arg2: i32) -> (i32, i32, i32) {
    %c1_i32 = arith.constant 1 : i32
    %0 = arith.muli %arg1, %c1_i32 : i32
    %1 = arith.addi %0, %arg2 : i32
    %c0_i32 = arith.constant 0 : i32
    %c0_i32_0 = arith.constant 0 : i32
    return %arg0, %c0_i32, %1 : i32, i32, i32
  }
  func.func @transform_1(%arg0: i32, %arg1: i32, %arg2: i32) -> (i32, i32) {
    %c0_i32 = arith.constant 0 : i32
    %c0_i32_0 = arith.constant 0 : i32
    %c0_i32_1 = arith.constant 0 : i32
    return %c0_i32, %c0_i32_0 : i32, i32
  }
  func.func @transform_2(%arg0: i32, %arg1: i32, %arg2: i32) -> (i32, i32) {
    %c0_i32 = arith.constant 0 : i32
    %c0_i32_0 = arith.constant 0 : i32
    %c0_i32_1 = arith.constant 0 : i32
    return %c0_i32, %c0_i32_0 : i32, i32
  }
  func.func @transform_3(%arg0: i32, %arg1: i32, %arg2: i32) -> (i32, i32) {
    %c0_i32 = arith.constant 0 : i32
    %c0_i32_0 = arith.constant 0 : i32
    %c0_i32_1 = arith.constant 0 : i32
    return %c0_i32, %c0_i32_0 : i32, i32
  }
  func.func @transform_4(%arg0: i32, %arg1: i32, %arg2: i32) -> (i32, i32) {
    %c0_i32 = arith.constant 0 : i32
    %c0_i32_0 = arith.constant 0 : i32
    %c0_i32_1 = arith.constant 0 : i32
    return %c0_i32, %c0_i32_0 : i32, i32
  }
  func.func @transform_5(%arg0: i32, %arg1: i32, %arg2: i32) -> (i32, i32) {
    %c0_i32 = arith.constant 0 : i32
    %c0_i32_0 = arith.constant 0 : i32
    %c0_i32_1 = arith.constant 0 : i32
    return %c0_i32, %c0_i32_0 : i32, i32
  }
  func.func @transform_6(%arg0: i32, %arg1: i32, %arg2: i32) -> (i32, i32, i32, i32) {
    %c0_i32 = arith.constant 0 : i32
    %c0_i32_0 = arith.constant 0 : i32
    %c0_i32_1 = arith.constant 0 : i32
    return %arg0, %arg1, %c0_i32, %c0_i32_0 : i32, i32, i32, i32
  }
  func.func @transform_7(%arg0: i32, %arg1: i32, %arg2: i32) -> (i32, i32, i32, i32) {
    %c0_i32 = arith.constant 0 : i32
    %c0_i32_0 = arith.constant 0 : i32
    %c0_i32_1 = arith.constant 0 : i32
    return %arg0, %arg1, %c0_i32, %c0_i32_0 : i32, i32, i32, i32
  }
}

module attributes {stable_mosaic.version = 11 : i64} {
  func.func @kernel(%arg0: i32, %arg1: i32, %arg2: i32, %arg3: memref<1x4x256xbf16, #tpu.memory_space<vmem>>, %arg4: memref<64x4xbf16, #tpu.memory_space<vmem>>, %arg5: memref<32x1xf32, #tpu.memory_space<vmem>>, %arg6: memref<1x1x32x128xf32, #tpu.memory_space<vmem>>, %arg7: memref<1x1x32x128xf32, #tpu.memory_space<vmem>>) attributes {dimension_semantics = [#tpu.dimension_semantics<parallel>, #tpu.dimension_semantics<parallel>, #tpu.dimension_semantics<arbitrary>], iteration_bounds = array<i64: 2, 1, 1>, scalar_prefetch = 0 : i64, scratch_operands = 0 : i64, tpu.core_type = #tpu.core_type<tc>, window_params = [{transform_indices = @transform_0, window_bounds = array<i64: 1, 4, 256>}, {pipeline_mode = #tpu.pipeline_mode<synchronous>, transform_indices = @transform_1, window_bounds = array<i64: 64, 4>}, {pipeline_mode = #tpu.pipeline_mode<synchronous>, transform_indices = @transform_2, window_bounds = array<i64: 32, 1>}, {transform_indices = @transform_3, window_bounds = array<i64: 1, 1, 32, 128>}, {transform_indices = @transform_4, window_bounds = array<i64: 1, 1, 32, 128>}]} {
    %c0 = arith.constant 0 : index
    %c0_0 = arith.constant 0 : index
    %0 = vector.load %arg4[%c0, %c0_0] : memref<64x4xbf16, #tpu.memory_space<vmem>>, vector<64x4xbf16>
    %c0_1 = arith.constant 0 : index
    %c0_2 = arith.constant 0 : index
    %1 = vector.load %arg5[%c0_1, %c0_2] : memref<32x1xf32, #tpu.memory_space<vmem>>, vector<32x1xf32>
    %c0_i32 = arith.constant 0 : i32
    %2 = arith.cmpi eq, %arg2, %c0_i32 : i32
    %3 = arith.extui %2 : i1 to i32
    %c0_i32_3 = arith.constant 0 : i32
    %4 = arith.cmpi ne, %3, %c0_i32_3 : i32
    scf.if %4 {
      %cst_24 = arith.constant 0.000000e+00 : f32
      %34 = vector.broadcast %cst_24 : f32 to vector<32x128xf32>
      %c0_25 = arith.constant 0 : index
      %c0_26 = arith.constant 0 : index
      %c0_27 = arith.constant 0 : index
      %c0_28 = arith.constant 0 : index
      %35 = vector.load %arg6[%c0_25, %c0_26, %c0_27, %c0_28] : memref<1x1x32x128xf32, #tpu.memory_space<vmem>>, vector<1x1x32x128xf32>
      %36 = vector.shape_cast %35 : vector<1x1x32x128xf32> to vector<32x128xf32>
      %37 = vector.shape_cast %34 : vector<32x128xf32> to vector<1x1x32x128xf32>
      tpu.vector_store %arg6[%c0_25, %c0_26, %c0_27, %c0_28], %37 {strides = array<i32>} : memref<1x1x32x128xf32, #tpu.memory_space<vmem>>, vector<1x1x32x128xf32>,
      %cst_29 = arith.constant 0.000000e+00 : f32
      %38 = vector.broadcast %cst_29 : f32 to vector<32x128xf32>
      %c0_30 = arith.constant 0 : index
      %c0_31 = arith.constant 0 : index
      %c0_32 = arith.constant 0 : index
      %c0_33 = arith.constant 0 : index
      %39 = vector.load %arg7[%c0_30, %c0_31, %c0_32, %c0_33] : memref<1x1x32x128xf32, #tpu.memory_space<vmem>>, vector<1x1x32x128xf32>
      %40 = vector.shape_cast %39 : vector<1x1x32x128xf32> to vector<32x128xf32>
      %41 = vector.shape_cast %38 : vector<32x128xf32> to vector<1x1x32x128xf32>
      tpu.vector_store %arg7[%c0_30, %c0_31, %c0_32, %c0_33], %41 {strides = array<i32>} : memref<1x1x32x128xf32, #tpu.memory_space<vmem>>, vector<1x1x32x128xf32>,
    } else {
    }
    %c0_4 = arith.constant 0 : index
    %c0_5 = arith.constant 0 : index
    %c0_6 = arith.constant 0 : index
    %5 = vector.load %arg3[%c0_4, %c0_5, %c0_6] : memref<1x4x256xbf16, #tpu.memory_space<vmem>>, vector<1x4x256xbf16>
    %6 = vector.shape_cast %5 : vector<1x4x256xbf16> to vector<4x256xbf16>
    %cst = arith.constant dense<0.000000e+00> : vector<64x256xf32>
    %7 = tpu.matmul %0, %6, %cst {dimension_numbers = #tpu.dot_dimension_numbers<[1], [0], [0], [1], [0, 0, 1, 1], [], []>} : vector<64x4xbf16>, vector<4x256xbf16>, vector<64x256xf32> -> vector<64x256xf32>
    %8 = vector.extract_strided_slice %7 {offsets = [0, 0], sizes = [32, 256], strides = [1, 1]} : vector<64x256xf32> to vector<32x256xf32>
    %9 = vector.extract_strided_slice %7 {offsets = [32, 0], sizes = [32, 256], strides = [1, 1]} : vector<64x256xf32> to vector<32x256xf32>
    %10 = vector.broadcast %1 : vector<32x1xf32> to vector<32x256xf32>
    %11 = arith.addf %9, %10 : vector<32x256xf32>
    %cst_7 = arith.constant 1.000000e-07 : f32
    %12 = vector.broadcast %cst_7 : f32 to vector<32x256xf32>
    %13 = arith.addf %11, %12 : vector<32x256xf32>
    %14 = tpu.reciprocal %13 {approx = true} : vector<32x256xf32> -> vector<32x256xf32>
    %15 = arith.mulf %8, %14 : vector<32x256xf32>
    %16 = vector.extract_strided_slice %15 {offsets = [0, 0], sizes = [32, 128], strides = [1, 1]} : vector<32x256xf32> to vector<32x128xf32>
    %17 = arith.mulf %16, %16 : vector<32x128xf32>
    %18 = vector.extract_strided_slice %15 {offsets = [0, 128], sizes = [32, 128], strides = [1, 1]} : vector<32x256xf32> to vector<32x128xf32>
    %19 = arith.addf %16, %18 : vector<32x128xf32>
    %20 = arith.mulf %18, %18 : vector<32x128xf32>
    %21 = arith.addf %17, %20 : vector<32x128xf32>
    %c0_8 = arith.constant 0 : index
    %c0_9 = arith.constant 0 : index
    %c0_10 = arith.constant 0 : index
    %c0_11 = arith.constant 0 : index
    %22 = vector.load %arg6[%c0_8, %c0_9, %c0_10, %c0_11] : memref<1x1x32x128xf32, #tpu.memory_space<vmem>>, vector<1x1x32x128xf32>
    %23 = vector.shape_cast %22 : vector<1x1x32x128xf32> to vector<32x128xf32>
    %24 = arith.addf %23, %19 : vector<32x128xf32>
    %c0_12 = arith.constant 0 : index
    %c0_13 = arith.constant 0 : index
    %c0_14 = arith.constant 0 : index
    %c0_15 = arith.constant 0 : index
    %25 = vector.load %arg6[%c0_12, %c0_13, %c0_14, %c0_15] : memref<1x1x32x128xf32, #tpu.memory_space<vmem>>, vector<1x1x32x128xf32>
    %26 = vector.shape_cast %25 : vector<1x1x32x128xf32> to vector<32x128xf32>
    %27 = vector.shape_cast %24 : vector<32x128xf32> to vector<1x1x32x128xf32>
    tpu.vector_store %arg6[%c0_12, %c0_13, %c0_14, %c0_15], %27 {strides = array<i32>} : memref<1x1x32x128xf32, #tpu.memory_space<vmem>>, vector<1x1x32x128xf32>,
    %c0_16 = arith.constant 0 : index
    %c0_17 = arith.constant 0 : index
    %c0_18 = arith.constant 0 : index
    %c0_19 = arith.constant 0 : index
    %28 = vector.load %arg7[%c0_16, %c0_17, %c0_18, %c0_19] : memref<1x1x32x128xf32, #tpu.memory_space<vmem>>, vector<1x1x32x128xf32>
    %29 = vector.shape_cast %28 : vector<1x1x32x128xf32> to vector<32x128xf32>
    %30 = arith.addf %29, %21 : vector<32x128xf32>
    %c0_20 = arith.constant 0 : index
    %c0_21 = arith.constant 0 : index
    %c0_22 = arith.constant 0 : index
    %c0_23 = arith.constant 0 : index
    %31 = vector.load %arg7[%c0_20, %c0_21, %c0_22, %c0_23] : memref<1x1x32x128xf32, #tpu.memory_space<vmem>>, vector<1x1x32x128xf32>
    %32 = vector.shape_cast %31 : vector<1x1x32x128xf32> to vector<32x128xf32>
    %33 = vector.shape_cast %30 : vector<32x128xf32> to vector<1x1x32x128xf32>
    tpu.vector_store %arg7[%c0_20, %c0_21, %c0_22, %c0_23], %33 {strides = array<i32>} : memref<1x1x32x128xf32, #tpu.memory_space<vmem>>, vector<1x1x32x128xf32>,
    return
  }
  func.func @transform_0(%arg0: i32, %arg1: i32, %arg2: i32) -> (i32, i32, i32) {
    %c1_i32 = arith.constant 1 : i32
    %0 = arith.muli %arg1, %c1_i32 : i32
    %1 = arith.addi %0, %arg2 : i32
    %c0_i32 = arith.constant 0 : i32
    %c0_i32_0 = arith.constant 0 : i32
    return %arg0, %c0_i32, %1 : i32, i32, i32
  }
  func.func @transform_1(%arg0: i32, %arg1: i32, %arg2: i32) -> (i32, i32) {
    %c0_i32 = arith.constant 0 : i32
    %c0_i32_0 = arith.constant 0 : i32
    %c0_i32_1 = arith.constant 0 : i32
    return %c0_i32, %c0_i32_0 : i32, i32
  }
  func.func @transform_2(%arg0: i32, %arg1: i32, %arg2: i32) -> (i32, i32) {
    %c0_i32 = arith.constant 0 : i32
    %c0_i32_0 = arith.constant 0 : i32
    %c0_i32_1 = arith.constant 0 : i32
    return %c0_i32, %c0_i32_0 : i32, i32
  }
  func.func @transform_3(%arg0: i32, %arg1: i32, %arg2: i32) -> (i32, i32, i32, i32) {
    %c0_i32 = arith.constant 0 : i32
    %c0_i32_0 = arith.constant 0 : i32
    %c0_i32_1 = arith.constant 0 : i32
    return %arg0, %arg1, %c0_i32, %c0_i32_0 : i32, i32, i32, i32
  }
  func.func @transform_4(%arg0: i32, %arg1: i32, %arg2: i32) -> (i32, i32, i32, i32) {
    %c0_i32 = arith.constant 0 : i32
    %c0_i32_0 = arith.constant 0 : i32
    %c0_i32_1 = arith.constant 0 : i32
    return %arg0, %arg1, %c0_i32, %c0_i32_0 : i32, i32, i32, i32
  }
}

module attributes {stable_mosaic.version = 11 : i64} {
  func.func @kernel(%arg0: i32, %arg1: i32, %arg2: i32, %arg3: memref<1x4x256xbf16, #tpu.memory_space<vmem>>, %arg4: memref<64x4xbf16, #tpu.memory_space<vmem>>, %arg5: memref<32x1xf32, #tpu.memory_space<vmem>>, %arg6: memref<16x32xbf16, #tpu.memory_space<vmem>>, %arg7: memref<16x4xbf16, #tpu.memory_space<vmem>>, %arg8: memref<16x1xf32, #tpu.memory_space<vmem>>, %arg9: memref<16x1xf32, #tpu.memory_space<vmem>>, %arg10: memref<16x1xf32, #tpu.memory_space<vmem>>, %arg11: memref<8x16xbf16, #tpu.memory_space<vmem>>, %arg12: memref<8x1xf32, #tpu.memory_space<vmem>>, %arg13: memref<1x1x8x128xf32, #tpu.memory_space<vmem>>, %arg14: memref<1x1x8x128xf32, #tpu.memory_space<vmem>>) attributes {dimension_semantics = [#tpu.dimension_semantics<parallel>, #tpu.dimension_semantics<parallel>, #tpu.dimension_semantics<arbitrary>], iteration_bounds = array<i64: 2, 1, 1>, scalar_prefetch = 0 : i64, scratch_operands = 0 : i64, tpu.core_type = #tpu.core_type<tc>, window_params = [{transform_indices = @transform_0, window_bounds = array<i64: 1, 4, 256>}, {pipeline_mode = #tpu.pipeline_mode<synchronous>, transform_indices = @transform_1, window_bounds = array<i64: 64, 4>}, {pipeline_mode = #tpu.pipeline_mode<synchronous>, transform_indices = @transform_2, window_bounds = array<i64: 32, 1>}, {pipeline_mode = #tpu.pipeline_mode<synchronous>, transform_indices = @transform_3, window_bounds = array<i64: 16, 32>}, {pipeline_mode = #tpu.pipeline_mode<synchronous>, transform_indices = @transform_4, window_bounds = array<i64: 16, 4>}, {pipeline_mode = #tpu.pipeline_mode<synchronous>, transform_indices = @transform_5, window_bounds = array<i64: 16, 1>}, {pipeline_mode = #tpu.pipeline_mode<synchronous>, transform_indices = @transform_6, window_bounds = array<i64: 16, 1>}, {pipeline_mode = #tpu.pipeline_mode<synchronous>, transform_indices = @transform_7, window_bounds = array<i64: 16, 1>}, {pipeline_mode = #tpu.pipeline_mode<synchronous>, transform_indices = @transform_8, window_bounds = array<i64: 8, 16>}, {pipeline_mode = #tpu.pipeline_mode<synchronous>, transform_indices = @transform_9, window_bounds = array<i64: 8, 1>}, {transform_indices = @transform_10, window_bounds = array<i64: 1, 1, 8, 128>}, {transform_indices = @transform_11, window_bounds = array<i64: 1, 1, 8, 128>}]} {
    %c0 = arith.constant 0 : index
    %c0_0 = arith.constant 0 : index
    %0 = vector.load %arg4[%c0, %c0_0] : memref<64x4xbf16, #tpu.memory_space<vmem>>, vector<64x4xbf16>
    %c0_1 = arith.constant 0 : index
    %c0_2 = arith.constant 0 : index
    %1 = vector.load %arg5[%c0_1, %c0_2] : memref<32x1xf32, #tpu.memory_space<vmem>>, vector<32x1xf32>
    %c0_3 = arith.constant 0 : index
    %c0_4 = arith.constant 0 : index
    %2 = vector.load %arg6[%c0_3, %c0_4] : memref<16x32xbf16, #tpu.memory_space<vmem>>, vector<16x32xbf16>
    %c0_5 = arith.constant 0 : index
    %c0_6 = arith.constant 0 : index
    %3 = vector.load %arg7[%c0_5, %c0_6] : memref<16x4xbf16, #tpu.memory_space<vmem>>, vector<16x4xbf16>
    %c0_7 = arith.constant 0 : index
    %c0_8 = arith.constant 0 : index
    %4 = vector.load %arg8[%c0_7, %c0_8] : memref<16x1xf32, #tpu.memory_space<vmem>>, vector<16x1xf32>
    %c0_9 = arith.constant 0 : index
    %c0_10 = arith.constant 0 : index
    %5 = vector.load %arg9[%c0_9, %c0_10] : memref<16x1xf32, #tpu.memory_space<vmem>>, vector<16x1xf32>
    %c0_11 = arith.constant 0 : index
    %c0_12 = arith.constant 0 : index
    %6 = vector.load %arg10[%c0_11, %c0_12] : memref<16x1xf32, #tpu.memory_space<vmem>>, vector<16x1xf32>
    %c0_13 = arith.constant 0 : index
    %c0_14 = arith.constant 0 : index
    %7 = vector.load %arg11[%c0_13, %c0_14] : memref<8x16xbf16, #tpu.memory_space<vmem>>, vector<8x16xbf16>
    %c0_15 = arith.constant 0 : index
    %c0_16 = arith.constant 0 : index
    %8 = vector.load %arg12[%c0_15, %c0_16] : memref<8x1xf32, #tpu.memory_space<vmem>>, vector<8x1xf32>
    %c0_i32 = arith.constant 0 : i32
    %9 = arith.cmpi eq, %arg2, %c0_i32 : i32
    %10 = arith.extui %9 : i1 to i32
    %c0_i32_17 = arith.constant 0 : i32
    %11 = arith.cmpi ne, %10, %c0_i32_17 : i32
    scf.if %11 {
      %cst_42 = arith.constant 0.000000e+00 : f32
      %55 = vector.broadcast %cst_42 : f32 to vector<8x128xf32>
      %c0_43 = arith.constant 0 : index
      %c0_44 = arith.constant 0 : index
      %c0_45 = arith.constant 0 : index
      %c0_46 = arith.constant 0 : index
      %56 = vector.load %arg13[%c0_43, %c0_44, %c0_45, %c0_46] : memref<1x1x8x128xf32, #tpu.memory_space<vmem>>, vector<1x1x8x128xf32>
      %57 = vector.shape_cast %56 : vector<1x1x8x128xf32> to vector<8x128xf32>
      %58 = vector.shape_cast %55 : vector<8x128xf32> to vector<1x1x8x128xf32>
      tpu.vector_store %arg13[%c0_43, %c0_44, %c0_45, %c0_46], %58 {strides = array<i32>} : memref<1x1x8x128xf32, #tpu.memory_space<vmem>>, vector<1x1x8x128xf32>,
      %cst_47 = arith.constant 0.000000e+00 : f32
      %59 = vector.broadcast %cst_47 : f32 to vector<8x128xf32>
      %c0_48 = arith.constant 0 : index
      %c0_49 = arith.constant 0 : index
      %c0_50 = arith.constant 0 : index
      %c0_51 = arith.constant 0 : index
      %60 = vector.load %arg14[%c0_48, %c0_49, %c0_50, %c0_51] : memref<1x1x8x128xf32, #tpu.memory_space<vmem>>, vector<1x1x8x128xf32>
      %61 = vector.shape_cast %60 : vector<1x1x8x128xf32> to vector<8x128xf32>
      %62 = vector.shape_cast %59 : vector<8x128xf32> to vector<1x1x8x128xf32>
      tpu.vector_store %arg14[%c0_48, %c0_49, %c0_50, %c0_51], %62 {strides = array<i32>} : memref<1x1x8x128xf32, #tpu.memory_space<vmem>>, vector<1x1x8x128xf32>,
    } else {
    }
    %c0_18 = arith.constant 0 : index
    %c0_19 = arith.constant 0 : index
    %c0_20 = arith.constant 0 : index
    %12 = vector.load %arg3[%c0_18, %c0_19, %c0_20] : memref<1x4x256xbf16, #tpu.memory_space<vmem>>, vector<1x4x256xbf16>
    %13 = vector.shape_cast %12 : vector<1x4x256xbf16> to vector<4x256xbf16>
    %cst = arith.constant dense<0.000000e+00> : vector<64x256xf32>
    %14 = tpu.matmul %0, %13, %cst {dimension_numbers = #tpu.dot_dimension_numbers<[1], [0], [0], [1], [0, 0, 1, 1], [], []>} : vector<64x4xbf16>, vector<4x256xbf16>, vector<64x256xf32> -> vector<64x256xf32>
    %15 = vector.extract_strided_slice %14 {offsets = [0, 0], sizes = [32, 256], strides = [1, 1]} : vector<64x256xf32> to vector<32x256xf32>
    %16 = vector.extract_strided_slice %14 {offsets = [32, 0], sizes = [32, 256], strides = [1, 1]} : vector<64x256xf32> to vector<32x256xf32>
    %17 = vector.broadcast %1 : vector<32x1xf32> to vector<32x256xf32>
    %18 = arith.addf %16, %17 : vector<32x256xf32>
    %cst_21 = arith.constant 1.000000e-07 : f32
    %19 = vector.broadcast %cst_21 : f32 to vector<32x256xf32>
    %20 = arith.addf %18, %19 : vector<32x256xf32>
    %21 = tpu.reciprocal %20 {approx = true} : vector<32x256xf32> -> vector<32x256xf32>
    %22 = arith.mulf %15, %21 : vector<32x256xf32>
    %cst_22 = arith.constant dense<0.000000e+00> : vector<16x256xf32>
    %23 = tpu.matmul %2, %22, %cst_22 {dimension_numbers = #tpu.dot_dimension_numbers<[1], [0], [0], [1], [0, 0, 1, 1], [], []>} : vector<16x32xbf16>, vector<32x256xf32>, vector<16x256xf32> -> vector<16x256xf32>
    %cst_23 = arith.constant dense<0.000000e+00> : vector<16x256xf32>
    %24 = tpu.matmul %3, %13, %cst_23 {dimension_numbers = #tpu.dot_dimension_numbers<[1], [0], [0], [1], [0, 0, 1, 1], [], []>} : vector<16x4xbf16>, vector<4x256xbf16>, vector<16x256xf32> -> vector<16x256xf32>
    %25 = arith.addf %23, %24 : vector<16x256xf32>
    %26 = vector.broadcast %4 : vector<16x1xf32> to vector<16x256xf32>
    %27 = arith.addf %25, %26 : vector<16x256xf32>
    %28 = vector.broadcast %5 : vector<16x1xf32> to vector<16x256xf32>
    %29 = arith.mulf %27, %28 : vector<16x256xf32>
    %30 = vector.broadcast %6 : vector<16x1xf32> to vector<16x256xf32>
    %31 = arith.addf %29, %30 : vector<16x256xf32>
    %cst_24 = arith.constant 0.000000e+00 : f32
    %32 = vector.broadcast %cst_24 : f32 to vector<16x256xf32>
    %33 = arith.maximumf %31, %32 : vector<16x256xf32>
    %cst_25 = arith.constant dense<0.000000e+00> : vector<8x256xf32>
    %34 = tpu.matmul %7, %33, %cst_25 {dimension_numbers = #tpu.dot_dimension_numbers<[1], [0], [0], [1], [0, 0, 1, 1], [], []>} : vector<8x16xbf16>, vector<16x256xf32>, vector<8x256xf32> -> vector<8x256xf32>
    %35 = vector.broadcast %8 : vector<8x1xf32> to vector<8x256xf32>
    %36 = arith.addf %34, %35 : vector<8x256xf32>
    %37 = vector.extract_strided_slice %36 {offsets = [0, 0], sizes = [8, 128], strides = [1, 1]} : vector<8x256xf32> to vector<8x128xf32>
    %38 = arith.mulf %37, %37 : vector<8x128xf32>
    %39 = vector.extract_strided_slice %36 {offsets = [0, 128], sizes = [8, 128], strides = [1, 1]} : vector<8x256xf32> to vector<8x128xf32>
    %40 = arith.addf %37, %39 : vector<8x128xf32>
    %41 = arith.mulf %39, %39 : vector<8x128xf32>
    %42 = arith.addf %38, %41 : vector<8x128xf32>
    %c0_26 = arith.constant 0 : index
    %c0_27 = arith.constant 0 : index
    %c0_28 = arith.constant 0 : index
    %c0_29 = arith.constant 0 : index
    %43 = vector.load %arg13[%c0_26, %c0_27, %c0_28, %c0_29] : memref<1x1x8x128xf32, #tpu.memory_space<vmem>>, vector<1x1x8x128xf32>
    %44 = vector.shape_cast %43 : vector<1x1x8x128xf32> to vector<8x128xf32>
    %45 = arith.addf %44, %40 : vector<8x128xf32>
    %c0_30 = arith.constant 0 : index
    %c0_31 = arith.constant 0 : index
    %c0_32 = arith.constant 0 : index
    %c0_33 = arith.constant 0 : index
    %46 = vector.load %arg13[%c0_30, %c0_31, %c0_32, %c0_33] : memref<1x1x8x128xf32, #tpu.memory_space<vmem>>, vector<1x1x8x128xf32>
    %47 = vector.shape_cast %46 : vector<1x1x8x128xf32> to vector<8x128xf32>
    %48 = vector.shape_cast %45 : vector<8x128xf32> to vector<1x1x8x128xf32>
    tpu.vector_store %arg13[%c0_30, %c0_31, %c0_32, %c0_33], %48 {strides = array<i32>} : memref<1x1x8x128xf32, #tpu.memory_space<vmem>>, vector<1x1x8x128xf32>,
    %c0_34 = arith.constant 0 : index
    %c0_35 = arith.constant 0 : index
    %c0_36 = arith.constant 0 : index
    %c0_37 = arith.constant 0 : index
    %49 = vector.load %arg14[%c0_34, %c0_35, %c0_36, %c0_37] : memref<1x1x8x128xf32, #tpu.memory_space<vmem>>, vector<1x1x8x128xf32>
    %50 = vector.shape_cast %49 : vector<1x1x8x128xf32> to vector<8x128xf32>
    %51 = arith.addf %50, %42 : vector<8x128xf32>
    %c0_38 = arith.constant 0 : index
    %c0_39 = arith.constant 0 : index
    %c0_40 = arith.constant 0 : index
    %c0_41 = arith.constant 0 : index
    %52 = vector.load %arg14[%c0_38, %c0_39, %c0_40, %c0_41] : memref<1x1x8x128xf32, #tpu.memory_space<vmem>>, vector<1x1x8x128xf32>
    %53 = vector.shape_cast %52 : vector<1x1x8x128xf32> to vector<8x128xf32>
    %54 = vector.shape_cast %51 : vector<8x128xf32> to vector<1x1x8x128xf32>
    tpu.vector_store %arg14[%c0_38, %c0_39, %c0_40, %c0_41], %54 {strides = array<i32>} : memref<1x1x8x128xf32, #tpu.memory_space<vmem>>, vector<1x1x8x128xf32>,
    return
  }
  func.func @transform_0(%arg0: i32, %arg1: i32, %arg2: i32) -> (i32, i32, i32) {
    %c1_i32 = arith.constant 1 : i32
    %0 = arith.muli %arg1, %c1_i32 : i32
    %1 = arith.addi %0, %arg2 : i32
    %c0_i32 = arith.constant 0 : i32
    %c0_i32_0 = arith.constant 0 : i32
    return %arg0, %c0_i32, %1 : i32, i32, i32
  }
  func.func @transform_1(%arg0: i32, %arg1: i32, %arg2: i32) -> (i32, i32) {
    %c0_i32 = arith.constant 0 : i32
    %c0_i32_0 = arith.constant 0 : i32
    %c0_i32_1 = arith.constant 0 : i32
    return %c0_i32, %c0_i32_0 : i32, i32
  }
  func.func @transform_2(%arg0: i32, %arg1: i32, %arg2: i32) -> (i32, i32) {
    %c0_i32 = arith.constant 0 : i32
    %c0_i32_0 = arith.constant 0 : i32
    %c0_i32_1 = arith.constant 0 : i32
    return %c0_i32, %c0_i32_0 : i32, i32
  }
  func.func @transform_3(%arg0: i32, %arg1: i32, %arg2: i32) -> (i32, i32) {
    %c0_i32 = arith.constant 0 : i32
    %c0_i32_0 = arith.constant 0 : i32
    %c0_i32_1 = arith.constant 0 : i32
    return %c0_i32, %c0_i32_0 : i32, i32
  }
  func.func @transform_4(%arg0: i32, %arg1: i32, %arg2: i32) -> (i32, i32) {
    %c0_i32 = arith.constant 0 : i32
    %c0_i32_0 = arith.constant 0 : i32
    %c0_i32_1 = arith.constant 0 : i32
    return %c0_i32, %c0_i32_0 : i32, i32
  }
  func.func @transform_5(%arg0: i32, %arg1: i32, %arg2: i32) -> (i32, i32) {
    %c0_i32 = arith.constant 0 : i32
    %c0_i32_0 = arith.constant 0 : i32
    %c0_i32_1 = arith.constant 0 : i32
    return %c0_i32, %c0_i32_0 : i32, i32
  }
  func.func @transform_6(%arg0: i32, %arg1: i32, %arg2: i32) -> (i32, i32) {
    %c0_i32 = arith.constant 0 : i32
    %c0_i32_0 = arith.constant 0 : i32
    %c0_i32_1 = arith.constant 0 : i32
    return %c0_i32, %c0_i32_0 : i32, i32
  }
  func.func @transform_7(%arg0: i32, %arg1: i32, %arg2: i32) -> (i32, i32) {
    %c0_i32 = arith.constant 0 : i32
    %c0_i32_0 = arith.constant 0 : i32
    %c0_i32_1 = arith.constant 0 : i32
    return %c0_i32, %c0_i32_0 : i32, i32
  }
  func.func @transform_8(%arg0: i32, %arg1: i32, %arg2: i32) -> (i32, i32) {
    %c0_i32 = arith.constant 0 : i32
    %c0_i32_0 = arith.constant 0 : i32
    %c0_i32_1 = arith.constant 0 : i32
    return %c0_i32, %c0_i32_0 : i32, i32
  }
  func.func @transform_9(%arg0: i32, %arg1: i32, %arg2: i32) -> (i32, i32) {
    %c0_i32 = arith.constant 0 : i32
    %c0_i32_0 = arith.constant 0 : i32
    %c0_i32_1 = arith.constant 0 : i32
    return %c0_i32, %c0_i32_0 : i32, i32
  }
  func.func @transform_10(%arg0: i32, %arg1: i32, %arg2: i32) -> (i32, i32, i32, i32) {
    %c0_i32 = arith.constant 0 : i32
    %c0_i32_0 = arith.constant 0 : i32
    %c0_i32_1 = arith.constant 0 : i32
    return %arg0, %arg1, %c0_i32, %c0_i32_0 : i32, i32, i32, i32
  }
  func.func @transform_11(%arg0: i32, %arg1: i32, %arg2: i32) -> (i32, i32, i32, i32) {
    %c0_i32 = arith.constant 0 : i32
    %c0_i32_0 = arith.constant 0 : i32
    %c0_i32_1 = arith.constant 0 : i32
    return %arg0, %arg1, %c0_i32, %c0_i32_0 : i32, i32, i32, i32
  }
}

module attributes {stable_mosaic.version = 11 : i64} {
  func.func @kernel(%arg0: i32, %arg1: i32, %arg2: i32, %arg3: memref<1x4x256xbf16, #tpu.memory_space<vmem>>, %arg4: memref<64x4xbf16, #tpu.memory_space<vmem>>, %arg5: memref<32x1xf32, #tpu.memory_space<vmem>>, %arg6: memref<16x32xbf16, #tpu.memory_space<vmem>>, %arg7: memref<16x4xbf16, #tpu.memory_space<vmem>>, %arg8: memref<16x1xf32, #tpu.memory_space<vmem>>, %arg9: memref<16x1xf32, #tpu.memory_space<vmem>>, %arg10: memref<16x1xf32, #tpu.memory_space<vmem>>, %arg11: memref<8x16xbf16, #tpu.memory_space<vmem>>, %arg12: memref<8x1xf32, #tpu.memory_space<vmem>>, %arg13: memref<8x1xf32, #tpu.memory_space<vmem>>, %arg14: memref<8x1xf32, #tpu.memory_space<vmem>>, %arg15: memref<8x8xbf16, #tpu.memory_space<vmem>>, %arg16: memref<8x1xf32, #tpu.memory_space<vmem>>, %arg17: memref<1x1x8x128xf32, #tpu.memory_space<vmem>>, %arg18: memref<1x1x8x128xf32, #tpu.memory_space<vmem>>) attributes {dimension_semantics = [#tpu.dimension_semantics<parallel>, #tpu.dimension_semantics<parallel>, #tpu.dimension_semantics<arbitrary>], iteration_bounds = array<i64: 2, 1, 1>, scalar_prefetch = 0 : i64, scratch_operands = 0 : i64, tpu.core_type = #tpu.core_type<tc>, window_params = [{transform_indices = @transform_0, window_bounds = array<i64: 1, 4, 256>}, {pipeline_mode = #tpu.pipeline_mode<synchronous>, transform_indices = @transform_1, window_bounds = array<i64: 64, 4>}, {pipeline_mode = #tpu.pipeline_mode<synchronous>, transform_indices = @transform_2, window_bounds = array<i64: 32, 1>}, {pipeline_mode = #tpu.pipeline_mode<synchronous>, transform_indices = @transform_3, window_bounds = array<i64: 16, 32>}, {pipeline_mode = #tpu.pipeline_mode<synchronous>, transform_indices = @transform_4, window_bounds = array<i64: 16, 4>}, {pipeline_mode = #tpu.pipeline_mode<synchronous>, transform_indices = @transform_5, window_bounds = array<i64: 16, 1>}, {pipeline_mode = #tpu.pipeline_mode<synchronous>, transform_indices = @transform_6, window_bounds = array<i64: 16, 1>}, {pipeline_mode = #tpu.pipeline_mode<synchronous>, transform_indices = @transform_7, window_bounds = array<i64: 16, 1>}, {pipeline_mode = #tpu.pipeline_mode<synchronous>, transform_indices = @transform_8, window_bounds = array<i64: 8, 16>}, {pipeline_mode = #tpu.pipeline_mode<synchronous>, transform_indices = @transform_9, window_bounds = array<i64: 8, 1>}, {pipeline_mode = #tpu.pipeline_mode<synchronous>, transform_indices = @transform_10, window_bounds = array<i64: 8, 1>}, {pipeline_mode = #tpu.pipeline_mode<synchronous>, transform_indices = @transform_11, window_bounds = array<i64: 8, 1>}, {pipeline_mode = #tpu.pipeline_mode<synchronous>, transform_indices = @transform_12, window_bounds = array<i64: 8, 8>}, {pipeline_mode = #tpu.pipeline_mode<synchronous>, transform_indices = @transform_13, window_bounds = array<i64: 8, 1>}, {transform_indices = @transform_14, window_bounds = array<i64: 1, 1, 8, 128>}, {transform_indices = @transform_15, window_bounds = array<i64: 1, 1, 8, 128>}]} {
    %c0 = arith.constant 0 : index
    %c0_0 = arith.constant 0 : index
    %0 = vector.load %arg4[%c0, %c0_0] : memref<64x4xbf16, #tpu.memory_space<vmem>>, vector<64x4xbf16>
    %c0_1 = arith.constant 0 : index
    %c0_2 = arith.constant 0 : index
    %1 = vector.load %arg5[%c0_1, %c0_2] : memref<32x1xf32, #tpu.memory_space<vmem>>, vector<32x1xf32>
    %c0_3 = arith.constant 0 : index
    %c0_4 = arith.constant 0 : index
    %2 = vector.load %arg6[%c0_3, %c0_4] : memref<16x32xbf16, #tpu.memory_space<vmem>>, vector<16x32xbf16>
    %c0_5 = arith.constant 0 : index
    %c0_6 = arith.constant 0 : index
    %3 = vector.load %arg7[%c0_5, %c0_6] : memref<16x4xbf16, #tpu.memory_space<vmem>>, vector<16x4xbf16>
    %c0_7 = arith.constant 0 : index
    %c0_8 = arith.constant 0 : index
    %4 = vector.load %arg8[%c0_7, %c0_8] : memref<16x1xf32, #tpu.memory_space<vmem>>, vector<16x1xf32>
    %c0_9 = arith.constant 0 : index
    %c0_10 = arith.constant 0 : index
    %5 = vector.load %arg9[%c0_9, %c0_10] : memref<16x1xf32, #tpu.memory_space<vmem>>, vector<16x1xf32>
    %c0_11 = arith.constant 0 : index
    %c0_12 = arith.constant 0 : index
    %6 = vector.load %arg10[%c0_11, %c0_12] : memref<16x1xf32, #tpu.memory_space<vmem>>, vector<16x1xf32>
    %c0_13 = arith.constant 0 : index
    %c0_14 = arith.constant 0 : index
    %7 = vector.load %arg11[%c0_13, %c0_14] : memref<8x16xbf16, #tpu.memory_space<vmem>>, vector<8x16xbf16>
    %c0_15 = arith.constant 0 : index
    %c0_16 = arith.constant 0 : index
    %8 = vector.load %arg12[%c0_15, %c0_16] : memref<8x1xf32, #tpu.memory_space<vmem>>, vector<8x1xf32>
    %c0_17 = arith.constant 0 : index
    %c0_18 = arith.constant 0 : index
    %9 = vector.load %arg13[%c0_17, %c0_18] : memref<8x1xf32, #tpu.memory_space<vmem>>, vector<8x1xf32>
    %c0_19 = arith.constant 0 : index
    %c0_20 = arith.constant 0 : index
    %10 = vector.load %arg14[%c0_19, %c0_20] : memref<8x1xf32, #tpu.memory_space<vmem>>, vector<8x1xf32>
    %c0_21 = arith.constant 0 : index
    %c0_22 = arith.constant 0 : index
    %11 = vector.load %arg15[%c0_21, %c0_22] : memref<8x8xbf16, #tpu.memory_space<vmem>>, vector<8x8xbf16>
    %c0_23 = arith.constant 0 : index
    %c0_24 = arith.constant 0 : index
    %12 = vector.load %arg16[%c0_23, %c0_24] : memref<8x1xf32, #tpu.memory_space<vmem>>, vector<8x1xf32>
    %c0_i32 = arith.constant 0 : i32
    %13 = arith.cmpi eq, %arg2, %c0_i32 : i32
    %14 = arith.extui %13 : i1 to i32
    %c0_i32_25 = arith.constant 0 : i32
    %15 = arith.cmpi ne, %14, %c0_i32_25 : i32
    scf.if %15 {
      %cst_52 = arith.constant 0.000000e+00 : f32
      %68 = vector.broadcast %cst_52 : f32 to vector<8x128xf32>
      %c0_53 = arith.constant 0 : index
      %c0_54 = arith.constant 0 : index
      %c0_55 = arith.constant 0 : index
      %c0_56 = arith.constant 0 : index
      %69 = vector.load %arg17[%c0_53, %c0_54, %c0_55, %c0_56] : memref<1x1x8x128xf32, #tpu.memory_space<vmem>>, vector<1x1x8x128xf32>
      %70 = vector.shape_cast %69 : vector<1x1x8x128xf32> to vector<8x128xf32>
      %71 = vector.shape_cast %68 : vector<8x128xf32> to vector<1x1x8x128xf32>
      tpu.vector_store %arg17[%c0_53, %c0_54, %c0_55, %c0_56], %71 {strides = array<i32>} : memref<1x1x8x128xf32, #tpu.memory_space<vmem>>, vector<1x1x8x128xf32>,
      %cst_57 = arith.constant 0.000000e+00 : f32
      %72 = vector.broadcast %cst_57 : f32 to vector<8x128xf32>
      %c0_58 = arith.constant 0 : index
      %c0_59 = arith.constant 0 : index
      %c0_60 = arith.constant 0 : index
      %c0_61 = arith.constant 0 : index
      %73 = vector.load %arg18[%c0_58, %c0_59, %c0_60, %c0_61] : memref<1x1x8x128xf32, #tpu.memory_space<vmem>>, vector<1x1x8x128xf32>
      %74 = vector.shape_cast %73 : vector<1x1x8x128xf32> to vector<8x128xf32>
      %75 = vector.shape_cast %72 : vector<8x128xf32> to vector<1x1x8x128xf32>
      tpu.vector_store %arg18[%c0_58, %c0_59, %c0_60, %c0_61], %75 {strides = array<i32>} : memref<1x1x8x128xf32, #tpu.memory_space<vmem>>, vector<1x1x8x128xf32>,
    } else {
    }
    %c0_26 = arith.constant 0 : index
    %c0_27 = arith.constant 0 : index
    %c0_28 = arith.constant 0 : index
    %16 = vector.load %arg3[%c0_26, %c0_27, %c0_28] : memref<1x4x256xbf16, #tpu.memory_space<vmem>>, vector<1x4x256xbf16>
    %17 = vector.shape_cast %16 : vector<1x4x256xbf16> to vector<4x256xbf16>
    %cst = arith.constant dense<0.000000e+00> : vector<64x256xf32>
    %18 = tpu.matmul %0, %17, %cst {dimension_numbers = #tpu.dot_dimension_numbers<[1], [0], [0], [1], [0, 0, 1, 1], [], []>} : vector<64x4xbf16>, vector<4x256xbf16>, vector<64x256xf32> -> vector<64x256xf32>
    %19 = vector.extract_strided_slice %18 {offsets = [0, 0], sizes = [32, 256], strides = [1, 1]} : vector<64x256xf32> to vector<32x256xf32>
    %20 = vector.extract_strided_slice %18 {offsets = [32, 0], sizes = [32, 256], strides = [1, 1]} : vector<64x256xf32> to vector<32x256xf32>
    %21 = vector.broadcast %1 : vector<32x1xf32> to vector<32x256xf32>
    %22 = arith.addf %20, %21 : vector<32x256xf32>
    %cst_29 = arith.constant 1.000000e-07 : f32
    %23 = vector.broadcast %cst_29 : f32 to vector<32x256xf32>
    %24 = arith.addf %22, %23 : vector<32x256xf32>
    %25 = tpu.reciprocal %24 {approx = true} : vector<32x256xf32> -> vector<32x256xf32>
    %26 = arith.mulf %19, %25 : vector<32x256xf32>
    %cst_30 = arith.constant dense<0.000000e+00> : vector<16x256xf32>
    %27 = tpu.matmul %2, %26, %cst_30 {dimension_numbers = #tpu.dot_dimension_numbers<[1], [0], [0], [1], [0, 0, 1, 1], [], []>} : vector<16x32xbf16>, vector<32x256xf32>, vector<16x256xf32> -> vector<16x256xf32>
    %cst_31 = arith.constant dense<0.000000e+00> : vector<16x256xf32>
    %28 = tpu.matmul %3, %17, %cst_31 {dimension_numbers = #tpu.dot_dimension_numbers<[1], [0], [0], [1], [0, 0, 1, 1], [], []>} : vector<16x4xbf16>, vector<4x256xbf16>, vector<16x256xf32> -> vector<16x256xf32>
    %29 = arith.addf %27, %28 : vector<16x256xf32>
    %30 = vector.broadcast %4 : vector<16x1xf32> to vector<16x256xf32>
    %31 = arith.addf %29, %30 : vector<16x256xf32>
    %32 = vector.broadcast %5 : vector<16x1xf32> to vector<16x256xf32>
    %33 = arith.mulf %31, %32 : vector<16x256xf32>
    %34 = vector.broadcast %6 : vector<16x1xf32> to vector<16x256xf32>
    %35 = arith.addf %33, %34 : vector<16x256xf32>
    %cst_32 = arith.constant 0.000000e+00 : f32
    %36 = vector.broadcast %cst_32 : f32 to vector<16x256xf32>
    %37 = arith.maximumf %35, %36 : vector<16x256xf32>
    %cst_33 = arith.constant dense<0.000000e+00> : vector<8x256xf32>
    %38 = tpu.matmul %7, %37, %cst_33 {dimension_numbers = #tpu.dot_dimension_numbers<[1], [0], [0], [1], [0, 0, 1, 1], [], []>} : vector<8x16xbf16>, vector<16x256xf32>, vector<8x256xf32> -> vector<8x256xf32>
    %39 = vector.broadcast %8 : vector<8x1xf32> to vector<8x256xf32>
    %40 = arith.addf %38, %39 : vector<8x256xf32>
    %41 = vector.broadcast %9 : vector<8x1xf32> to vector<8x256xf32>
    %42 = arith.mulf %40, %41 : vector<8x256xf32>
    %43 = vector.broadcast %10 : vector<8x1xf32> to vector<8x256xf32>
    %44 = arith.addf %42, %43 : vector<8x256xf32>
    %cst_34 = arith.constant 0.000000e+00 : f32
    %45 = vector.broadcast %cst_34 : f32 to vector<8x256xf32>
    %46 = arith.maximumf %44, %45 : vector<8x256xf32>
    %cst_35 = arith.constant dense<0.000000e+00> : vector<8x256xf32>
    %47 = tpu.matmul %11, %46, %cst_35 {dimension_numbers = #tpu.dot_dimension_numbers<[1], [0], [0], [1], [0, 0, 1, 1], [], []>} : vector<8x8xbf16>, vector<8x256xf32>, vector<8x256xf32> -> vector<8x256xf32>
    %48 = vector.broadcast %12 : vector<8x1xf32> to vector<8x256xf32>
    %49 = arith.addf %47, %48 : vector<8x256xf32>
    %50 = vector.extract_strided_slice %49 {offsets = [0, 0], sizes = [8, 128], strides = [1, 1]} : vector<8x256xf32> to vector<8x128xf32>
    %51 = arith.mulf %50, %50 : vector<8x128xf32>
    %52 = vector.extract_strided_slice %49 {offsets = [0, 128], sizes = [8, 128], strides = [1, 1]} : vector<8x256xf32> to vector<8x128xf32>
    %53 = arith.addf %50, %52 : vector<8x128xf32>
    %54 = arith.mulf %52, %52 : vector<8x128xf32>
    %55 = arith.addf %51, %54 : vector<8x128xf32>
    %c0_36 = arith.constant 0 : index
    %c0_37 = arith.constant 0 : index
    %c0_38 = arith.constant 0 : index
    %c0_39 = arith.constant 0 : index
    %56 = vector.load %arg17[%c0_36, %c0_37, %c0_38, %c0_39] : memref<1x1x8x128xf32, #tpu.memory_space<vmem>>, vector<1x1x8x128xf32>
    %57 = vector.shape_cast %56 : vector<1x1x8x128xf32> to vector<8x128xf32>
    %58 = arith.addf %57, %53 : vector<8x128xf32>
    %c0_40 = arith.constant 0 : index
    %c0_41 = arith.constant 0 : index
    %c0_42 = arith.constant 0 : index
    %c0_43 = arith.constant 0 : index
    %59 = vector.load %arg17[%c0_40, %c0_41, %c0_42, %c0_43] : memref<1x1x8x128xf32, #tpu.memory_space<vmem>>, vector<1x1x8x128xf32>
    %60 = vector.shape_cast %59 : vector<1x1x8x128xf32> to vector<8x128xf32>
    %61 = vector.shape_cast %58 : vector<8x128xf32> to vector<1x1x8x128xf32>
    tpu.vector_store %arg17[%c0_40, %c0_41, %c0_42, %c0_43], %61 {strides = array<i32>} : memref<1x1x8x128xf32, #tpu.memory_space<vmem>>, vector<1x1x8x128xf32>,
    %c0_44 = arith.constant 0 : index
    %c0_45 = arith.constant 0 : index
    %c0_46 = arith.constant 0 : index
    %c0_47 = arith.constant 0 : index
    %62 = vector.load %arg18[%c0_44, %c0_45, %c0_46, %c0_47] : memref<1x1x8x128xf32, #tpu.memory_space<vmem>>, vector<1x1x8x128xf32>
    %63 = vector.shape_cast %62 : vector<1x1x8x128xf32> to vector<8x128xf32>
    %64 = arith.addf %63, %55 : vector<8x128xf32>
    %c0_48 = arith.constant 0 : index
    %c0_49 = arith.constant 0 : index
    %c0_50 = arith.constant 0 : index
    %c0_51 = arith.constant 0 : index
    %65 = vector.load %arg18[%c0_48, %c0_49, %c0_50, %c0_51] : memref<1x1x8x128xf32, #tpu.memory_space<vmem>>, vector<1x1x8x128xf32>
    %66 = vector.shape_cast %65 : vector<1x1x8x128xf32> to vector<8x128xf32>
    %67 = vector.shape_cast %64 : vector<8x128xf32> to vector<1x1x8x128xf32>
    tpu.vector_store %arg18[%c0_48, %c0_49, %c0_50, %c0_51], %67 {strides = array<i32>} : memref<1x1x8x128xf32, #tpu.memory_space<vmem>>, vector<1x1x8x128xf32>,
    return
  }
  func.func @transform_0(%arg0: i32, %arg1: i32, %arg2: i32) -> (i32, i32, i32) {
    %c1_i32 = arith.constant 1 : i32
    %0 = arith.muli %arg1, %c1_i32 : i32
    %1 = arith.addi %0, %arg2 : i32
    %c0_i32 = arith.constant 0 : i32
    %c0_i32_0 = arith.constant 0 : i32
    return %arg0, %c0_i32, %1 : i32, i32, i32
  }
  func.func @transform_1(%arg0: i32, %arg1: i32, %arg2: i32) -> (i32, i32) {
    %c0_i32 = arith.constant 0 : i32
    %c0_i32_0 = arith.constant 0 : i32
    %c0_i32_1 = arith.constant 0 : i32
    return %c0_i32, %c0_i32_0 : i32, i32
  }
  func.func @transform_2(%arg0: i32, %arg1: i32, %arg2: i32) -> (i32, i32) {
    %c0_i32 = arith.constant 0 : i32
    %c0_i32_0 = arith.constant 0 : i32
    %c0_i32_1 = arith.constant 0 : i32
    return %c0_i32, %c0_i32_0 : i32, i32
  }
  func.func @transform_3(%arg0: i32, %arg1: i32, %arg2: i32) -> (i32, i32) {
    %c0_i32 = arith.constant 0 : i32
    %c0_i32_0 = arith.constant 0 : i32
    %c0_i32_1 = arith.constant 0 : i32
    return %c0_i32, %c0_i32_0 : i32, i32
  }
  func.func @transform_4(%arg0: i32, %arg1: i32, %arg2: i32) -> (i32, i32) {
    %c0_i32 = arith.constant 0 : i32
    %c0_i32_0 = arith.constant 0 : i32
    %c0_i32_1 = arith.constant 0 : i32
    return %c0_i32, %c0_i32_0 : i32, i32
  }
  func.func @transform_5(%arg0: i32, %arg1: i32, %arg2: i32) -> (i32, i32) {
    %c0_i32 = arith.constant 0 : i32
    %c0_i32_0 = arith.constant 0 : i32
    %c0_i32_1 = arith.constant 0 : i32
    return %c0_i32, %c0_i32_0 : i32, i32
  }
  func.func @transform_6(%arg0: i32, %arg1: i32, %arg2: i32) -> (i32, i32) {
    %c0_i32 = arith.constant 0 : i32
    %c0_i32_0 = arith.constant 0 : i32
    %c0_i32_1 = arith.constant 0 : i32
    return %c0_i32, %c0_i32_0 : i32, i32
  }
  func.func @transform_7(%arg0: i32, %arg1: i32, %arg2: i32) -> (i32, i32) {
    %c0_i32 = arith.constant 0 : i32
    %c0_i32_0 = arith.constant 0 : i32
    %c0_i32_1 = arith.constant 0 : i32
    return %c0_i32, %c0_i32_0 : i32, i32
  }
  func.func @transform_8(%arg0: i32, %arg1: i32, %arg2: i32) -> (i32, i32) {
    %c0_i32 = arith.constant 0 : i32
    %c0_i32_0 = arith.constant 0 : i32
    %c0_i32_1 = arith.constant 0 : i32
    return %c0_i32, %c0_i32_0 : i32, i32
  }
  func.func @transform_9(%arg0: i32, %arg1: i32, %arg2: i32) -> (i32, i32) {
    %c0_i32 = arith.constant 0 : i32
    %c0_i32_0 = arith.constant 0 : i32
    %c0_i32_1 = arith.constant 0 : i32
    return %c0_i32, %c0_i32_0 : i32, i32
  }
  func.func @transform_10(%arg0: i32, %arg1: i32, %arg2: i32) -> (i32, i32) {
    %c0_i32 = arith.constant 0 : i32
    %c0_i32_0 = arith.constant 0 : i32
    %c0_i32_1 = arith.constant 0 : i32
    return %c0_i32, %c0_i32_0 : i32, i32
  }
  func.func @transform_11(%arg0: i32, %arg1: i32, %arg2: i32) -> (i32, i32) {
    %c0_i32 = arith.constant 0 : i32
    %c0_i32_0 = arith.constant 0 : i32
    %c0_i32_1 = arith.constant 0 : i32
    return %c0_i32, %c0_i32_0 : i32, i32
  }
  func.func @transform_12(%arg0: i32, %arg1: i32, %arg2: i32) -> (i32, i32) {
    %c0_i32 = arith.constant 0 : i32
    %c0_i32_0 = arith.constant 0 : i32
    %c0_i32_1 = arith.constant 0 : i32
    return %c0_i32, %c0_i32_0 : i32, i32
  }
  func.func @transform_13(%arg0: i32, %arg1: i32, %arg2: i32) -> (i32, i32) {
    %c0_i32 = arith.constant 0 : i32
    %c0_i32_0 = arith.constant 0 : i32
    %c0_i32_1 = arith.constant 0 : i32
    return %c0_i32, %c0_i32_0 : i32, i32
  }
  func.func @transform_14(%arg0: i32, %arg1: i32, %arg2: i32) -> (i32, i32, i32, i32) {
    %c0_i32 = arith.constant 0 : i32
    %c0_i32_0 = arith.constant 0 : i32
    %c0_i32_1 = arith.constant 0 : i32
    return %arg0, %arg1, %c0_i32, %c0_i32_0 : i32, i32, i32, i32
  }
  func.func @transform_15(%arg0: i32, %arg1: i32, %arg2: i32) -> (i32, i32, i32, i32) {
    %c0_i32 = arith.constant 0 : i32
    %c0_i32_0 = arith.constant 0 : i32
    %c0_i32_1 = arith.constant 0 : i32
    return %arg0, %arg1, %c0_i32, %c0_i32_0 : i32, i32, i32, i32
  }
}

module attributes {stable_mosaic.version = 11 : i64} {
  func.func @kernel(%arg0: i32, %arg1: i32, %arg2: i32, %arg3: memref<1x4x256xbf16, #tpu.memory_space<vmem>>, %arg4: memref<64x4xbf16, #tpu.memory_space<vmem>>, %arg5: memref<32x1xf32, #tpu.memory_space<vmem>>, %arg6: memref<16x32xbf16, #tpu.memory_space<vmem>>, %arg7: memref<16x4xbf16, #tpu.memory_space<vmem>>, %arg8: memref<16x1xf32, #tpu.memory_space<vmem>>, %arg9: memref<16x1xf32, #tpu.memory_space<vmem>>, %arg10: memref<16x1xf32, #tpu.memory_space<vmem>>, %arg11: memref<8x16xbf16, #tpu.memory_space<vmem>>, %arg12: memref<8x1xf32, #tpu.memory_space<vmem>>, %arg13: memref<8x1xf32, #tpu.memory_space<vmem>>, %arg14: memref<8x1xf32, #tpu.memory_space<vmem>>, %arg15: memref<8x8xbf16, #tpu.memory_space<vmem>>, %arg16: memref<8x1xf32, #tpu.memory_space<vmem>>, %arg17: memref<8x1xf32, #tpu.memory_space<vmem>>, %arg18: memref<8x1xf32, #tpu.memory_space<vmem>>, %arg19: memref<8x8xbf16, #tpu.memory_space<vmem>>, %arg20: memref<8x1xf32, #tpu.memory_space<vmem>>, %arg21: memref<1x1x8x128xf32, #tpu.memory_space<vmem>>, %arg22: memref<1x1x8x128xf32, #tpu.memory_space<vmem>>) attributes {dimension_semantics = [#tpu.dimension_semantics<parallel>, #tpu.dimension_semantics<parallel>, #tpu.dimension_semantics<arbitrary>], iteration_bounds = array<i64: 2, 1, 1>, scalar_prefetch = 0 : i64, scratch_operands = 0 : i64, tpu.core_type = #tpu.core_type<tc>, window_params = [{transform_indices = @transform_0, window_bounds = array<i64: 1, 4, 256>}, {pipeline_mode = #tpu.pipeline_mode<synchronous>, transform_indices = @transform_1, window_bounds = array<i64: 64, 4>}, {pipeline_mode = #tpu.pipeline_mode<synchronous>, transform_indices = @transform_2, window_bounds = array<i64: 32, 1>}, {pipeline_mode = #tpu.pipeline_mode<synchronous>, transform_indices = @transform_3, window_bounds = array<i64: 16, 32>}, {pipeline_mode = #tpu.pipeline_mode<synchronous>, transform_indices = @transform_4, window_bounds = array<i64: 16, 4>}, {pipeline_mode = #tpu.pipeline_mode<synchronous>, transform_indices = @transform_5, window_bounds = array<i64: 16, 1>}, {pipeline_mode = #tpu.pipeline_mode<synchronous>, transform_indices = @transform_6, window_bounds = array<i64: 16, 1>}, {pipeline_mode = #tpu.pipeline_mode<synchronous>, transform_indices = @transform_7, window_bounds = array<i64: 16, 1>}, {pipeline_mode = #tpu.pipeline_mode<synchronous>, transform_indices = @transform_8, window_bounds = array<i64: 8, 16>}, {pipeline_mode = #tpu.pipeline_mode<synchronous>, transform_indices = @transform_9, window_bounds = array<i64: 8, 1>}, {pipeline_mode = #tpu.pipeline_mode<synchronous>, transform_indices = @transform_10, window_bounds = array<i64: 8, 1>}, {pipeline_mode = #tpu.pipeline_mode<synchronous>, transform_indices = @transform_11, window_bounds = array<i64: 8, 1>}, {pipeline_mode = #tpu.pipeline_mode<synchronous>, transform_indices = @transform_12, window_bounds = array<i64: 8, 8>}, {pipeline_mode = #tpu.pipeline_mode<synchronous>, transform_indices = @transform_13, window_bounds = array<i64: 8, 1>}, {pipeline_mode = #tpu.pipeline_mode<synchronous>, transform_indices = @transform_14, window_bounds = array<i64: 8, 1>}, {pipeline_mode = #tpu.pipeline_mode<synchronous>, transform_indices = @transform_15, window_bounds = array<i64: 8, 1>}, {pipeline_mode = #tpu.pipeline_mode<synchronous>, transform_indices = @transform_16, window_bounds = array<i64: 8, 8>}, {pipeline_mode = #tpu.pipeline_mode<synchronous>, transform_indices = @transform_17, window_bounds = array<i64: 8, 1>}, {transform_indices = @transform_18, window_bounds = array<i64: 1, 1, 8, 128>}, {transform_indices = @transform_19, window_bounds = array<i64: 1, 1, 8, 128>}]} {
    %c0 = arith.constant 0 : index
    %c0_0 = arith.constant 0 : index
    %0 = vector.load %arg4[%c0, %c0_0] : memref<64x4xbf16, #tpu.memory_space<vmem>>, vector<64x4xbf16>
    %c0_1 = arith.constant 0 : index
    %c0_2 = arith.constant 0 : index
    %1 = vector.load %arg5[%c0_1, %c0_2] : memref<32x1xf32, #tpu.memory_space<vmem>>, vector<32x1xf32>
    %c0_3 = arith.constant 0 : index
    %c0_4 = arith.constant 0 : index
    %2 = vector.load %arg6[%c0_3, %c0_4] : memref<16x32xbf16, #tpu.memory_space<vmem>>, vector<16x32xbf16>
    %c0_5 = arith.constant 0 : index
    %c0_6 = arith.constant 0 : index
    %3 = vector.load %arg7[%c0_5, %c0_6] : memref<16x4xbf16, #tpu.memory_space<vmem>>, vector<16x4xbf16>
    %c0_7 = arith.constant 0 : index
    %c0_8 = arith.constant 0 : index
    %4 = vector.load %arg8[%c0_7, %c0_8] : memref<16x1xf32, #tpu.memory_space<vmem>>, vector<16x1xf32>
    %c0_9 = arith.constant 0 : index
    %c0_10 = arith.constant 0 : index
    %5 = vector.load %arg9[%c0_9, %c0_10] : memref<16x1xf32, #tpu.memory_space<vmem>>, vector<16x1xf32>
    %c0_11 = arith.constant 0 : index
    %c0_12 = arith.constant 0 : index
    %6 = vector.load %arg10[%c0_11, %c0_12] : memref<16x1xf32, #tpu.memory_space<vmem>>, vector<16x1xf32>
    %c0_13 = arith.constant 0 : index
    %c0_14 = arith.constant 0 : index
    %7 = vector.load %arg11[%c0_13, %c0_14] : memref<8x16xbf16, #tpu.memory_space<vmem>>, vector<8x16xbf16>
    %c0_15 = arith.constant 0 : index
    %c0_16 = arith.constant 0 : index
    %8 = vector.load %arg12[%c0_15, %c0_16] : memref<8x1xf32, #tpu.memory_space<vmem>>, vector<8x1xf32>
    %c0_17 = arith.constant 0 : index
    %c0_18 = arith.constant 0 : index
    %9 = vector.load %arg13[%c0_17, %c0_18] : memref<8x1xf32, #tpu.memory_space<vmem>>, vector<8x1xf32>
    %c0_19 = arith.constant 0 : index
    %c0_20 = arith.constant 0 : index
    %10 = vector.load %arg14[%c0_19, %c0_20] : memref<8x1xf32, #tpu.memory_space<vmem>>, vector<8x1xf32>
    %c0_21 = arith.constant 0 : index
    %c0_22 = arith.constant 0 : index
    %11 = vector.load %arg15[%c0_21, %c0_22] : memref<8x8xbf16, #tpu.memory_space<vmem>>, vector<8x8xbf16>
    %c0_23 = arith.constant 0 : index
    %c0_24 = arith.constant 0 : index
    %12 = vector.load %arg16[%c0_23, %c0_24] : memref<8x1xf32, #tpu.memory_space<vmem>>, vector<8x1xf32>
    %c0_25 = arith.constant 0 : index
    %c0_26 = arith.constant 0 : index
    %13 = vector.load %arg17[%c0_25, %c0_26] : memref<8x1xf32, #tpu.memory_space<vmem>>, vector<8x1xf32>
    %c0_27 = arith.constant 0 : index
    %c0_28 = arith.constant 0 : index
    %14 = vector.load %arg18[%c0_27, %c0_28] : memref<8x1xf32, #tpu.memory_space<vmem>>, vector<8x1xf32>
    %c0_29 = arith.constant 0 : index
    %c0_30 = arith.constant 0 : index
    %15 = vector.load %arg19[%c0_29, %c0_30] : memref<8x8xbf16, #tpu.memory_space<vmem>>, vector<8x8xbf16>
    %c0_31 = arith.constant 0 : index
    %c0_32 = arith.constant 0 : index
    %16 = vector.load %arg20[%c0_31, %c0_32] : memref<8x1xf32, #tpu.memory_space<vmem>>, vector<8x1xf32>
    %c0_i32 = arith.constant 0 : i32
    %17 = arith.cmpi eq, %arg2, %c0_i32 : i32
    %18 = arith.extui %17 : i1 to i32
    %c0_i32_33 = arith.constant 0 : i32
    %19 = arith.cmpi ne, %18, %c0_i32_33 : i32
    scf.if %19 {
      %cst_62 = arith.constant 0.000000e+00 : f32
      %81 = vector.broadcast %cst_62 : f32 to vector<8x128xf32>
      %c0_63 = arith.constant 0 : index
      %c0_64 = arith.constant 0 : index
      %c0_65 = arith.constant 0 : index
      %c0_66 = arith.constant 0 : index
      %82 = vector.load %arg21[%c0_63, %c0_64, %c0_65, %c0_66] : memref<1x1x8x128xf32, #tpu.memory_space<vmem>>, vector<1x1x8x128xf32>
      %83 = vector.shape_cast %82 : vector<1x1x8x128xf32> to vector<8x128xf32>
      %84 = vector.shape_cast %81 : vector<8x128xf32> to vector<1x1x8x128xf32>
      tpu.vector_store %arg21[%c0_63, %c0_64, %c0_65, %c0_66], %84 {strides = array<i32>} : memref<1x1x8x128xf32, #tpu.memory_space<vmem>>, vector<1x1x8x128xf32>,
      %cst_67 = arith.constant 0.000000e+00 : f32
      %85 = vector.broadcast %cst_67 : f32 to vector<8x128xf32>
      %c0_68 = arith.constant 0 : index
      %c0_69 = arith.constant 0 : index
      %c0_70 = arith.constant 0 : index
      %c0_71 = arith.constant 0 : index
      %86 = vector.load %arg22[%c0_68, %c0_69, %c0_70, %c0_71] : memref<1x1x8x128xf32, #tpu.memory_space<vmem>>, vector<1x1x8x128xf32>
      %87 = vector.shape_cast %86 : vector<1x1x8x128xf32> to vector<8x128xf32>
      %88 = vector.shape_cast %85 : vector<8x128xf32> to vector<1x1x8x128xf32>
      tpu.vector_store %arg22[%c0_68, %c0_69, %c0_70, %c0_71], %88 {strides = array<i32>} : memref<1x1x8x128xf32, #tpu.memory_space<vmem>>, vector<1x1x8x128xf32>,
    } else {
    }
    %c0_34 = arith.constant 0 : index
    %c0_35 = arith.constant 0 : index
    %c0_36 = arith.constant 0 : index
    %20 = vector.load %arg3[%c0_34, %c0_35, %c0_36] : memref<1x4x256xbf16, #tpu.memory_space<vmem>>, vector<1x4x256xbf16>
    %21 = vector.shape_cast %20 : vector<1x4x256xbf16> to vector<4x256xbf16>
    %cst = arith.constant dense<0.000000e+00> : vector<64x256xf32>
    %22 = tpu.matmul %0, %21, %cst {dimension_numbers = #tpu.dot_dimension_numbers<[1], [0], [0], [1], [0, 0, 1, 1], [], []>} : vector<64x4xbf16>, vector<4x256xbf16>, vector<64x256xf32> -> vector<64x256xf32>
    %23 = vector.extract_strided_slice %22 {offsets = [0, 0], sizes = [32, 256], strides = [1, 1]} : vector<64x256xf32> to vector<32x256xf32>
    %24 = vector.extract_strided_slice %22 {offsets = [32, 0], sizes = [32, 256], strides = [1, 1]} : vector<64x256xf32> to vector<32x256xf32>
    %25 = vector.broadcast %1 : vector<32x1xf32> to vector<32x256xf32>
    %26 = arith.addf %24, %25 : vector<32x256xf32>
    %cst_37 = arith.constant 1.000000e-07 : f32
    %27 = vector.broadcast %cst_37 : f32 to vector<32x256xf32>
    %28 = arith.addf %26, %27 : vector<32x256xf32>
    %29 = tpu.reciprocal %28 {approx = true} : vector<32x256xf32> -> vector<32x256xf32>
    %30 = arith.mulf %23, %29 : vector<32x256xf32>
    %cst_38 = arith.constant dense<0.000000e+00> : vector<16x256xf32>
    %31 = tpu.matmul %2, %30, %cst_38 {dimension_numbers = #tpu.dot_dimension_numbers<[1], [0], [0], [1], [0, 0, 1, 1], [], []>} : vector<16x32xbf16>, vector<32x256xf32>, vector<16x256xf32> -> vector<16x256xf32>
    %cst_39 = arith.constant dense<0.000000e+00> : vector<16x256xf32>
    %32 = tpu.matmul %3, %21, %cst_39 {dimension_numbers = #tpu.dot_dimension_numbers<[1], [0], [0], [1], [0, 0, 1, 1], [], []>} : vector<16x4xbf16>, vector<4x256xbf16>, vector<16x256xf32> -> vector<16x256xf32>
    %33 = arith.addf %31, %32 : vector<16x256xf32>
    %34 = vector.broadcast %4 : vector<16x1xf32> to vector<16x256xf32>
    %35 = arith.addf %33, %34 : vector<16x256xf32>
    %36 = vector.broadcast %5 : vector<16x1xf32> to vector<16x256xf32>
    %37 = arith.mulf %35, %36 : vector<16x256xf32>
    %38 = vector.broadcast %6 : vector<16x1xf32> to vector<16x256xf32>
    %39 = arith.addf %37, %38 : vector<16x256xf32>
    %cst_40 = arith.constant 0.000000e+00 : f32
    %40 = vector.broadcast %cst_40 : f32 to vector<16x256xf32>
    %41 = arith.maximumf %39, %40 : vector<16x256xf32>
    %cst_41 = arith.constant dense<0.000000e+00> : vector<8x256xf32>
    %42 = tpu.matmul %7, %41, %cst_41 {dimension_numbers = #tpu.dot_dimension_numbers<[1], [0], [0], [1], [0, 0, 1, 1], [], []>} : vector<8x16xbf16>, vector<16x256xf32>, vector<8x256xf32> -> vector<8x256xf32>
    %43 = vector.broadcast %8 : vector<8x1xf32> to vector<8x256xf32>
    %44 = arith.addf %42, %43 : vector<8x256xf32>
    %45 = vector.broadcast %9 : vector<8x1xf32> to vector<8x256xf32>
    %46 = arith.mulf %44, %45 : vector<8x256xf32>
    %47 = vector.broadcast %10 : vector<8x1xf32> to vector<8x256xf32>
    %48 = arith.addf %46, %47 : vector<8x256xf32>
    %cst_42 = arith.constant 0.000000e+00 : f32
    %49 = vector.broadcast %cst_42 : f32 to vector<8x256xf32>
    %50 = arith.maximumf %48, %49 : vector<8x256xf32>
    %cst_43 = arith.constant dense<0.000000e+00> : vector<8x256xf32>
    %51 = tpu.matmul %11, %50, %cst_43 {dimension_numbers = #tpu.dot_dimension_numbers<[1], [0], [0], [1], [0, 0, 1, 1], [], []>} : vector<8x8xbf16>, vector<8x256xf32>, vector<8x256xf32> -> vector<8x256xf32>
    %52 = vector.broadcast %12 : vector<8x1xf32> to vector<8x256xf32>
    %53 = arith.addf %51, %52 : vector<8x256xf32>
    %54 = vector.broadcast %13 : vector<8x1xf32> to vector<8x256xf32>
    %55 = arith.mulf %53, %54 : vector<8x256xf32>
    %56 = vector.broadcast %14 : vector<8x1xf32> to vector<8x256xf32>
    %57 = arith.addf %55, %56 : vector<8x256xf32>
    %cst_44 = arith.constant 0.000000e+00 : f32
    %58 = vector.broadcast %cst_44 : f32 to vector<8x256xf32>
    %59 = arith.maximumf %57, %58 : vector<8x256xf32>
    %cst_45 = arith.constant dense<0.000000e+00> : vector<8x256xf32>
    %60 = tpu.matmul %15, %59, %cst_45 {dimension_numbers = #tpu.dot_dimension_numbers<[1], [0], [0], [1], [0, 0, 1, 1], [], []>} : vector<8x8xbf16>, vector<8x256xf32>, vector<8x256xf32> -> vector<8x256xf32>
    %61 = vector.broadcast %16 : vector<8x1xf32> to vector<8x256xf32>
    %62 = arith.addf %60, %61 : vector<8x256xf32>
    %63 = vector.extract_strided_slice %62 {offsets = [0, 0], sizes = [8, 128], strides = [1, 1]} : vector<8x256xf32> to vector<8x128xf32>
    %64 = arith.mulf %63, %63 : vector<8x128xf32>
    %65 = vector.extract_strided_slice %62 {offsets = [0, 128], sizes = [8, 128], strides = [1, 1]} : vector<8x256xf32> to vector<8x128xf32>
    %66 = arith.addf %63, %65 : vector<8x128xf32>
    %67 = arith.mulf %65, %65 : vector<8x128xf32>
    %68 = arith.addf %64, %67 : vector<8x128xf32>
    %c0_46 = arith.constant 0 : index
    %c0_47 = arith.constant 0 : index
    %c0_48 = arith.constant 0 : index
    %c0_49 = arith.constant 0 : index
    %69 = vector.load %arg21[%c0_46, %c0_47, %c0_48, %c0_49] : memref<1x1x8x128xf32, #tpu.memory_space<vmem>>, vector<1x1x8x128xf32>
    %70 = vector.shape_cast %69 : vector<1x1x8x128xf32> to vector<8x128xf32>
    %71 = arith.addf %70, %66 : vector<8x128xf32>
    %c0_50 = arith.constant 0 : index
    %c0_51 = arith.constant 0 : index
    %c0_52 = arith.constant 0 : index
    %c0_53 = arith.constant 0 : index
    %72 = vector.load %arg21[%c0_50, %c0_51, %c0_52, %c0_53] : memref<1x1x8x128xf32, #tpu.memory_space<vmem>>, vector<1x1x8x128xf32>
    %73 = vector.shape_cast %72 : vector<1x1x8x128xf32> to vector<8x128xf32>
    %74 = vector.shape_cast %71 : vector<8x128xf32> to vector<1x1x8x128xf32>
    tpu.vector_store %arg21[%c0_50, %c0_51, %c0_52, %c0_53], %74 {strides = array<i32>} : memref<1x1x8x128xf32, #tpu.memory_space<vmem>>, vector<1x1x8x128xf32>,
    %c0_54 = arith.constant 0 : index
    %c0_55 = arith.constant 0 : index
    %c0_56 = arith.constant 0 : index
    %c0_57 = arith.constant 0 : index
    %75 = vector.load %arg22[%c0_54, %c0_55, %c0_56, %c0_57] : memref<1x1x8x128xf32, #tpu.memory_space<vmem>>, vector<1x1x8x128xf32>
    %76 = vector.shape_cast %75 : vector<1x1x8x128xf32> to vector<8x128xf32>
    %77 = arith.addf %76, %68 : vector<8x128xf32>
    %c0_58 = arith.constant 0 : index
    %c0_59 = arith.constant 0 : index
    %c0_60 = arith.constant 0 : index
    %c0_61 = arith.constant 0 : index
    %78 = vector.load %arg22[%c0_58, %c0_59, %c0_60, %c0_61] : memref<1x1x8x128xf32, #tpu.memory_space<vmem>>, vector<1x1x8x128xf32>
    %79 = vector.shape_cast %78 : vector<1x1x8x128xf32> to vector<8x128xf32>
    %80 = vector.shape_cast %77 : vector<8x128xf32> to vector<1x1x8x128xf32>
    tpu.vector_store %arg22[%c0_58, %c0_59, %c0_60, %c0_61], %80 {strides = array<i32>} : memref<1x1x8x128xf32, #tpu.memory_space<vmem>>, vector<1x1x8x128xf32>,
    return
  }
  func.func @transform_0(%arg0: i32, %arg1: i32, %arg2: i32) -> (i32, i32, i32) {
    %c1_i32 = arith.constant 1 : i32
    %0 = arith.muli %arg1, %c1_i32 : i32
    %1 = arith.addi %0, %arg2 : i32
    %c0_i32 = arith.constant 0 : i32
    %c0_i32_0 = arith.constant 0 : i32
    return %arg0, %c0_i32, %1 : i32, i32, i32
  }
  func.func @transform_1(%arg0: i32, %arg1: i32, %arg2: i32) -> (i32, i32) {
    %c0_i32 = arith.constant 0 : i32
    %c0_i32_0 = arith.constant 0 : i32
    %c0_i32_1 = arith.constant 0 : i32
    return %c0_i32, %c0_i32_0 : i32, i32
  }
  func.func @transform_2(%arg0: i32, %arg1: i32, %arg2: i32) -> (i32, i32) {
    %c0_i32 = arith.constant 0 : i32
    %c0_i32_0 = arith.constant 0 : i32
    %c0_i32_1 = arith.constant 0 : i32
    return %c0_i32, %c0_i32_0 : i32, i32
  }
  func.func @transform_3(%arg0: i32, %arg1: i32, %arg2: i32) -> (i32, i32) {
    %c0_i32 = arith.constant 0 : i32
    %c0_i32_0 = arith.constant 0 : i32
    %c0_i32_1 = arith.constant 0 : i32
    return %c0_i32, %c0_i32_0 : i32, i32
  }
  func.func @transform_4(%arg0: i32, %arg1: i32, %arg2: i32) -> (i32, i32) {
    %c0_i32 = arith.constant 0 : i32
    %c0_i32_0 = arith.constant 0 : i32
    %c0_i32_1 = arith.constant 0 : i32
    return %c0_i32, %c0_i32_0 : i32, i32
  }
  func.func @transform_5(%arg0: i32, %arg1: i32, %arg2: i32) -> (i32, i32) {
    %c0_i32 = arith.constant 0 : i32
    %c0_i32_0 = arith.constant 0 : i32
    %c0_i32_1 = arith.constant 0 : i32
    return %c0_i32, %c0_i32_0 : i32, i32
  }
  func.func @transform_6(%arg0: i32, %arg1: i32, %arg2: i32) -> (i32, i32) {
    %c0_i32 = arith.constant 0 : i32
    %c0_i32_0 = arith.constant 0 : i32
    %c0_i32_1 = arith.constant 0 : i32
    return %c0_i32, %c0_i32_0 : i32, i32
  }
  func.func @transform_7(%arg0: i32, %arg1: i32, %arg2: i32) -> (i32, i32) {
    %c0_i32 = arith.constant 0 : i32
    %c0_i32_0 = arith.constant 0 : i32
    %c0_i32_1 = arith.constant 0 : i32
    return %c0_i32, %c0_i32_0 : i32, i32
  }
  func.func @transform_8(%arg0: i32, %arg1: i32, %arg2: i32) -> (i32, i32) {
    %c0_i32 = arith.constant 0 : i32
    %c0_i32_0 = arith.constant 0 : i32
    %c0_i32_1 = arith.constant 0 : i32
    return %c0_i32, %c0_i32_0 : i32, i32
  }
  func.func @transform_9(%arg0: i32, %arg1: i32, %arg2: i32) -> (i32, i32) {
    %c0_i32 = arith.constant 0 : i32
    %c0_i32_0 = arith.constant 0 : i32
    %c0_i32_1 = arith.constant 0 : i32
    return %c0_i32, %c0_i32_0 : i32, i32
  }
  func.func @transform_10(%arg0: i32, %arg1: i32, %arg2: i32) -> (i32, i32) {
    %c0_i32 = arith.constant 0 : i32
    %c0_i32_0 = arith.constant 0 : i32
    %c0_i32_1 = arith.constant 0 : i32
    return %c0_i32, %c0_i32_0 : i32, i32
  }
  func.func @transform_11(%arg0: i32, %arg1: i32, %arg2: i32) -> (i32, i32) {
    %c0_i32 = arith.constant 0 : i32
    %c0_i32_0 = arith.constant 0 : i32
    %c0_i32_1 = arith.constant 0 : i32
    return %c0_i32, %c0_i32_0 : i32, i32
  }
  func.func @transform_12(%arg0: i32, %arg1: i32, %arg2: i32) -> (i32, i32) {
    %c0_i32 = arith.constant 0 : i32
    %c0_i32_0 = arith.constant 0 : i32
    %c0_i32_1 = arith.constant 0 : i32
    return %c0_i32, %c0_i32_0 : i32, i32
  }
  func.func @transform_13(%arg0: i32, %arg1: i32, %arg2: i32) -> (i32, i32) {
    %c0_i32 = arith.constant 0 : i32
    %c0_i32_0 = arith.constant 0 : i32
    %c0_i32_1 = arith.constant 0 : i32
    return %c0_i32, %c0_i32_0 : i32, i32
  }
  func.func @transform_14(%arg0: i32, %arg1: i32, %arg2: i32) -> (i32, i32) {
    %c0_i32 = arith.constant 0 : i32
    %c0_i32_0 = arith.constant 0 : i32
    %c0_i32_1 = arith.constant 0 : i32
    return %c0_i32, %c0_i32_0 : i32, i32
  }
  func.func @transform_15(%arg0: i32, %arg1: i32, %arg2: i32) -> (i32, i32) {
    %c0_i32 = arith.constant 0 : i32
    %c0_i32_0 = arith.constant 0 : i32
    %c0_i32_1 = arith.constant 0 : i32
    return %c0_i32, %c0_i32_0 : i32, i32
  }
  func.func @transform_16(%arg0: i32, %arg1: i32, %arg2: i32) -> (i32, i32) {
    %c0_i32 = arith.constant 0 : i32
    %c0_i32_0 = arith.constant 0 : i32
    %c0_i32_1 = arith.constant 0 : i32
    return %c0_i32, %c0_i32_0 : i32, i32
  }
  func.func @transform_17(%arg0: i32, %arg1: i32, %arg2: i32) -> (i32, i32) {
    %c0_i32 = arith.constant 0 : i32
    %c0_i32_0 = arith.constant 0 : i32
    %c0_i32_1 = arith.constant 0 : i32
    return %c0_i32, %c0_i32_0 : i32, i32
  }
  func.func @transform_18(%arg0: i32, %arg1: i32, %arg2: i32) -> (i32, i32, i32, i32) {
    %c0_i32 = arith.constant 0 : i32
    %c0_i32_0 = arith.constant 0 : i32
    %c0_i32_1 = arith.constant 0 : i32
    return %arg0, %arg1, %c0_i32, %c0_i32_0 : i32, i32, i32, i32
  }
  func.func @transform_19(%arg0: i32, %arg1: i32, %arg2: i32) -> (i32, i32, i32, i32) {
    %c0_i32 = arith.constant 0 : i32
    %c0_i32_0 = arith.constant 0 : i32
    %c0_i32_1 = arith.constant 0 : i32
    return %arg0, %arg1, %c0_i32, %c0_i32_0 : i32, i32, i32, i32
  }
}

module attributes {stable_mosaic.version = 11 : i64} {
  func.func @kernel(%arg0: i32, %arg1: i32, %arg2: i32, %arg3: memref<1x4x256xbf16, #tpu.memory_space<vmem>>, %arg4: memref<64x4xbf16, #tpu.memory_space<vmem>>, %arg5: memref<32x1xf32, #tpu.memory_space<vmem>>, %arg6: memref<16x32xbf16, #tpu.memory_space<vmem>>, %arg7: memref<16x4xbf16, #tpu.memory_space<vmem>>, %arg8: memref<16x1xf32, #tpu.memory_space<vmem>>, %arg9: memref<16x1xf32, #tpu.memory_space<vmem>>, %arg10: memref<16x1xf32, #tpu.memory_space<vmem>>, %arg11: memref<8x16xbf16, #tpu.memory_space<vmem>>, %arg12: memref<8x1xf32, #tpu.memory_space<vmem>>, %arg13: memref<8x1xf32, #tpu.memory_space<vmem>>, %arg14: memref<8x1xf32, #tpu.memory_space<vmem>>, %arg15: memref<8x8xbf16, #tpu.memory_space<vmem>>, %arg16: memref<8x1xf32, #tpu.memory_space<vmem>>, %arg17: memref<8x1xf32, #tpu.memory_space<vmem>>, %arg18: memref<8x1xf32, #tpu.memory_space<vmem>>, %arg19: memref<8x8xbf16, #tpu.memory_space<vmem>>, %arg20: memref<8x1xf32, #tpu.memory_space<vmem>>, %arg21: memref<8x1xf32, #tpu.memory_space<vmem>>, %arg22: memref<8x1xf32, #tpu.memory_space<vmem>>, %arg23: memref<8x8xbf16, #tpu.memory_space<vmem>>, %arg24: memref<8x1xf32, #tpu.memory_space<vmem>>, %arg25: memref<1x2x256xf32, #tpu.memory_space<vmem>>) attributes {dimension_semantics = [#tpu.dimension_semantics<parallel>, #tpu.dimension_semantics<parallel>, #tpu.dimension_semantics<parallel>], iteration_bounds = array<i64: 2, 1, 1>, scalar_prefetch = 0 : i64, scratch_operands = 0 : i64, tpu.core_type = #tpu.core_type<tc>, window_params = [{transform_indices = @transform_0, window_bounds = array<i64: 1, 4, 256>}, {pipeline_mode = #tpu.pipeline_mode<synchronous>, transform_indices = @transform_1, window_bounds = array<i64: 64, 4>}, {pipeline_mode = #tpu.pipeline_mode<synchronous>, transform_indices = @transform_2, window_bounds = array<i64: 32, 1>}, {pipeline_mode = #tpu.pipeline_mode<synchronous>, transform_indices = @transform_3, window_bounds = array<i64: 16, 32>}, {pipeline_mode = #tpu.pipeline_mode<synchronous>, transform_indices = @transform_4, window_bounds = array<i64: 16, 4>}, {pipeline_mode = #tpu.pipeline_mode<synchronous>, transform_indices = @transform_5, window_bounds = array<i64: 16, 1>}, {pipeline_mode = #tpu.pipeline_mode<synchronous>, transform_indices = @transform_6, window_bounds = array<i64: 16, 1>}, {pipeline_mode = #tpu.pipeline_mode<synchronous>, transform_indices = @transform_7, window_bounds = array<i64: 16, 1>}, {pipeline_mode = #tpu.pipeline_mode<synchronous>, transform_indices = @transform_8, window_bounds = array<i64: 8, 16>}, {pipeline_mode = #tpu.pipeline_mode<synchronous>, transform_indices = @transform_9, window_bounds = array<i64: 8, 1>}, {pipeline_mode = #tpu.pipeline_mode<synchronous>, transform_indices = @transform_10, window_bounds = array<i64: 8, 1>}, {pipeline_mode = #tpu.pipeline_mode<synchronous>, transform_indices = @transform_11, window_bounds = array<i64: 8, 1>}, {pipeline_mode = #tpu.pipeline_mode<synchronous>, transform_indices = @transform_12, window_bounds = array<i64: 8, 8>}, {pipeline_mode = #tpu.pipeline_mode<synchronous>, transform_indices = @transform_13, window_bounds = array<i64: 8, 1>}, {pipeline_mode = #tpu.pipeline_mode<synchronous>, transform_indices = @transform_14, window_bounds = array<i64: 8, 1>}, {pipeline_mode = #tpu.pipeline_mode<synchronous>, transform_indices = @transform_15, window_bounds = array<i64: 8, 1>}, {pipeline_mode = #tpu.pipeline_mode<synchronous>, transform_indices = @transform_16, window_bounds = array<i64: 8, 8>}, {pipeline_mode = #tpu.pipeline_mode<synchronous>, transform_indices = @transform_17, window_bounds = array<i64: 8, 1>}, {pipeline_mode = #tpu.pipeline_mode<synchronous>, transform_indices = @transform_18, window_bounds = array<i64: 8, 1>}, {pipeline_mode = #tpu.pipeline_mode<synchronous>, transform_indices = @transform_19, window_bounds = array<i64: 8, 1>}, {pipeline_mode = #tpu.pipeline_mode<synchronous>, transform_indices = @transform_20, window_bounds = array<i64: 8, 8>}, {pipeline_mode = #tpu.pipeline_mode<synchronous>, transform_indices = @transform_21, window_bounds = array<i64: 8, 1>}, {transform_indices = @transform_22, window_bounds = array<i64: 1, 2, 256>}]} {
    %c0 = arith.constant 0 : index
    %c0_0 = arith.constant 0 : index
    %0 = vector.load %arg4[%c0, %c0_0] : memref<64x4xbf16, #tpu.memory_space<vmem>>, vector<64x4xbf16>
    %c0_1 = arith.constant 0 : index
    %c0_2 = arith.constant 0 : index
    %1 = vector.load %arg5[%c0_1, %c0_2] : memref<32x1xf32, #tpu.memory_space<vmem>>, vector<32x1xf32>
    %c0_3 = arith.constant 0 : index
    %c0_4 = arith.constant 0 : index
    %2 = vector.load %arg6[%c0_3, %c0_4] : memref<16x32xbf16, #tpu.memory_space<vmem>>, vector<16x32xbf16>
    %c0_5 = arith.constant 0 : index
    %c0_6 = arith.constant 0 : index
    %3 = vector.load %arg7[%c0_5, %c0_6] : memref<16x4xbf16, #tpu.memory_space<vmem>>, vector<16x4xbf16>
    %c0_7 = arith.constant 0 : index
    %c0_8 = arith.constant 0 : index
    %4 = vector.load %arg8[%c0_7, %c0_8] : memref<16x1xf32, #tpu.memory_space<vmem>>, vector<16x1xf32>
    %c0_9 = arith.constant 0 : index
    %c0_10 = arith.constant 0 : index
    %5 = vector.load %arg9[%c0_9, %c0_10] : memref<16x1xf32, #tpu.memory_space<vmem>>, vector<16x1xf32>
    %c0_11 = arith.constant 0 : index
    %c0_12 = arith.constant 0 : index
    %6 = vector.load %arg10[%c0_11, %c0_12] : memref<16x1xf32, #tpu.memory_space<vmem>>, vector<16x1xf32>
    %c0_13 = arith.constant 0 : index
    %c0_14 = arith.constant 0 : index
    %7 = vector.load %arg11[%c0_13, %c0_14] : memref<8x16xbf16, #tpu.memory_space<vmem>>, vector<8x16xbf16>
    %c0_15 = arith.constant 0 : index
    %c0_16 = arith.constant 0 : index
    %8 = vector.load %arg12[%c0_15, %c0_16] : memref<8x1xf32, #tpu.memory_space<vmem>>, vector<8x1xf32>
    %c0_17 = arith.constant 0 : index
    %c0_18 = arith.constant 0 : index
    %9 = vector.load %arg13[%c0_17, %c0_18] : memref<8x1xf32, #tpu.memory_space<vmem>>, vector<8x1xf32>
    %c0_19 = arith.constant 0 : index
    %c0_20 = arith.constant 0 : index
    %10 = vector.load %arg14[%c0_19, %c0_20] : memref<8x1xf32, #tpu.memory_space<vmem>>, vector<8x1xf32>
    %c0_21 = arith.constant 0 : index
    %c0_22 = arith.constant 0 : index
    %11 = vector.load %arg15[%c0_21, %c0_22] : memref<8x8xbf16, #tpu.memory_space<vmem>>, vector<8x8xbf16>
    %c0_23 = arith.constant 0 : index
    %c0_24 = arith.constant 0 : index
    %12 = vector.load %arg16[%c0_23, %c0_24] : memref<8x1xf32, #tpu.memory_space<vmem>>, vector<8x1xf32>
    %c0_25 = arith.constant 0 : index
    %c0_26 = arith.constant 0 : index
    %13 = vector.load %arg17[%c0_25, %c0_26] : memref<8x1xf32, #tpu.memory_space<vmem>>, vector<8x1xf32>
    %c0_27 = arith.constant 0 : index
    %c0_28 = arith.constant 0 : index
    %14 = vector.load %arg18[%c0_27, %c0_28] : memref<8x1xf32, #tpu.memory_space<vmem>>, vector<8x1xf32>
    %c0_29 = arith.constant 0 : index
    %c0_30 = arith.constant 0 : index
    %15 = vector.load %arg19[%c0_29, %c0_30] : memref<8x8xbf16, #tpu.memory_space<vmem>>, vector<8x8xbf16>
    %c0_31 = arith.constant 0 : index
    %c0_32 = arith.constant 0 : index
    %16 = vector.load %arg20[%c0_31, %c0_32] : memref<8x1xf32, #tpu.memory_space<vmem>>, vector<8x1xf32>
    %c0_33 = arith.constant 0 : index
    %c0_34 = arith.constant 0 : index
    %17 = vector.load %arg21[%c0_33, %c0_34] : memref<8x1xf32, #tpu.memory_space<vmem>>, vector<8x1xf32>
    %c0_35 = arith.constant 0 : index
    %c0_36 = arith.constant 0 : index
    %18 = vector.load %arg22[%c0_35, %c0_36] : memref<8x1xf32, #tpu.memory_space<vmem>>, vector<8x1xf32>
    %c0_37 = arith.constant 0 : index
    %c0_38 = arith.constant 0 : index
    %19 = vector.load %arg23[%c0_37, %c0_38] : memref<8x8xbf16, #tpu.memory_space<vmem>>, vector<8x8xbf16>
    %c0_39 = arith.constant 0 : index
    %c0_40 = arith.constant 0 : index
    %20 = vector.load %arg24[%c0_39, %c0_40] : memref<8x1xf32, #tpu.memory_space<vmem>>, vector<8x1xf32>
    %c0_41 = arith.constant 0 : index
    %c0_42 = arith.constant 0 : index
    %c0_43 = arith.constant 0 : index
    %21 = vector.load %arg3[%c0_41, %c0_42, %c0_43] : memref<1x4x256xbf16, #tpu.memory_space<vmem>>, vector<1x4x256xbf16>
    %22 = vector.shape_cast %21 : vector<1x4x256xbf16> to vector<4x256xbf16>
    %cst = arith.constant dense<0.000000e+00> : vector<64x256xf32>
    %23 = tpu.matmul %0, %22, %cst {dimension_numbers = #tpu.dot_dimension_numbers<[1], [0], [0], [1], [0, 0, 1, 1], [], []>} : vector<64x4xbf16>, vector<4x256xbf16>, vector<64x256xf32> -> vector<64x256xf32>
    %24 = vector.extract_strided_slice %23 {offsets = [0, 0], sizes = [32, 256], strides = [1, 1]} : vector<64x256xf32> to vector<32x256xf32>
    %25 = vector.extract_strided_slice %23 {offsets = [32, 0], sizes = [32, 256], strides = [1, 1]} : vector<64x256xf32> to vector<32x256xf32>
    %26 = vector.broadcast %1 : vector<32x1xf32> to vector<32x256xf32>
    %27 = arith.addf %25, %26 : vector<32x256xf32>
    %cst_44 = arith.constant 1.000000e-07 : f32
    %28 = vector.broadcast %cst_44 : f32 to vector<32x256xf32>
    %29 = arith.addf %27, %28 : vector<32x256xf32>
    %30 = tpu.reciprocal %29 {approx = true} : vector<32x256xf32> -> vector<32x256xf32>
    %31 = arith.mulf %24, %30 : vector<32x256xf32>
    %cst_45 = arith.constant dense<0.000000e+00> : vector<16x256xf32>
    %32 = tpu.matmul %2, %31, %cst_45 {dimension_numbers = #tpu.dot_dimension_numbers<[1], [0], [0], [1], [0, 0, 1, 1], [], []>} : vector<16x32xbf16>, vector<32x256xf32>, vector<16x256xf32> -> vector<16x256xf32>
    %cst_46 = arith.constant dense<0.000000e+00> : vector<16x256xf32>
    %33 = tpu.matmul %3, %22, %cst_46 {dimension_numbers = #tpu.dot_dimension_numbers<[1], [0], [0], [1], [0, 0, 1, 1], [], []>} : vector<16x4xbf16>, vector<4x256xbf16>, vector<16x256xf32> -> vector<16x256xf32>
    %34 = arith.addf %32, %33 : vector<16x256xf32>
    %35 = vector.broadcast %4 : vector<16x1xf32> to vector<16x256xf32>
    %36 = arith.addf %34, %35 : vector<16x256xf32>
    %37 = vector.broadcast %5 : vector<16x1xf32> to vector<16x256xf32>
    %38 = arith.mulf %36, %37 : vector<16x256xf32>
    %39 = vector.broadcast %6 : vector<16x1xf32> to vector<16x256xf32>
    %40 = arith.addf %38, %39 : vector<16x256xf32>
    %cst_47 = arith.constant 0.000000e+00 : f32
    %41 = vector.broadcast %cst_47 : f32 to vector<16x256xf32>
    %42 = arith.maximumf %40, %41 : vector<16x256xf32>
    %cst_48 = arith.constant dense<0.000000e+00> : vector<8x256xf32>
    %43 = tpu.matmul %7, %42, %cst_48 {dimension_numbers = #tpu.dot_dimension_numbers<[1], [0], [0], [1], [0, 0, 1, 1], [], []>} : vector<8x16xbf16>, vector<16x256xf32>, vector<8x256xf32> -> vector<8x256xf32>
    %44 = vector.broadcast %8 : vector<8x1xf32> to vector<8x256xf32>
    %45 = arith.addf %43, %44 : vector<8x256xf32>
    %46 = vector.broadcast %9 : vector<8x1xf32> to vector<8x256xf32>
    %47 = arith.mulf %45, %46 : vector<8x256xf32>
    %48 = vector.broadcast %10 : vector<8x1xf32> to vector<8x256xf32>
    %49 = arith.addf %47, %48 : vector<8x256xf32>
    %cst_49 = arith.constant 0.000000e+00 : f32
    %50 = vector.broadcast %cst_49 : f32 to vector<8x256xf32>
    %51 = arith.maximumf %49, %50 : vector<8x256xf32>
    %cst_50 = arith.constant dense<0.000000e+00> : vector<8x256xf32>
    %52 = tpu.matmul %11, %51, %cst_50 {dimension_numbers = #tpu.dot_dimension_numbers<[1], [0], [0], [1], [0, 0, 1, 1], [], []>} : vector<8x8xbf16>, vector<8x256xf32>, vector<8x256xf32> -> vector<8x256xf32>
    %53 = vector.broadcast %12 : vector<8x1xf32> to vector<8x256xf32>
    %54 = arith.addf %52, %53 : vector<8x256xf32>
    %55 = vector.broadcast %13 : vector<8x1xf32> to vector<8x256xf32>
    %56 = arith.mulf %54, %55 : vector<8x256xf32>
    %57 = vector.broadcast %14 : vector<8x1xf32> to vector<8x256xf32>
    %58 = arith.addf %56, %57 : vector<8x256xf32>
    %cst_51 = arith.constant 0.000000e+00 : f32
    %59 = vector.broadcast %cst_51 : f32 to vector<8x256xf32>
    %60 = arith.maximumf %58, %59 : vector<8x256xf32>
    %cst_52 = arith.constant dense<0.000000e+00> : vector<8x256xf32>
    %61 = tpu.matmul %15, %60, %cst_52 {dimension_numbers = #tpu.dot_dimension_numbers<[1], [0], [0], [1], [0, 0, 1, 1], [], []>} : vector<8x8xbf16>, vector<8x256xf32>, vector<8x256xf32> -> vector<8x256xf32>
    %62 = vector.broadcast %16 : vector<8x1xf32> to vector<8x256xf32>
    %63 = arith.addf %61, %62 : vector<8x256xf32>
    %64 = vector.broadcast %17 : vector<8x1xf32> to vector<8x256xf32>
    %65 = arith.mulf %63, %64 : vector<8x256xf32>
    %66 = vector.broadcast %18 : vector<8x1xf32> to vector<8x256xf32>
    %67 = arith.addf %65, %66 : vector<8x256xf32>
    %cst_53 = arith.constant 0.000000e+00 : f32
    %68 = vector.broadcast %cst_53 : f32 to vector<8x256xf32>
    %69 = arith.maximumf %67, %68 : vector<8x256xf32>
    %cst_54 = arith.constant dense<0.000000e+00> : vector<8x256xf32>
    %70 = tpu.matmul %19, %69, %cst_54 {dimension_numbers = #tpu.dot_dimension_numbers<[1], [0], [0], [1], [0, 0, 1, 1], [], []>} : vector<8x8xbf16>, vector<8x256xf32>, vector<8x256xf32> -> vector<8x256xf32>
    %71 = vector.broadcast %20 : vector<8x1xf32> to vector<8x256xf32>
    %72 = arith.addf %70, %71 : vector<8x256xf32>
    %73 = vector.extract_strided_slice %72 {offsets = [0, 0], sizes = [2, 256], strides = [1, 1]} : vector<8x256xf32> to vector<2x256xf32>
    %c0_55 = arith.constant 0 : index
    %c0_56 = arith.constant 0 : index
    %c0_57 = arith.constant 0 : index
    %74 = vector.load %arg25[%c0_55, %c0_56, %c0_57] : memref<1x2x256xf32, #tpu.memory_space<vmem>>, vector<1x2x256xf32>
    %75 = vector.shape_cast %74 : vector<1x2x256xf32> to vector<2x256xf32>
    %76 = vector.shape_cast %73 : vector<2x256xf32> to vector<1x2x256xf32>
    tpu.vector_store %arg25[%c0_55, %c0_56, %c0_57], %76 {strides = array<i32>} : memref<1x2x256xf32, #tpu.memory_space<vmem>>, vector<1x2x256xf32>,
    return
  }
  func.func @transform_0(%arg0: i32, %arg1: i32, %arg2: i32) -> (i32, i32, i32) {
    %c1_i32 = arith.constant 1 : i32
    %0 = arith.muli %arg1, %c1_i32 : i32
    %1 = arith.addi %0, %arg2 : i32
    %c0_i32 = arith.constant 0 : i32
    %c0_i32_0 = arith.constant 0 : i32
    return %arg0, %c0_i32, %1 : i32, i32, i32
  }
  func.func @transform_1(%arg0: i32, %arg1: i32, %arg2: i32) -> (i32, i32) {
    %c0_i32 = arith.constant 0 : i32
    %c0_i32_0 = arith.constant 0 : i32
    %c0_i32_1 = arith.constant 0 : i32
    return %c0_i32, %c0_i32_0 : i32, i32
  }
  func.func @transform_2(%arg0: i32, %arg1: i32, %arg2: i32) -> (i32, i32) {
    %c0_i32 = arith.constant 0 : i32
    %c0_i32_0 = arith.constant 0 : i32
    %c0_i32_1 = arith.constant 0 : i32
    return %c0_i32, %c0_i32_0 : i32, i32
  }
  func.func @transform_3(%arg0: i32, %arg1: i32, %arg2: i32) -> (i32, i32) {
    %c0_i32 = arith.constant 0 : i32
    %c0_i32_0 = arith.constant 0 : i32
    %c0_i32_1 = arith.constant 0 : i32
    return %c0_i32, %c0_i32_0 : i32, i32
  }
  func.func @transform_4(%arg0: i32, %arg1: i32, %arg2: i32) -> (i32, i32) {
    %c0_i32 = arith.constant 0 : i32
    %c0_i32_0 = arith.constant 0 : i32
    %c0_i32_1 = arith.constant 0 : i32
    return %c0_i32, %c0_i32_0 : i32, i32
  }
  func.func @transform_5(%arg0: i32, %arg1: i32, %arg2: i32) -> (i32, i32) {
    %c0_i32 = arith.constant 0 : i32
    %c0_i32_0 = arith.constant 0 : i32
    %c0_i32_1 = arith.constant 0 : i32
    return %c0_i32, %c0_i32_0 : i32, i32
  }
  func.func @transform_6(%arg0: i32, %arg1: i32, %arg2: i32) -> (i32, i32) {
    %c0_i32 = arith.constant 0 : i32
    %c0_i32_0 = arith.constant 0 : i32
    %c0_i32_1 = arith.constant 0 : i32
    return %c0_i32, %c0_i32_0 : i32, i32
  }
  func.func @transform_7(%arg0: i32, %arg1: i32, %arg2: i32) -> (i32, i32) {
    %c0_i32 = arith.constant 0 : i32
    %c0_i32_0 = arith.constant 0 : i32
    %c0_i32_1 = arith.constant 0 : i32
    return %c0_i32, %c0_i32_0 : i32, i32
  }
  func.func @transform_8(%arg0: i32, %arg1: i32, %arg2: i32) -> (i32, i32) {
    %c0_i32 = arith.constant 0 : i32
    %c0_i32_0 = arith.constant 0 : i32
    %c0_i32_1 = arith.constant 0 : i32
    return %c0_i32, %c0_i32_0 : i32, i32
  }
  func.func @transform_9(%arg0: i32, %arg1: i32, %arg2: i32) -> (i32, i32) {
    %c0_i32 = arith.constant 0 : i32
    %c0_i32_0 = arith.constant 0 : i32
    %c0_i32_1 = arith.constant 0 : i32
    return %c0_i32, %c0_i32_0 : i32, i32
  }
  func.func @transform_10(%arg0: i32, %arg1: i32, %arg2: i32) -> (i32, i32) {
    %c0_i32 = arith.constant 0 : i32
    %c0_i32_0 = arith.constant 0 : i32
    %c0_i32_1 = arith.constant 0 : i32
    return %c0_i32, %c0_i32_0 : i32, i32
  }
  func.func @transform_11(%arg0: i32, %arg1: i32, %arg2: i32) -> (i32, i32) {
    %c0_i32 = arith.constant 0 : i32
    %c0_i32_0 = arith.constant 0 : i32
    %c0_i32_1 = arith.constant 0 : i32
    return %c0_i32, %c0_i32_0 : i32, i32
  }
  func.func @transform_12(%arg0: i32, %arg1: i32, %arg2: i32) -> (i32, i32) {
    %c0_i32 = arith.constant 0 : i32
    %c0_i32_0 = arith.constant 0 : i32
    %c0_i32_1 = arith.constant 0 : i32
    return %c0_i32, %c0_i32_0 : i32, i32
  }
  func.func @transform_13(%arg0: i32, %arg1: i32, %arg2: i32) -> (i32, i32) {
    %c0_i32 = arith.constant 0 : i32
    %c0_i32_0 = arith.constant 0 : i32
    %c0_i32_1 = arith.constant 0 : i32
    return %c0_i32, %c0_i32_0 : i32, i32
  }
  func.func @transform_14(%arg0: i32, %arg1: i32, %arg2: i32) -> (i32, i32) {
    %c0_i32 = arith.constant 0 : i32
    %c0_i32_0 = arith.constant 0 : i32
    %c0_i32_1 = arith.constant 0 : i32
    return %c0_i32, %c0_i32_0 : i32, i32
  }
  func.func @transform_15(%arg0: i32, %arg1: i32, %arg2: i32) -> (i32, i32) {
    %c0_i32 = arith.constant 0 : i32
    %c0_i32_0 = arith.constant 0 : i32
    %c0_i32_1 = arith.constant 0 : i32
    return %c0_i32, %c0_i32_0 : i32, i32
  }
  func.func @transform_16(%arg0: i32, %arg1: i32, %arg2: i32) -> (i32, i32) {
    %c0_i32 = arith.constant 0 : i32
    %c0_i32_0 = arith.constant 0 : i32
    %c0_i32_1 = arith.constant 0 : i32
    return %c0_i32, %c0_i32_0 : i32, i32
  }
  func.func @transform_17(%arg0: i32, %arg1: i32, %arg2: i32) -> (i32, i32) {
    %c0_i32 = arith.constant 0 : i32
    %c0_i32_0 = arith.constant 0 : i32
    %c0_i32_1 = arith.constant 0 : i32
    return %c0_i32, %c0_i32_0 : i32, i32
  }
  func.func @transform_18(%arg0: i32, %arg1: i32, %arg2: i32) -> (i32, i32) {
    %c0_i32 = arith.constant 0 : i32
    %c0_i32_0 = arith.constant 0 : i32
    %c0_i32_1 = arith.constant 0 : i32
    return %c0_i32, %c0_i32_0 : i32, i32
  }
  func.func @transform_19(%arg0: i32, %arg1: i32, %arg2: i32) -> (i32, i32) {
    %c0_i32 = arith.constant 0 : i32
    %c0_i32_0 = arith.constant 0 : i32
    %c0_i32_1 = arith.constant 0 : i32
    return %c0_i32, %c0_i32_0 : i32, i32
  }
  func.func @transform_20(%arg0: i32, %arg1: i32, %arg2: i32) -> (i32, i32) {
    %c0_i32 = arith.constant 0 : i32
    %c0_i32_0 = arith.constant 0 : i32
    %c0_i32_1 = arith.constant 0 : i32
    return %c0_i32, %c0_i32_0 : i32, i32
  }
  func.func @transform_21(%arg0: i32, %arg1: i32, %arg2: i32) -> (i32, i32) {
    %c0_i32 = arith.constant 0 : i32
    %c0_i32_0 = arith.constant 0 : i32
    %c0_i32_1 = arith.constant 0 : i32
    return %c0_i32, %c0_i32_0 : i32, i32
  }
  func.func @transform_22(%arg0: i32, %arg1: i32, %arg2: i32) -> (i32, i32, i32) {
    %c1_i32 = arith.constant 1 : i32
    %0 = arith.muli %arg1, %c1_i32 : i32
    %1 = arith.addi %0, %arg2 : i32
    %c0_i32 = arith.constant 0 : i32
    %c0_i32_0 = arith.constant 0 : i32
    return %arg0, %c0_i32, %1 : i32, i32, i32
  }
}

</mosaic_0001>

<bundles_post_ra>
// kernel: cheaplab_forward.7
= control target key start
LH: loop header
LB: loop body
LE: loop exit
PB: predicated region body
PF: predicated region fallthrough
CT: control target
= control target key end

     0   :  { %s979_s24 = smov 0   ;;  %s981_s25 = smov 0   ;;  %s1075_s0 = inlined_call_operand.vmem [shape: bf16[2,4,256], index: 0, kind: input, shape index: {}]   ;;  %s1076_s1 = inlined_call_operand.vmem [shape: bf16[64,4], index: 1, kind: input, shape index: {}]   ;;  %s1077_s2 = inlined_call_operand.vmem [shape: f32[32,1], index: 2, kind: input, shape index: {}]   ;;  %s1078_s3 = inlined_call_operand.vmem [shape: bf16[16,32], index: 3, kind: input, shape index: {}]   ;;  %s1079_s4 = inlined_call_operand.vmem [shape: bf16[16,4], index: 4, kind: input, shape index: {}]   ;;  %s1080_s5 = inlined_call_operand.vmem [shape: f32[16,1], index: 5, kind: input, shape index: {}]   ;;  %s1081_s6 = inlined_call_operand.vmem [shape: f32[2,1,16,128], index: 6, kind: output, shape index: {0}]   ;;  %s1082_s7 = inlined_call_operand.vmem [shape: f32[2,1,16,128], index: 7, kind: output, shape index: {1}]  }
   0x1   :  { %s983_s26 = smov 0  }
   0x2 LB: > { %s37_s27 = sadd.s32 1, %s932_s25  ;;  %p813_p0 = scmp.ge.s32.totalorder %s936_s26, 1  ;;  %s936_s26 = sphi %s983_s26, %s18_s26   ;;  %s932_s25 = sphi %s981_s25, %s1084_s25   ;;  %s928_s24 = sphi %s979_s24, %s1083_s24  }
   0x3   : > { %p39_p1 = scmp.ge.s32.totalorder %s37_s27, 2  ;;  %p274_p2 = scmp.lt.s32.totalorder %s936_s26, 3 }
   0x5   : > { %s1086_s27 = smov (%p39_p1, %s37_s27), 0  ;;  %p275_p3 = pnand %p813_p0, %p274_p2 }
   0x6   : > { %p326_p4 = scmp.lt.s32.totalorder (!%p275_p3), %s928_s24, 1 }
   0x7   : > { %278 = sbr.rel (%p275_p3) target bundleno = 360 (0x168), region = 44 }
   0xc   : > { %v938_v0 = vmov 0   ;;  %v366_v1 = vld [vmem:[%s1077_s2 + $0x18] sm:$0xff]  ;;  %s1088_s24 = smov (!%p326_p4, %s928_s24), 1  ;;  %v365_v3 = vld [vmem:[%s1077_s2 + $0x10] sm:$0xff]  ;;  %vm419_vm0 = vcmask 1041408   ;;  %v861_v8 = vld [vmem:[%s1076_s1] sm:$0xff] }
   0xd   : > { %895 = vset.pattern.permute.xlu0 %v938_v0  ;;  %896 = vset.pattern.permute.xlu1 %v938_v0  ;;  %s858_s30 = sshll.u32 %s1088_s24, 2  ;;  %v864_v9 = vld [vmem:[%s1076_s1 + $0x18] sm:$0xff]  ;;  %vm406_vm1 = vcmask 31744   ;;  %v364_v10 = vld [vmem:[%s1077_s2 + $0x8] sm:$0xff]  ;;  %v363_v11 = vld [vmem:[%s1077_s2] sm:$0xff]  ;;  %vm582_vm2 = vcmask 261120  }
   0xe   : > { %499 = vperm.xlu0 %895, %v366_v1   ;;  %897 = vset.pattern.permute.xlu2 %v938_v0  ;;  %s333_s10 = scalar_lea.vmem %s1075_s0, %s858_s30  ;;  %v862_v12 = vld [vmem:[%s1076_s1 + $0x8] sm:$0xff]  ;;  %v863_v13 = vld [vmem:[%s1076_s1 + $0x10] sm:$0xff]  ;;  %v866_v20 = vld [vmem:[%s1079_s4] sm:$0xff]  ;;  %s859_s14 = sshll.u32 %s1088_s24, 4 }
   0xf   : > { %v381_v2 = vld [vmem:[%s333_s10] sm:$0xf]  ;;  %489 = vperm.xlu1 %896, %v364_v10   ;;  %v372_v53 = vld [vmem:[%s1080_s5 + $0x8] sm:$0xff]  ;;  %s344_s17 = scalar_lea.vmem %s1081_s6, %s859_s14  ;;  %s353_s20 = scalar_lea.vmem %s1082_s7, %s859_s14 }
  0x10   : > { %403 = vst [vmem:[#allocation1] ss:$4 sm:$0xff] %v381_v2  ;;  %v371_v47 = vld [vmem:[%s1080_s5] sm:$0xff] }
  0x11   : > { %632 = vperm.xlu2 %897, %v371_v47  }
  0x16   : > { %494 = vperm.xlu0 %895, %v365_v3  }
  0x17   : > { %v404_v4 = vld.sshfl [vmem:[#allocation1] sm:$0xff pattern:$0x73625140]  ;;  %v405_v5 = vld.sshfl [vmem:[#allocation1 + $0x8] sm:$0xff pattern:$0x73625140]  ;;  %484 = vperm.xlu1 %896, %v363_v11  }
  0x18   : > { %v420_v6 = vsel %vm419_vm0, %v404_v4, 0  ;;  %v422_v7 = vsel %vm419_vm0, %v405_v5, 0  ;;  %539 = vst [vmem:[#allocation1] ss:$4 sm:$0xff] %v381_v2 }
  0x19   : > { %431 = vmatpush.bf16.msra.mxu0 %v420_v6  ;;  %867 = vmatpush.bf16.msra.mxu2 %v420_v6 }
  0x1a   : > { %460 = vmatpush.bf16.msra.mxu1 %v422_v7  ;;  %868 = vmatpush.bf16.msra.mxu3 %v422_v7  ;;  %v865_v7 = vld [vmem:[%s1078_s3] sm:$0xff] }
  0x1b   : > { %637 = vperm.xlu2 %897, %v372_v53  }
  0x1c   : > { %836 = vmatmul.msk.bf16.vlgmr.msra.gmra.mxu0 %vm406_vm1, %v861_v8  ;;  %839 = vmatmul.msk.bf16.vlgmr.msra.gmra.mxu2 %vm406_vm1, %v864_v9 }
  0x1d   : > { %840 = vmatmul.msk.bf16.vlgmr.msra.gmra.mxu1 %vm406_vm1, %v861_v8  ;;  %843 = vmatmul.msk.bf16.vlgmr.msra.gmra.mxu3 %vm406_vm1, %v864_v9 }
  0x1f   : > { %v540_v14 = vld.sshfl [vmem:[#allocation1] sm:$0xff pattern:$0x73625140]  ;;  %v541_v15 = vld.sshfl [vmem:[#allocation1 + $0x8] sm:$0xff pattern:$0x73625140] }
  0x20   : > { %v545_v16 = vsel %vm419_vm0, %v540_v14, 0  ;;  %v547_v17 = vsel %vm419_vm0, %v541_v15, 0 }
  0x21   : > { %556 = vmatpush.bf16.msrb.mxu2 %v545_v16  ;;  %570 = vmatpush.bf16.msrb.mxu3 %v547_v17 }
  0x2c   : > { %837 = vmatmul.msk.bf16.gmra.mxu0 %vm406_vm1, %v862_v12  ;;  %848 = vmatmul.msk.bf16.vlgmr.msrb.gmra.mxu2 %vm406_vm1, %v866_v20 }
  0x2d   : > { %841 = vmatmul.msk.bf16.gmra.mxu1 %vm406_vm1, %v862_v12  ;;  %849 = vmatmul.msk.bf16.vlgmr.msrb.gmra.mxu3 %vm406_vm1, %v866_v20 }
  0x3c   : > { %838 = vmatmul.msk.bf16.gmra.mxu0 %vm406_vm1, %v863_v13 }
  0x3d   : > { %842 = vmatmul.msk.bf16.gmra.mxu1 %vm406_vm1, %v863_v13 }
  0x6b   : > { %v633_v14 = vpop.permute.xlu2 %632 }
  0x80   : > { %v500_v18 = vpop.permute.xlu0 %499 }
  0x81   : > { %v490_v39 = vpop.permute.xlu1 %489 }
  0x88   : > { %v495_v22 = vpop.permute.xlu0 %494 }
  0x89   : > { %v485_v51 = vpop.permute.xlu1 %484 }
  0x99   : > { %v1039_v19 = vpop.f32.mrf.mxu0 }
  0x9a   : > { %v1044_v21 = vpop.f32.mrf.mxu1 }
  0x9f   : > { %v448_v23 = vpop.f32.mrf.mxu2 }
  0xa0   : > { %v477_v24 = vpop.f32.mrf.mxu3  ;;  %v506_v26 = vadd.f32 %v495_v22, %v448_v23 }
  0xa1   : > { %v435_v25 = vpop.f32.mrf.mxu0  ;;  %v507_v28 = vadd.f32 %v495_v22, %v477_v24 }
  0xa2   : > { %v464_v27 = vpop.f32.mrf.mxu1  ;;  %v514_v29 = vadd.f32 1e-07, %v506_v26 }
  0xa3   : > { %v515_v30 = vadd.f32 1e-07, %v507_v28  ;;  %v638_v28 = vpop.permute.xlu2 %637 }
  0xa4   : > { %898 = vrcp.f32 %v514_v29 }
  0xa5   : > { %900 = vrcp.f32 %v515_v30 }
  0xa7   : > { %v450_v31 = vpop.f32.mrf.mxu2 }
  0xa8   : > { %v508_v32 = vadd.f32 %v500_v18, %v450_v31  ;;  %v479_v33 = vpop.f32.mrf.mxu3 }
  0xa9   : > { %v509_v34 = vadd.f32 %v500_v18, %v479_v33  ;;  %v438_v35 = vpop.f32.mrf.mxu0 }
  0xaa   : > { %v516_v36 = vadd.f32 1e-07, %v508_v32  ;;  %v467_v37 = vpop.f32.mrf.mxu1  ;;  %v899_v40 = vpop.eup %898 }
  0xab   : > { %v517_v38 = vadd.f32 1e-07, %v509_v34  ;;  %v901_v41 = vpop.eup %900  ;;  %v530_v49 = vmul.f32 %v899_v40, %v438_v35 }
  0xac   : > { %902 = vrcp.f32 %v516_v36  ;;  %v531_v50 = vmul.f32 %v901_v41, %v467_v37 }
  0xad   : > { %904 = vrcp.f32 %v517_v38 }
  0xaf   : > { %v558_v10 = vpop.f32.mrf.mxu2 }
  0xb0   : > { %v572_v11 = vpop.f32.mrf.mxu3 }
  0xb1   : > { %v440_v42 = vpop.f32.mrf.mxu0 }
  0xb2   : > { %v903_v43 = vpop.eup %902  ;;  %v469_v44 = vpop.f32.mrf.mxu1 }
  0xb3   : > { %v905_v45 = vpop.eup %904  ;;  %v532_v46 = vmul.f32 %v903_v43, %v440_v42 }
  0xb4   : > { %v533_v48 = vmul.f32 %v905_v45, %v469_v44 }
  0xb5   : > { %598 = vmatpush.msra.mxu2 %v532_v46 }
  0xb6   : > { %620 = vmatpush.msra.mxu3 %v533_v48 }
  0xb7   : > { %599 = vmatpush.msra.mxu2 %v530_v49  ;;  %v560_v12 = vpop.f32.mrf.mxu2 }
  0xb8   : > { %621 = vmatpush.msra.mxu3 %v531_v50  ;;  %v574_v13 = vpop.f32.mrf.mxu3 }
  0xb9   : > { %v443_v52 = vpop.f32.mrf.mxu0 }
  0xba   : > { %v472_v54 = vpop.f32.mrf.mxu1  ;;  %v502_v55 = vadd.f32 %v485_v51, %v443_v52 }
  0xbb   : > { %v503_v56 = vadd.f32 %v485_v51, %v472_v54 }
  0xbc   : > { %v510_v57 = vadd.f32 1e-07, %v502_v55 }
  0xbd   : > { %v511_v58 = vadd.f32 1e-07, %v503_v56 }
  0xbe   : > { %906 = vrcp.f32 %v510_v57 }
  0xbf   : > { %908 = vrcp.f32 %v511_v58 }
  0xc1   : > { %v445_v59 = vpop.f32.mrf.mxu0 }
  0xc2   : > { %v504_v60 = vadd.f32 %v490_v39, %v445_v59  ;;  %v474_v61 = vpop.f32.mrf.mxu1 }
  0xc3   : > { %v505_v62 = vadd.f32 %v490_v39, %v474_v61 }
  0xc4   : > { %v512_v63 = vadd.f32 1e-07, %v504_v60  ;;  %v907_v1 = vpop.eup %906 }
  0xc5   : > { %v513_v0 = vadd.f32 1e-07, %v505_v62  ;;  %v909_v2 = vpop.eup %908  ;;  %v526_v8 = vmul.f32 %v907_v1, %v1039_v19 }
  0xc6   : > { %910 = vrcp.f32 %v512_v63  ;;  %v527_v9 = vmul.f32 %v909_v2, %v1044_v21 }
  0xc7   : > { %912 = vrcp.f32 %v513_v0 }
  0xcc   : > { %v911_v3 = vpop.eup %910 }
  0xcd   : > { %v913_v4 = vpop.eup %912  ;;  %v528_v5 = vmul.f32 %v911_v3, %v435_v25 }
  0xce   : > { %v529_v6 = vmul.f32 %v913_v4, %v464_v27 }
  0xcf   : > { %600 = vmatpush.msra.mxu2 %v528_v5 }
  0xd0   : > { %622 = vmatpush.msra.mxu3 %v529_v6 }
  0xd1   : > { %601 = vmatpush.msra.mxu2 %v526_v8 }
  0xd2   : > { %623 = vmatpush.msra.mxu3 %v527_v9  ;;  %854 = vmatmul.msk.bf16.vlgmr.msra.gmra.mxu2 %vm582_vm2, %v865_v7 }
  0xd3   : > { %855 = vmatmul.msk.bf16.vlgmr.msra.gmra.mxu3 %vm582_vm2, %v865_v7 }
 0x155   : > { %v603_v15 = vpop.f32.mrf.mxu2 }
 0x156   : > { %v604_v16 = vadd.f32 %v603_v15, %v558_v10  ;;  %v625_v17 = vpop.f32.mrf.mxu3 }
 0x157   : > { %v626_v18 = vadd.f32 %v625_v17, %v572_v11 }
 0x158   : > { %v640_v20 = vadd.f32 %v633_v14, %v604_v16 }
 0x159   : > { %v641_v19 = vadd.f32 %v633_v14, %v626_v18 }
 0x15a   : > { %v644_v22 = vmul.f32 %v640_v20, %v640_v20 }
 0x15b   : > { %v646_v23 = vadd.f32 %v641_v19, %v640_v20  ;;  %v648_v24 = vmul.f32 %v641_v19, %v641_v19 }
 0x15d   : > { %v650_v21 = vadd.f32 %v648_v24, %v644_v22  ;;  %v605_v25 = vpop.f32.mrf.mxu2  ;;  %656 = vst [vmem:[%s344_s17] sm:$0xff] %v646_v23 }
 0x15e   : > { %v606_v26 = vadd.f32 %v605_v25, %v560_v12  ;;  %v627_v27 = vpop.f32.mrf.mxu3 }
 0x15f   : > { %v628_v29 = vadd.f32 %v627_v27, %v574_v13  ;;  %662 = vst [vmem:[%s353_s20] sm:$0xff] %v650_v21 }
 0x160   : > { %v642_v30 = vadd.f32 %v638_v28, %v606_v26 }
 0x161   : > { %v643_v31 = vadd.f32 %v638_v28, %v628_v29 }
 0x162   : > { %v645_v32 = vmul.f32 %v642_v30, %v642_v30 }
 0x163   : > { %v647_v33 = vadd.f32 %v643_v31, %v642_v30  ;;  %v649_v34 = vmul.f32 %v643_v31, %v643_v31 }
 0x165   : > { %v651_v35 = vadd.f32 %v649_v34, %v645_v32  ;;  %657 = vst [vmem:[%s344_s17 + $0x8] sm:$0xff] %v647_v33 }
 0x167   : > { %663 = vst [vmem:[%s353_s20 + $0x8] sm:$0xff] %v651_v35 }
 0x168 PF: > { %s18_s26 = sadd.s32 1, %s936_s26   ;;  %s1083_s24 = smov %s932_s25 }
 0x169   : > { %p15_p5 = scmp.ge.s32.totalorder %s18_s26, 4   ;;  %s1084_s25 = smov %s1086_s27 }
 0x16b   :  { %17 = sbr.rel (!%p15_p5) target bundleno = 2 (0x2), region = 90 }

// kernel: cheaplab_forward.6
= control target key start
LH: loop header
LB: loop body
LE: loop exit
PB: predicated region body
PF: predicated region fallthrough
CT: control target
= control target key end

     0   :  { %s776_s15 = smov 0   ;;  %s778_s16 = smov 0   ;;  %s852_s0 = inlined_call_operand.vmem [shape: bf16[2,4,256], index: 0, kind: input, shape index: {}]   ;;  %s853_s1 = inlined_call_operand.vmem [shape: bf16[64,4], index: 1, kind: input, shape index: {}]   ;;  %s854_s2 = inlined_call_operand.vmem [shape: f32[32,1], index: 2, kind: input, shape index: {}]   ;;  %s855_s3 = inlined_call_operand.vmem [shape: f32[2,1,32,128], index: 3, kind: output, shape index: {0}]   ;;  %s856_s4 = inlined_call_operand.vmem [shape: f32[2,1,32,128], index: 4, kind: output, shape index: {1}]  }
   0x1   :  { %s780_s17 = smov 0  }
   0x2 LB: > { %s34_s18 = sadd.s32 1, %s744_s16  ;;  %p640_p0 = scmp.ge.s32.totalorder %s748_s17, 1  ;;  %s748_s17 = sphi %s780_s17, %s15_s17   ;;  %s744_s16 = sphi %s778_s16, %s858_s16   ;;  %s740_s15 = sphi %s776_s15, %s857_s15  }
   0x3   : > { %p36_p1 = scmp.ge.s32.totalorder %s34_s18, 2  ;;  %p199_p2 = scmp.lt.s32.totalorder %s748_s17, 3 }
   0x5   : > { %s860_s18 = smov (%p36_p1, %s34_s18), 0  ;;  %p200_p3 = pnand %p640_p0, %p199_p2 }
   0x6   : > { %p245_p4 = scmp.lt.s32.totalorder (!%p200_p3), %s740_s15, 1 }
   0x7   : > { %203 = sbr.rel (%p200_p3) target bundleno = 203 (0xcb), region = 32 }
   0xc   : > { %v750_v0 = vmov 0   ;;  %s862_s15 = smov (!%p245_p4, %s740_s15), 1  ;;  %v282_v1 = vld [vmem:[%s854_s2] sm:$0xff]  ;;  %v284_v2 = vld [vmem:[%s854_s2 + $0x10] sm:$0xff]  ;;  %v283_v4 = vld [vmem:[%s854_s2 + $0x8] sm:$0xff]  ;;  %vm336_vm0 = vcmask 1041408  }
   0xd   : > { %708 = vset.pattern.permute.xlu0 %v750_v0  ;;  %709 = vset.pattern.permute.xlu1 %v750_v0  ;;  %s673_s23 = sshll.u32 %s862_s15, 2  ;;  %v285_v5 = vld [vmem:[%s854_s2 + $0x18] sm:$0xff]  ;;  %v678_v10 = vld [vmem:[%s853_s1 + $0x10] sm:$0xff]  ;;  %vm323_vm1 = vcmask 31744   ;;  %v676_v11 = vld [vmem:[%s853_s1] sm:$0xff]  ;;  %s674_s13 = sshll.u32 %s862_s15, 5 }
   0xe   : > { %401 = vperm.xlu0 %708, %v282_v1   ;;  %411 = vperm.xlu1 %709, %v284_v2   ;;  %s252_s26 = scalar_lea.vmem %s852_s0, %s673_s23  ;;  %v679_v12 = vld [vmem:[%s853_s1 + $0x18] sm:$0xff]  ;;  %v677_v13 = vld [vmem:[%s853_s1 + $0x8] sm:$0xff]  ;;  %s828_s20 = scalar_lea.vmem %s855_s3, %s674_s13 }
   0xf   : > { %v298_v3 = vld [vmem:[%s252_s26] sm:$0xf]  ;;  %s833_s22 = scalar_lea.vmem %s856_s4, %s674_s13 }
  0x10   : > { %320 = vst [vmem:[#allocation1] ss:$4 sm:$0xff] %v298_v3 }
  0x16   : > { %406 = vperm.xlu0 %708, %v283_v4   ;;  %416 = vperm.xlu1 %709, %v285_v5  }
  0x17   : > { %v321_v6 = vld.sshfl [vmem:[#allocation1] sm:$0xff pattern:$0x73625140]  ;;  %v322_v7 = vld.sshfl [vmem:[#allocation1 + $0x8] sm:$0xff pattern:$0x73625140] }
  0x18   : > { %v337_v8 = vsel %vm336_vm0, %v321_v6, 0  ;;  %v339_v9 = vsel %vm336_vm0, %v322_v7, 0 }
  0x19   : > { %680 = vmatpush.bf16.msra.mxu2 %v337_v8  ;;  %681 = vmatpush.bf16.msra.mxu3 %v339_v9 }
  0x1a   : > { %348 = vmatpush.bf16.msra.mxu0 %v337_v8  ;;  %377 = vmatpush.bf16.msra.mxu1 %v339_v9 }
  0x1c   : > { %665 = vmatmul.msk.bf16.vlgmr.msra.gmra.mxu2 %vm323_vm1, %v678_v10  ;;  %669 = vmatmul.msk.bf16.vlgmr.msra.gmra.mxu3 %vm323_vm1, %v678_v10 }
  0x1d   : > { %663 = vmatmul.msk.bf16.vlgmr.msra.gmra.mxu0 %vm323_vm1, %v676_v11  ;;  %667 = vmatmul.msk.bf16.vlgmr.msra.gmra.mxu1 %vm323_vm1, %v676_v11 }
  0x2c   : > { %666 = vmatmul.msk.bf16.gmra.mxu2 %vm323_vm1, %v679_v12  ;;  %670 = vmatmul.msk.bf16.gmra.mxu3 %vm323_vm1, %v679_v12 }
  0x2d   : > { %664 = vmatmul.msk.bf16.gmra.mxu0 %vm323_vm1, %v677_v13  ;;  %668 = vmatmul.msk.bf16.gmra.mxu1 %vm323_vm1, %v677_v13 }
  0x80   : > { %v402_v14 = vpop.permute.xlu0 %401  ;;  %v412_v34 = vpop.permute.xlu1 %411 }
  0x88   : > { %v407_v23 = vpop.permute.xlu0 %406  ;;  %v417_v54 = vpop.permute.xlu1 %416 }
  0x9a   : > { %v350_v21 = vpop.f32.mrf.mxu0  ;;  %v379_v22 = vpop.f32.mrf.mxu1 }
  0x9f   : > { %v360_v15 = vpop.f32.mrf.mxu2  ;;  %v389_v16 = vpop.f32.mrf.mxu3 }
  0xa0   : > { %v419_v17 = vadd.f32 %v402_v14, %v360_v15  ;;  %v420_v18 = vadd.f32 %v402_v14, %v389_v16 }
  0xa2   : > { %v427_v19 = vadd.f32 1e-07, %v419_v17  ;;  %v428_v20 = vadd.f32 1e-07, %v420_v18  ;;  %v352_v38 = vpop.f32.mrf.mxu0  ;;  %v381_v39 = vpop.f32.mrf.mxu1 }
  0xa4   : > { %710 = vrcp.f32 %v427_v19 }
  0xa5   : > { %712 = vrcp.f32 %v428_v20 }
  0xa7   : > { %v362_v24 = vpop.f32.mrf.mxu2  ;;  %v391_v25 = vpop.f32.mrf.mxu3 }
  0xa8   : > { %v421_v26 = vadd.f32 %v407_v23, %v362_v24  ;;  %v422_v27 = vadd.f32 %v407_v23, %v391_v25 }
  0xaa   : > { %v711_v28 = vpop.eup %710  ;;  %v429_v29 = vadd.f32 1e-07, %v421_v26  ;;  %v430_v30 = vadd.f32 1e-07, %v422_v27  ;;  %v355_v58 = vpop.f32.mrf.mxu0 }
  0xab   : > { %v713_v31 = vpop.eup %712  ;;  %v443_v32 = vmul.f32 %v711_v28, %v350_v21  ;;  %v384_v61 = vpop.f32.mrf.mxu1 }
  0xac   : > { %v444_v33 = vmul.f32 %v713_v31, %v379_v22  ;;  %714 = vrcp.f32 %v429_v29 }
  0xad   : > { %v451_v35 = vmul.f32 %v443_v32, %v443_v32  ;;  %716 = vrcp.f32 %v430_v30 }
  0xae   : > { %v455_v36 = vadd.f32 %v444_v33, %v443_v32  ;;  %v459_v37 = vmul.f32 %v444_v33, %v444_v33 }
  0xaf   : > { %v365_v40 = vpop.f32.mrf.mxu2  ;;  %v394_v41 = vpop.f32.mrf.mxu3 }
  0xb0   : > { %v463_v42 = vadd.f32 %v459_v37, %v451_v35  ;;  %v423_v43 = vadd.f32 %v412_v34, %v365_v40  ;;  %v424_v44 = vadd.f32 %v412_v34, %v394_v41  ;;  %475 = vst [vmem:[%s828_s20] sm:$0xff] %v455_v36 }
  0xb2   : > { %v715_v45 = vpop.eup %714  ;;  %v431_v46 = vadd.f32 1e-07, %v423_v43  ;;  %v432_v47 = vadd.f32 1e-07, %v424_v44  ;;  %487 = vst [vmem:[%s833_s22] sm:$0xff] %v463_v42  ;;  %v357_v9 = vpop.f32.mrf.mxu0 }
  0xb3   : > { %v717_v48 = vpop.eup %716  ;;  %v445_v49 = vmul.f32 %v715_v45, %v352_v38  ;;  %v386_v12 = vpop.f32.mrf.mxu1 }
  0xb4   : > { %v446_v50 = vmul.f32 %v717_v48, %v381_v39  ;;  %718 = vrcp.f32 %v431_v46 }
  0xb5   : > { %v452_v51 = vmul.f32 %v445_v49, %v445_v49  ;;  %720 = vrcp.f32 %v432_v47 }
  0xb6   : > { %v456_v52 = vadd.f32 %v446_v50, %v445_v49  ;;  %v460_v53 = vmul.f32 %v446_v50, %v446_v50 }
  0xb7   : > { %v367_v55 = vpop.f32.mrf.mxu2  ;;  %v396_v56 = vpop.f32.mrf.mxu3 }
  0xb8   : > { %v464_v57 = vadd.f32 %v460_v53, %v452_v51  ;;  %v425_v59 = vadd.f32 %v417_v54, %v367_v55  ;;  %v426_v60 = vadd.f32 %v417_v54, %v396_v56  ;;  %476 = vst [vmem:[%s828_s20 + $0x8] sm:$0xff] %v456_v52 }
  0xba   : > { %v719_v62 = vpop.eup %718  ;;  %v433_v63 = vadd.f32 1e-07, %v425_v59  ;;  %v434_v0 = vadd.f32 1e-07, %v426_v60  ;;  %488 = vst [vmem:[%s833_s22 + $0x8] sm:$0xff] %v464_v57 }
  0xbb   : > { %v721_v1 = vpop.eup %720  ;;  %v447_v2 = vmul.f32 %v719_v62, %v355_v58 }
  0xbc   : > { %v448_v3 = vmul.f32 %v721_v1, %v384_v61  ;;  %722 = vrcp.f32 %v433_v63 }
  0xbd   : > { %v453_v4 = vmul.f32 %v447_v2, %v447_v2  ;;  %724 = vrcp.f32 %v434_v0 }
  0xbe   : > { %v457_v5 = vadd.f32 %v448_v3, %v447_v2  ;;  %v461_v6 = vmul.f32 %v448_v3, %v448_v3 }
  0xc0   : > { %v465_v7 = vadd.f32 %v461_v6, %v453_v4  ;;  %477 = vst [vmem:[%s828_s20 + $0x10] sm:$0xff] %v457_v5 }
  0xc2   : > { %v723_v8 = vpop.eup %722  ;;  %489 = vst [vmem:[%s833_s22 + $0x10] sm:$0xff] %v465_v7 }
  0xc3   : > { %v725_v10 = vpop.eup %724  ;;  %v449_v11 = vmul.f32 %v723_v8, %v357_v9 }
  0xc4   : > { %v450_v13 = vmul.f32 %v725_v10, %v386_v12 }
  0xc5   : > { %v454_v14 = vmul.f32 %v449_v11, %v449_v11 }
  0xc6   : > { %v458_v15 = vadd.f32 %v450_v13, %v449_v11  ;;  %v462_v16 = vmul.f32 %v450_v13, %v450_v13 }
  0xc8   : > { %v466_v17 = vadd.f32 %v462_v16, %v454_v14  ;;  %478 = vst [vmem:[%s828_s20 + $0x18] sm:$0xff] %v458_v15 }
  0xca   : > { %490 = vst [vmem:[%s833_s22 + $0x18] sm:$0xff] %v466_v17 }
  0xcb PF: > { %s15_s17 = sadd.s32 1, %s748_s17   ;;  %s857_s15 = smov %s744_s16 }
  0xcc   : > { %p12_p5 = scmp.ge.s32.totalorder %s15_s17, 4   ;;  %s858_s16 = smov %s860_s18 }
  0xce   :  { %14 = sbr.rel (!%p12_p5) target bundleno = 2 (0x2), region = 78 }

// kernel: cheaplab_forward.8
= control target key start
LH: loop header
LB: loop body
LE: loop exit
PB: predicated region body
PF: predicated region fallthrough
CT: control target
= control target key end

     0   :  { %s1148_s17 = smov 0   ;;  %s1150_s18 = smov 0   ;;  %s1274_s0 = inlined_call_operand.vmem [shape: bf16[2,4,256], index: 0, kind: input, shape index: {}]   ;;  %s1275_s1 = inlined_call_operand.vmem [shape: bf16[64,4], index: 1, kind: input, shape index: {}]   ;;  %s1276_s2 = inlined_call_operand.vmem [shape: f32[32,1], index: 2, kind: input, shape index: {}]   ;;  %s1277_s3 = inlined_call_operand.vmem [shape: bf16[16,32], index: 3, kind: input, shape index: {}]   ;;  %s1278_s4 = inlined_call_operand.vmem [shape: bf16[16,4], index: 4, kind: input, shape index: {}]   ;;  %s1279_s5 = inlined_call_operand.vmem [shape: f32[16,1], index: 5, kind: input, shape index: {}]   ;;  %s1280_s6 = inlined_call_operand.vmem [shape: f32[16,1], index: 6, kind: input, shape index: {}]   ;;  %s1281_s7 = inlined_call_operand.vmem [shape: f32[16,1], index: 7, kind: input, shape index: {}]   ;;  %s1282_s8 = inlined_call_operand.vmem [shape: bf16[8,16], index: 8, kind: input, shape index: {}]   ;;  %s1283_s9 = inlined_call_operand.vmem [shape: f32[8,1], index: 9, kind: input, shape index: {}]   ;;  %s1284_s10 = inlined_call_operand.vmem [shape: f32[2,1,8,128], index: 10, kind: output, shape index: {0}]   ;;  %s1285_s11 = inlined_call_operand.vmem [shape: f32[2,1,8,128], index: 11, kind: output, shape index: {1}]  }
   0x1   :  { %s1152_s19 = smov 0  }
   0x2 LB: > { %s41_s20 = sadd.s32 1, %s1081_s18  ;;  %p966_p0 = scmp.ge.s32.totalorder %s1085_s19, 1  ;;  %s1085_s19 = sphi %s1152_s19, %s22_s19   ;;  %s1081_s18 = sphi %s1150_s18, %s1287_s18   ;;  %s1077_s17 = sphi %s1148_s17, %s1286_s17  }
   0x3   : > { %p43_p1 = scmp.ge.s32.totalorder %s41_s20, 2  ;;  %p374_p2 = scmp.lt.s32.totalorder %s1085_s19, 3 }
   0x5   : > { %s1289_s20 = smov (%p43_p1, %s41_s20), 0  ;;  %p375_p3 = pnand %p966_p0, %p374_p2 }
   0x6   : > { %p430_p4 = scmp.lt.s32.totalorder (!%p375_p3), %s1077_s17, 1 }
   0x7   : > { %378 = sbr.rel (%p375_p3) target bundleno = 524 (0x20c), region = 60 }
   0xc   : > { %s1291_s17 = smov (!%p430_p4, %s1077_s17), 1  ;;  %vm523_vm0 = vcmask 1041408   ;;  %v1012_v5 = vld [vmem:[%s1275_s1] sm:$0xff]  ;;  %vm510_vm1 = vcmask 31744   ;;  %v464_v6 = vld [vmem:[%s1276_s2 + $0x8] sm:$0xff]  ;;  %v466_v7 = vld [vmem:[%s1276_s2 + $0x18] sm:$0xff] }
   0xd   : > { %s1011_s21 = sshll.u32 %s1291_s17, 2  ;;  %v1087_v8 = vmov 0   ;;  %v463_v9 = vld [vmem:[%s1276_s2] sm:$0xff]  ;;  %v465_v10 = vld [vmem:[%s1276_s2 + $0x10] sm:$0xff]  ;;  %v1013_v11 = vld [vmem:[%s1275_s1 + $0x8] sm:$0xff]  ;;  %vm686_vm2 = vcmask 261120  }
   0xe   : > { %s437_s24 = scalar_lea.vmem %s1274_s0, %s1011_s21  ;;  %1045 = vset.pattern.permute.xlu1 %v1087_v8  ;;  %1044 = vset.pattern.permute.xlu0 %v1087_v8  ;;  %v474_v12 = vld [vmem:[%s1280_s6 + $0x8] sm:$0xff]  ;;  %v473_v13 = vld [vmem:[%s1280_s6] sm:$0xff]  ;;  %v1014_v16 = vld [vmem:[%s1275_s1 + $0x10] sm:$0xff]  ;;  %vm785_vm3 = vcmask 130048   ;;  %s969_s12 = sshll.u32 %s1291_s17, 3 }
   0xf   : > { %v485_v0 = vld [vmem:[%s437_s24] sm:$0xf]  ;;  %593 = vperm.xlu1 %1045, %v464_v6   ;;  %603 = vperm.xlu0 %1044, %v466_v7   ;;  %v1015_v17 = vld [vmem:[%s1275_s1 + $0x18] sm:$0xff]  ;;  %v472_v37 = vld [vmem:[%s1279_s5 + $0x8] sm:$0xff]  ;;  %s446_s15 = scalar_lea.vmem %s1284_s10, %s969_s12  ;;  %s453_s22 = scalar_lea.vmem %s1285_s11, %s969_s12 }
  0x10   : > { %507 = vst [vmem:[#allocation1] ss:$4 sm:$0xff] %v485_v0  ;;  %1046 = vset.pattern.permute.xlu2 %v1087_v8  ;;  %v475_v14 = vld [vmem:[%s1281_s7] sm:$0xff]  ;;  %v476_v59 = vld [vmem:[%s1281_s7 + $0x8] sm:$0xff] }
  0x11   : > { %v478_v15 = vld [vmem:[%s1283_s9] sm:$0xff]  ;;  %741 = vperm.xlu2 %1046, %v472_v37  }
  0x12   : > { %v1017_v28 = vld [vmem:[%s1278_s4] sm:$0xff] }
  0x13   : > { %v471_v43 = vld [vmem:[%s1279_s5] sm:$0xff] }
  0x17   : > { %v508_v1 = vld.sshfl [vmem:[#allocation1] sm:$0xff pattern:$0x73625140]  ;;  %v509_v2 = vld.sshfl [vmem:[#allocation1 + $0x8] sm:$0xff pattern:$0x73625140]  ;;  %588 = vperm.xlu1 %1045, %v463_v9   ;;  %598 = vperm.xlu0 %1044, %v465_v10  }
  0x18   : > { %v524_v3 = vsel %vm523_vm0, %v508_v1, 0  ;;  %v526_v4 = vsel %vm523_vm0, %v509_v2, 0  ;;  %643 = vst [vmem:[#allocation1] ss:$4 sm:$0xff] %v485_v0 }
  0x19   : > { %535 = vmatpush.bf16.msra.mxu0 %v524_v3  ;;  %564 = vmatpush.bf16.msra.mxu1 %v526_v4 }
  0x1a   : > { %736 = vperm.xlu2 %1046, %v471_v43  }
  0x1c   : > { %987 = vmatmul.msk.bf16.vlgmr.msra.gmra.mxu0 %vm510_vm1, %v1012_v5  ;;  %991 = vmatmul.msk.bf16.vlgmr.msra.gmra.mxu1 %vm510_vm1, %v1012_v5 }
  0x1f   : > { %755 = vperm.xlu0 %1044, %v474_v12   ;;  %750 = vperm.xlu1 %1045, %v473_v13   ;;  %v644_v24 = vld.sshfl [vmem:[#allocation1] sm:$0xff pattern:$0x73625140]  ;;  %v645_v25 = vld.sshfl [vmem:[#allocation1 + $0x8] sm:$0xff pattern:$0x73625140] }
  0x20   : > { %v649_v26 = vsel %vm523_vm0, %v644_v24, 0  ;;  %v651_v27 = vsel %vm523_vm0, %v645_v25, 0  ;;  %v1016_v12 = vld [vmem:[%s1277_s3] sm:$0xff] }
  0x21   : > { %660 = vmatpush.bf16.msra.mxu2 %v649_v26  ;;  %674 = vmatpush.bf16.msra.mxu3 %v651_v27 }
  0x22   : > { %769 = vperm.xlu2 %1046, %v476_v59  }
  0x24   : > { %999 = vmatmul.msk.bf16.vlgmr.msra.gmra.mxu2 %vm510_vm1, %v1017_v28  ;;  %1000 = vmatmul.msk.bf16.vlgmr.msra.gmra.mxu3 %vm510_vm1, %v1017_v28 }
  0x27   : > { %764 = vperm.xlu0 %1044, %v475_v14   ;;  %782 = vperm.xlu1 %1045, %v478_v15  }
  0x2c   : > { %988 = vmatmul.msk.bf16.gmra.mxu0 %vm510_vm1, %v1013_v11  ;;  %992 = vmatmul.msk.bf16.gmra.mxu1 %vm510_vm1, %v1013_v11 }
  0x3c   : > { %989 = vmatmul.msk.bf16.gmra.mxu0 %vm510_vm1, %v1014_v16  ;;  %993 = vmatmul.msk.bf16.gmra.mxu1 %vm510_vm1, %v1014_v16 }
  0x4c   : > { %990 = vmatmul.msk.bf16.gmra.mxu0 %vm510_vm1, %v1015_v17  ;;  %994 = vmatmul.msk.bf16.gmra.mxu1 %vm510_vm1, %v1015_v17 }
  0x81   : > { %v604_v33 = vpop.permute.xlu0 %603  ;;  %v594_v36 = vpop.permute.xlu1 %593 }
  0x89   : > { %v599_v40 = vpop.permute.xlu0 %598  ;;  %v589_v44 = vpop.permute.xlu1 %588 }
  0x91   : > { %v756_v25 = vpop.permute.xlu0 %755 }
  0x99   : > { %v1218_v18 = vpop.f32.mrf.mxu0  ;;  %v1220_v19 = vpop.f32.mrf.mxu1 }
  0xa1   : > { %v1222_v20 = vpop.f32.mrf.mxu0  ;;  %v1224_v21 = vpop.f32.mrf.mxu1 }
  0xa7   : > { %v662_v15 = vpop.f32.mrf.mxu2  ;;  %v676_v16 = vpop.f32.mrf.mxu3 }
  0xa9   : > { %v1226_v22 = vpop.f32.mrf.mxu0  ;;  %v1228_v23 = vpop.f32.mrf.mxu1 }
  0xaf   : > { %v664_v17 = vpop.f32.mrf.mxu2 }
  0xb1   : > { %v544_v29 = vpop.f32.mrf.mxu0  ;;  %v573_v30 = vpop.f32.mrf.mxu1 }
  0xb9   : > { %v547_v31 = vpop.f32.mrf.mxu0  ;;  %v576_v32 = vpop.f32.mrf.mxu1 }
  0xba   : > { %v606_v51 = vadd.f32 %v589_v44, %v547_v31  ;;  %v607_v54 = vadd.f32 %v589_v44, %v576_v32  ;;  %v751_v31 = vpop.permute.xlu1 %750 }
  0xbc   : > { %v614_v60 = vadd.f32 1e-07, %v606_v51  ;;  %v615_v61 = vadd.f32 1e-07, %v607_v54 }
  0xc1   : > { %v549_v34 = vpop.f32.mrf.mxu0  ;;  %v578_v35 = vpop.f32.mrf.mxu1 }
  0xc2   : > { %v608_v45 = vadd.f32 %v594_v36, %v549_v34  ;;  %v609_v47 = vadd.f32 %v594_v36, %v578_v35 }
  0xc4   : > { %v616_v55 = vadd.f32 1e-07, %v608_v45  ;;  %v617_v58 = vadd.f32 1e-07, %v609_v47 }
  0xc9   : > { %v552_v38 = vpop.f32.mrf.mxu0  ;;  %v581_v39 = vpop.f32.mrf.mxu1 }
  0xca   : > { %v610_v41 = vadd.f32 %v599_v40, %v552_v38  ;;  %v611_v42 = vadd.f32 %v599_v40, %v581_v39  ;;  %v765_v38 = vpop.permute.xlu0 %764 }
  0xcc   : > { %v618_v46 = vadd.f32 1e-07, %v610_v41  ;;  %v619_v48 = vadd.f32 1e-07, %v611_v42 }
  0xce   : > { %1047 = vrcp.f32 %v618_v46 }
  0xcf   : > { %1049 = vrcp.f32 %v619_v48  ;;  %v477_v48 = vld [vmem:[%s1282_s8] sm:$0xf] }
  0xd1   : > { %v554_v49 = vpop.f32.mrf.mxu0  ;;  %v583_v50 = vpop.f32.mrf.mxu1 }
  0xd2   : > { %v612_v52 = vadd.f32 %v604_v33, %v554_v49  ;;  %v613_v53 = vadd.f32 %v604_v33, %v583_v50  ;;  %v783_v50 = vpop.permute.xlu1 %782 }
  0xd4   : > { %v620_v56 = vadd.f32 1e-07, %v612_v52  ;;  %v621_v57 = vadd.f32 1e-07, %v613_v53  ;;  %v1048_v62 = vpop.eup %1047 }
  0xd5   : > { %v1050_v63 = vpop.eup %1049  ;;  %v634_v6 = vmul.f32 %v1048_v62, %v1226_v22 }
  0xd6   : > { %1051 = vrcp.f32 %v620_v56  ;;  %v635_v8 = vmul.f32 %v1050_v63, %v1228_v23 }
  0xd7   : > { %1053 = vrcp.f32 %v621_v57 }
  0xd8   : > { %1055 = vrcp.f32 %v616_v55 }
  0xd9   : > { %1057 = vrcp.f32 %v617_v58 }
  0xda   : > { %1059 = vrcp.f32 %v614_v60 }
  0xdb   : > { %1061 = vrcp.f32 %v615_v61 }
  0xdc   : > { %v1052_v0 = vpop.eup %1051 }
  0xdd   : > { %v1054_v1 = vpop.eup %1053  ;;  %v636_v2 = vmul.f32 %v1052_v0, %v544_v29 }
  0xde   : > { %v1056_v3 = vpop.eup %1055  ;;  %v637_v4 = vmul.f32 %v1054_v1, %v573_v30 }
  0xdf   : > { %v1058_v5 = vpop.eup %1057  ;;  %702 = vmatpush.msrb.mxu2 %v636_v2  ;;  %v632_v10 = vmul.f32 %v1056_v3, %v1222_v20  ;;  %v678_v20 = vpop.f32.mrf.mxu3 }
  0xe0   : > { %v1060_v7 = vpop.eup %1059  ;;  %724 = vmatpush.msrb.mxu3 %v637_v4  ;;  %v633_v11 = vmul.f32 %v1058_v5, %v1224_v21  ;;  %v742_v21 = vpop.permute.xlu2 %741 }
  0xe1   : > { %v1062_v9 = vpop.eup %1061  ;;  %703 = vmatpush.msrb.mxu2 %v634_v6  ;;  %v630_v13 = vmul.f32 %v1060_v7, %v1218_v18 }
  0xe2   : > { %725 = vmatpush.msrb.mxu3 %v635_v8  ;;  %v631_v14 = vmul.f32 %v1062_v9, %v1220_v19 }
  0xe3   : > { %704 = vmatpush.msrb.mxu2 %v632_v10 }
  0xe4   : > { %726 = vmatpush.msrb.mxu3 %v633_v11 }
  0xe5   : > { %705 = vmatpush.msrb.mxu2 %v630_v13 }
  0xe6   : > { %727 = vmatpush.msrb.mxu3 %v631_v14  ;;  %1005 = vmatmul.msk.bf16.vlgmr.msrb.gmra.mxu2 %vm686_vm2, %v1016_v12 }
  0xe7   : > { %1006 = vmatmul.msk.bf16.vlgmr.msrb.gmra.mxu3 %vm686_vm2, %v1016_v12 }
  0xe8   : > { %v737_v26 = vpop.permute.xlu2 %736 }
  0xf0   : > { %v770_v39 = vpop.permute.xlu2 %769 }
 0x169   : > { %v707_v22 = vpop.f32.mrf.mxu2 }
 0x16a   : > { %v729_v23 = vpop.f32.mrf.mxu3  ;;  %v708_v24 = vadd.f32 %v707_v22, %v662_v15 }
 0x16b   : > { %v730_v27 = vadd.f32 %v729_v23, %v676_v16 }
 0x16c   : > { %v744_v18 = vadd.f32 %v737_v26, %v708_v24 }
 0x16d   : > { %v745_v28 = vadd.f32 %v737_v26, %v730_v27 }
 0x16e   : > { %v758_v33 = vmul.f32 %v751_v31, %v744_v18 }
 0x16f   : > { %v759_v35 = vmul.f32 %v751_v31, %v745_v28 }
 0x170   : > { %v772_v42 = vadd.f32 %v765_v38, %v758_v33 }
 0x171   : > { %v709_v29 = vpop.f32.mrf.mxu2  ;;  %v773_v44 = vadd.f32 %v765_v38, %v759_v35 }
 0x172   : > { %v710_v30 = vadd.f32 %v709_v29, %v664_v17  ;;  %v731_v19 = vpop.f32.mrf.mxu3  ;;  %v776_v47 = vmax.f32 %v772_v42, 0.0 }
 0x173   : > { %v732_v32 = vadd.f32 %v731_v19, %v678_v20  ;;  %v777_v49 = vmax.f32 %v773_v44, 0.0 }
 0x174   : > { %v746_v34 = vadd.f32 %v742_v21, %v710_v30 }
 0x175   : > { %v747_v36 = vadd.f32 %v742_v21, %v732_v32 }
 0x176   : > { %v760_v37 = vmul.f32 %v756_v25, %v746_v34 }
 0x177   : > { %v761_v40 = vmul.f32 %v756_v25, %v747_v36 }
 0x178   : > { %v774_v41 = vadd.f32 %v770_v39, %v760_v37 }
 0x179   : > { %v775_v43 = vadd.f32 %v770_v39, %v761_v40 }
 0x17a   : > { %v778_v45 = vmax.f32 %v774_v41, 0.0 }
 0x17b   : > { %v779_v46 = vmax.f32 %v775_v43, 0.0 }
 0x17c   : > { %803 = vmatpush.msra.mxu2 %v778_v45 }
 0x17d   : > { %824 = vmatpush.msra.mxu3 %v779_v46 }
 0x17e   : > { %804 = vmatpush.msra.mxu2 %v776_v47 }
 0x17f   : > { %825 = vmatpush.msra.mxu3 %v777_v49  ;;  %1007 = vmatmul.msk.bf16.vlgmr.msra.gmra.mxu2 %vm785_vm3, %v477_v48 }
 0x180   : > { %1008 = vmatmul.msk.bf16.vlgmr.msra.gmra.mxu3 %vm785_vm3, %v477_v48 }
 0x202   : > { %v806_v51 = vpop.f32.mrf.mxu2 }
 0x203   : > { %v807_v52 = vadd.f32 %v806_v51, %v783_v50  ;;  %v827_v53 = vpop.f32.mrf.mxu3 }
 0x204   : > { %v828_v54 = vadd.f32 %v827_v53, %v783_v50 }
 0x205   : > { %v831_v55 = vmul.f32 %v807_v52, %v807_v52 }
 0x206   : > { %v832_v56 = vadd.f32 %v828_v54, %v807_v52  ;;  %v833_v57 = vmul.f32 %v828_v54, %v828_v54 }
 0x208   : > { %v834_v58 = vadd.f32 %v833_v57, %v831_v55  ;;  %837 = vst [vmem:[%s446_s15] sm:$0xff] %v832_v56 }
 0x20a   : > { %v808_v59 = vpop.f32.mrf.mxu2  ;;  %840 = vst [vmem:[%s453_s22] sm:$0xff] %v834_v58 }
 0x20b   : > { %v829_v60 = vpop.f32.mrf.mxu3 }
 0x20c PF: > { %s22_s19 = sadd.s32 1, %s1085_s19   ;;  %s1286_s17 = smov %s1081_s18 }
 0x20d   : > { %p19_p5 = scmp.ge.s32.totalorder %s22_s19, 4   ;;  %s1287_s18 = smov %s1289_s20 }
 0x20f   :  { %21 = sbr.rel (!%p19_p5) target bundleno = 2 (0x2), region = 106 }

// kernel: cheaplab_forward.9
= control target key start
LH: loop header
LB: loop body
LE: loop exit
PB: predicated region body
PF: predicated region fallthrough
CT: control target
= control target key end

     0   :  { %s1349_s18 = smov 0   ;;  %s1351_s19 = smov 0   ;;  %s1487_s0 = inlined_call_operand.vmem [shape: bf16[2,4,256], index: 0, kind: input, shape index: {}]   ;;  %s1488_s1 = inlined_call_operand.vmem [shape: bf16[64,4], index: 1, kind: input, shape index: {}]   ;;  %s1489_s2 = inlined_call_operand.vmem [shape: f32[32,1], index: 2, kind: input, shape index: {}]   ;;  %s1490_s3 = inlined_call_operand.vmem [shape: bf16[16,32], index: 3, kind: input, shape index: {}]   ;;  %s1491_s4 = inlined_call_operand.vmem [shape: bf16[16,4], index: 4, kind: input, shape index: {}]   ;;  %s1492_s5 = inlined_call_operand.vmem [shape: f32[16,1], index: 5, kind: input, shape index: {}]   ;;  %s1493_s6 = inlined_call_operand.vmem [shape: f32[16,1], index: 6, kind: input, shape index: {}]   ;;  %s1494_s7 = inlined_call_operand.vmem [shape: f32[16,1], index: 7, kind: input, shape index: {}]   ;;  %s1495_s8 = inlined_call_operand.vmem [shape: bf16[8,16], index: 8, kind: input, shape index: {}]   ;;  %s1496_s9 = inlined_call_operand.vmem [shape: f32[8,1], index: 9, kind: input, shape index: {}]   ;;  %s1497_s10 = inlined_call_operand.vmem [shape: f32[8,1], index: 10, kind: input, shape index: {}]   ;;  %s1498_s11 = inlined_call_operand.vmem [shape: f32[8,1], index: 11, kind: input, shape index: {}]   ;;  %s1499_s12 = inlined_call_operand.vmem [shape: bf16[8,8], index: 12, kind: input, shape index: {}]   ;;  %s1500_s13 = inlined_call_operand.vmem [shape: f32[8,1], index: 13, kind: input, shape index: {}]   ;;  %s1501_s14 = inlined_call_operand.vmem [shape: f32[2,1,8,128], index: 14, kind: output, shape index: {0}]   ;;  %s1502_s15 = inlined_call_operand.vmem [shape: f32[2,1,8,128], index: 15, kind: output, shape index: {1}]  }
   0x1   :  { %s1353_s20 = smov 0  }
   0x2 LB: > { %s45_s21 = sadd.s32 1, %s1262_s19  ;;  %p1145_p0 = scmp.ge.s32.totalorder %s1266_s20, 1  ;;  %s1266_s20 = sphi %s1353_s20, %s26_s20   ;;  %s1262_s19 = sphi %s1351_s19, %s1504_s19   ;;  %s1258_s18 = sphi %s1349_s18, %s1503_s18  }
   0x3   : > { %p47_p1 = scmp.ge.s32.totalorder %s45_s21, 2  ;;  %p474_p2 = scmp.lt.s32.totalorder %s1266_s20, 3 }
   0x5   : > { %s1506_s21 = smov (%p47_p1, %s45_s21), 0  ;;  %p475_p3 = pnand %p1145_p0, %p474_p2 }
   0x6   : > { %p538_p4 = scmp.lt.s32.totalorder (!%p475_p3), %s1258_s18, 1 }
   0x7   : > { %478 = sbr.rel (%p475_p3) target bundleno = 665 (0x299), region = 76 }
   0xc   : > { %s1508_s18 = smov (!%p538_p4, %s1258_s18), 1  ;;  %v574_v0 = vld [vmem:[%s1489_s2 + $0x18] sm:$0xff]  ;;  %v1268_v1 = vmov 0   ;;  %vm635_vm0 = vcmask 1041408   ;;  %v1193_v7 = vld [vmem:[%s1488_s1] sm:$0xff]  ;;  %vm622_vm1 = vcmask 31744  }
   0xd   : > { %s1192_s24 = sshll.u32 %s1508_s18, 2  ;;  %1225 = vset.pattern.permute.xlu0 %v1268_v1  ;;  %1226 = vset.pattern.permute.xlu1 %v1268_v1  ;;  %v572_v8 = vld [vmem:[%s1489_s2 + $0x8] sm:$0xff]  ;;  %v573_v9 = vld [vmem:[%s1489_s2 + $0x10] sm:$0xff]  ;;  %v571_v10 = vld [vmem:[%s1489_s2] sm:$0xff]  ;;  %vm798_vm2 = vcmask 261120   ;;  %vm897_vm3 = vcmask 130048  }
   0xe   : > { %s545_s27 = scalar_lea.vmem %s1487_s0, %s1192_s24  ;;  %715 = vperm.xlu0 %1225, %v574_v0   ;;  %1227 = vset.pattern.permute.xlu2 %v1268_v1  ;;  %v582_v11 = vld [vmem:[%s1493_s6 + $0x8] sm:$0xff]  ;;  %v581_v13 = vld [vmem:[%s1493_s6] sm:$0xff]  ;;  %v1195_v17 = vld [vmem:[%s1488_s1 + $0x10] sm:$0xff]  ;;  %vm964_vm4 = vcmask 64512   ;;  %s1148_s26 = sshll.u32 %s1508_s18, 3 }
   0xf   : > { %v597_v2 = vld [vmem:[%s545_s27] sm:$0xf]  ;;  %705 = vperm.xlu1 %1226, %v572_v8   ;;  %v1194_v12 = vld [vmem:[%s1488_s1 + $0x8] sm:$0xff]  ;;  %v1196_v19 = vld [vmem:[%s1488_s1 + $0x18] sm:$0xff]  ;;  %s554_s29 = scalar_lea.vmem %s1501_s14, %s1148_s26  ;;  %s561_s17 = scalar_lea.vmem %s1502_s15, %s1148_s26 }
  0x10   : > { %619 = vst [vmem:[#allocation1] ss:$4 sm:$0xff] %v597_v2  ;;  %v583_v14 = vld [vmem:[%s1494_s7] sm:$0xff]  ;;  %v580_v39 = vld [vmem:[%s1492_s5 + $0x8] sm:$0xff] }
  0x11   : > { %v586_v15 = vld [vmem:[%s1496_s9] sm:$0xff]  ;;  %853 = vperm.xlu2 %1227, %v580_v39   ;;  %v584_v61 = vld [vmem:[%s1494_s7 + $0x8] sm:$0xff] }
  0x12   : > { %v588_v16 = vld [vmem:[%s1498_s11] sm:$0xff] }
  0x13   : > { %v590_v18 = vld [vmem:[%s1500_s13] sm:$0xff] }
  0x14   : > { %v1198_v30 = vld [vmem:[%s1491_s4] sm:$0xff] }
  0x15   : > { %v579_v45 = vld [vmem:[%s1492_s5] sm:$0xff] }
  0x16   : > { %710 = vperm.xlu0 %1225, %v573_v9  }
  0x17   : > { %v620_v3 = vld.sshfl [vmem:[#allocation1] sm:$0xff pattern:$0x73625140]  ;;  %v621_v4 = vld.sshfl [vmem:[#allocation1 + $0x8] sm:$0xff pattern:$0x73625140]  ;;  %700 = vperm.xlu1 %1226, %v571_v10  }
  0x18   : > { %v636_v5 = vsel %vm635_vm0, %v620_v3, 0  ;;  %v638_v6 = vsel %vm635_vm0, %v621_v4, 0  ;;  %755 = vst [vmem:[#allocation1] ss:$4 sm:$0xff] %v597_v2 }
  0x19   : > { %647 = vmatpush.bf16.msra.mxu0 %v636_v5  ;;  %676 = vmatpush.bf16.msra.mxu1 %v638_v6  ;;  %v587_v5 = vld [vmem:[%s1497_s10] sm:$0xff] }
  0x1a   : > { %848 = vperm.xlu2 %1227, %v579_v45  }
  0x1c   : > { %1166 = vmatmul.msk.bf16.vlgmr.msra.gmra.mxu0 %vm622_vm1, %v1193_v7  ;;  %1170 = vmatmul.msk.bf16.vlgmr.msra.gmra.mxu1 %vm622_vm1, %v1193_v7 }
  0x1e   : > { %867 = vperm.xlu0 %1225, %v582_v11  }
  0x1f   : > { %862 = vperm.xlu1 %1226, %v581_v13   ;;  %v756_v26 = vld.sshfl [vmem:[#allocation1] sm:$0xff pattern:$0x73625140]  ;;  %v757_v27 = vld.sshfl [vmem:[#allocation1 + $0x8] sm:$0xff pattern:$0x73625140] }
  0x20   : > { %v761_v28 = vsel %vm635_vm0, %v756_v26, 0  ;;  %v763_v29 = vsel %vm635_vm0, %v757_v27, 0 }
  0x21   : > { %772 = vmatpush.bf16.msra.mxu2 %v761_v28  ;;  %786 = vmatpush.bf16.msra.mxu3 %v763_v29 }
  0x22   : > { %881 = vperm.xlu2 %1227, %v584_v61  }
  0x24   : > { %1178 = vmatmul.msk.bf16.vlgmr.msra.gmra.mxu2 %vm622_vm1, %v1198_v30  ;;  %1179 = vmatmul.msk.bf16.vlgmr.msra.gmra.mxu3 %vm622_vm1, %v1198_v30 }
  0x26   : > { %876 = vperm.xlu0 %1225, %v583_v14  }
  0x27   : > { %894 = vperm.xlu1 %1226, %v586_v15   ;;  %v1197_v15 = vld [vmem:[%s1490_s3] sm:$0xff] }
  0x2a   : > { %945 = vperm.xlu2 %1227, %v587_v5  }
  0x2c   : > { %1167 = vmatmul.msk.bf16.gmra.mxu0 %vm622_vm1, %v1194_v12  ;;  %1171 = vmatmul.msk.bf16.gmra.mxu1 %vm622_vm1, %v1194_v12 }
  0x2e   : > { %952 = vperm.xlu0 %1225, %v588_v16  }
  0x2f   : > { %961 = vperm.xlu1 %1226, %v590_v18  }
  0x3c   : > { %1168 = vmatmul.msk.bf16.gmra.mxu0 %vm622_vm1, %v1195_v17  ;;  %1172 = vmatmul.msk.bf16.gmra.mxu1 %vm622_vm1, %v1195_v17 }
  0x4c   : > { %1169 = vmatmul.msk.bf16.gmra.mxu0 %vm622_vm1, %v1196_v19  ;;  %1173 = vmatmul.msk.bf16.gmra.mxu1 %vm622_vm1, %v1196_v19 }
  0x80   : > { %v716_v35 = vpop.permute.xlu0 %715 }
  0x81   : > { %v706_v38 = vpop.permute.xlu1 %705 }
  0x88   : > { %v711_v42 = vpop.permute.xlu0 %710 }
  0x89   : > { %v701_v46 = vpop.permute.xlu1 %700 }
  0x90   : > { %v868_v28 = vpop.permute.xlu0 %867 }
  0x99   : > { %v1425_v20 = vpop.f32.mrf.mxu0  ;;  %v1427_v21 = vpop.f32.mrf.mxu1 }
  0xa1   : > { %v1429_v22 = vpop.f32.mrf.mxu0  ;;  %v1431_v23 = vpop.f32.mrf.mxu1 }
  0xa7   : > { %v774_v18 = vpop.f32.mrf.mxu2  ;;  %v788_v19 = vpop.f32.mrf.mxu3 }
  0xa9   : > { %v1433_v24 = vpop.f32.mrf.mxu0  ;;  %v1435_v25 = vpop.f32.mrf.mxu1 }
  0xb1   : > { %v656_v31 = vpop.f32.mrf.mxu0  ;;  %v685_v32 = vpop.f32.mrf.mxu1 }
  0xb9   : > { %v659_v33 = vpop.f32.mrf.mxu0  ;;  %v688_v34 = vpop.f32.mrf.mxu1 }
  0xba   : > { %v718_v53 = vadd.f32 %v701_v46, %v659_v33  ;;  %v719_v56 = vadd.f32 %v701_v46, %v688_v34  ;;  %v863_v34 = vpop.permute.xlu1 %862 }
  0xbc   : > { %v726_v62 = vadd.f32 1e-07, %v718_v53  ;;  %v727_v63 = vadd.f32 1e-07, %v719_v56 }
  0xc1   : > { %v661_v36 = vpop.f32.mrf.mxu0  ;;  %v690_v37 = vpop.f32.mrf.mxu1 }
  0xc2   : > { %v720_v47 = vadd.f32 %v706_v38, %v661_v36  ;;  %v721_v49 = vadd.f32 %v706_v38, %v690_v37  ;;  %v895_v53 = vpop.permute.xlu1 %894 }
  0xc4   : > { %v728_v57 = vadd.f32 1e-07, %v720_v47  ;;  %v729_v60 = vadd.f32 1e-07, %v721_v49 }
  0xc9   : > { %v664_v40 = vpop.f32.mrf.mxu0  ;;  %v693_v41 = vpop.f32.mrf.mxu1 }
  0xca   : > { %v722_v43 = vadd.f32 %v711_v42, %v664_v40  ;;  %v723_v44 = vadd.f32 %v711_v42, %v693_v41  ;;  %v877_v41 = vpop.permute.xlu0 %876  ;;  %v962_v5 = vpop.permute.xlu1 %961 }
  0xcc   : > { %v730_v48 = vadd.f32 1e-07, %v722_v43  ;;  %v731_v50 = vadd.f32 1e-07, %v723_v44 }
  0xce   : > { %1228 = vrcp.f32 %v730_v48 }
  0xcf   : > { %1230 = vrcp.f32 %v731_v50 }
  0xd1   : > { %v666_v51 = vpop.f32.mrf.mxu0  ;;  %v695_v52 = vpop.f32.mrf.mxu1 }
  0xd2   : > { %v724_v54 = vadd.f32 %v716_v35, %v666_v51  ;;  %v725_v55 = vadd.f32 %v716_v35, %v695_v52  ;;  %v585_v51 = vld [vmem:[%s1495_s8] sm:$0xf] }
  0xd4   : > { %v732_v58 = vadd.f32 1e-07, %v724_v54  ;;  %v733_v59 = vadd.f32 1e-07, %v725_v55  ;;  %v1229_v0 = vpop.eup %1228 }
  0xd5   : > { %v1231_v1 = vpop.eup %1230  ;;  %v746_v9 = vmul.f32 %v1229_v0, %v1433_v24  ;;  %v790_v24 = vpop.f32.mrf.mxu3 }
  0xd6   : > { %1232 = vrcp.f32 %v732_v58  ;;  %v747_v11 = vmul.f32 %v1231_v1, %v1435_v25  ;;  %v589_v1 = vld [vmem:[%s1499_s12] sm:$0xf] }
  0xd7   : > { %1234 = vrcp.f32 %v733_v59 }
  0xd8   : > { %1236 = vrcp.f32 %v728_v57 }
  0xd9   : > { %1238 = vrcp.f32 %v729_v60  ;;  %v953_v60 = vpop.permute.xlu0 %952 }
  0xda   : > { %1240 = vrcp.f32 %v726_v62 }
  0xdb   : > { %1242 = vrcp.f32 %v727_v63 }
  0xdc   : > { %v1233_v2 = vpop.eup %1232 }
  0xdd   : > { %v1235_v3 = vpop.eup %1234  ;;  %v748_v4 = vmul.f32 %v1233_v2, %v656_v31 }
  0xde   : > { %v1237_v6 = vpop.eup %1236  ;;  %v749_v7 = vmul.f32 %v1235_v3, %v685_v32 }
  0xdf   : > { %v1239_v8 = vpop.eup %1238  ;;  %814 = vmatpush.msrb.mxu2 %v748_v4  ;;  %v744_v13 = vmul.f32 %v1237_v6, %v1429_v22  ;;  %v776_v22 = vpop.f32.mrf.mxu2 }
  0xe0   : > { %v1241_v10 = vpop.eup %1240  ;;  %836 = vmatpush.msrb.mxu3 %v749_v7  ;;  %v745_v14 = vmul.f32 %v1239_v8, %v1431_v23  ;;  %v854_v23 = vpop.permute.xlu2 %853 }
  0xe1   : > { %v1243_v12 = vpop.eup %1242  ;;  %815 = vmatpush.msrb.mxu2 %v746_v9  ;;  %v742_v16 = vmul.f32 %v1241_v10, %v1425_v20 }
  0xe2   : > { %837 = vmatpush.msrb.mxu3 %v747_v11  ;;  %v743_v17 = vmul.f32 %v1243_v12, %v1427_v21 }
  0xe3   : > { %816 = vmatpush.msrb.mxu2 %v744_v13 }
  0xe4   : > { %838 = vmatpush.msrb.mxu3 %v745_v14 }
  0xe5   : > { %817 = vmatpush.msrb.mxu2 %v742_v16 }
  0xe6   : > { %839 = vmatpush.msrb.mxu3 %v743_v17  ;;  %1184 = vmatmul.msk.bf16.vlgmr.msrb.gmra.mxu2 %vm798_vm2, %v1197_v15 }
  0xe7   : > { %1185 = vmatmul.msk.bf16.vlgmr.msrb.gmra.mxu3 %vm798_vm2, %v1197_v15 }
  0xe8   : > { %v849_v29 = vpop.permute.xlu2 %848 }
  0xf0   : > { %v882_v42 = vpop.permute.xlu2 %881 }
  0xf8   : > { %v946_v57 = vpop.permute.xlu2 %945 }
 0x169   : > { %v819_v25 = vpop.f32.mrf.mxu2 }
 0x16a   : > { %v841_v26 = vpop.f32.mrf.mxu3  ;;  %v820_v27 = vadd.f32 %v819_v25, %v774_v18 }
 0x16b   : > { %v842_v30 = vadd.f32 %v841_v26, %v788_v19 }
 0x16c   : > { %v856_v20 = vadd.f32 %v849_v29, %v820_v27 }
 0x16d   : > { %v857_v31 = vadd.f32 %v849_v29, %v842_v30 }
 0x16e   : > { %v870_v36 = vmul.f32 %v863_v34, %v856_v20 }
 0x16f   : > { %v871_v38 = vmul.f32 %v863_v34, %v857_v31 }
 0x170   : > { %v884_v45 = vadd.f32 %v877_v41, %v870_v36 }
 0x171   : > { %v821_v32 = vpop.f32.mrf.mxu2  ;;  %v885_v47 = vadd.f32 %v877_v41, %v871_v38 }
 0x172   : > { %v822_v33 = vadd.f32 %v821_v32, %v776_v22  ;;  %v843_v21 = vpop.f32.mrf.mxu3  ;;  %v888_v50 = vmax.f32 %v884_v45, 0.0 }
 0x173   : > { %v844_v35 = vadd.f32 %v843_v21, %v790_v24  ;;  %v889_v52 = vmax.f32 %v885_v47, 0.0 }
 0x174   : > { %v858_v37 = vadd.f32 %v854_v23, %v822_v33 }
 0x175   : > { %v859_v39 = vadd.f32 %v854_v23, %v844_v35 }
 0x176   : > { %v872_v40 = vmul.f32 %v868_v28, %v858_v37 }
 0x177   : > { %v873_v43 = vmul.f32 %v868_v28, %v859_v39 }
 0x178   : > { %v886_v44 = vadd.f32 %v882_v42, %v872_v40 }
 0x179   : > { %v887_v46 = vadd.f32 %v882_v42, %v873_v43 }
 0x17a   : > { %v890_v48 = vmax.f32 %v886_v44, 0.0 }
 0x17b   : > { %v891_v49 = vmax.f32 %v887_v46, 0.0 }
 0x17c   : > { %915 = vmatpush.msra.mxu2 %v890_v48 }
 0x17d   : > { %936 = vmatpush.msra.mxu3 %v891_v49 }
 0x17e   : > { %916 = vmatpush.msra.mxu2 %v888_v50 }
 0x17f   : > { %937 = vmatpush.msra.mxu3 %v889_v52  ;;  %1186 = vmatmul.msk.bf16.vlgmr.msra.gmra.mxu2 %vm897_vm3, %v585_v51 }
 0x180   : > { %1187 = vmatmul.msk.bf16.vlgmr.msra.gmra.mxu3 %vm897_vm3, %v585_v51 }
 0x202   : > { %v918_v54 = vpop.f32.mrf.mxu2 }
 0x203   : > { %v919_v55 = vadd.f32 %v918_v54, %v895_v53  ;;  %v939_v56 = vpop.f32.mrf.mxu3 }
 0x204   : > { %v940_v58 = vadd.f32 %v939_v56, %v895_v53 }
 0x205   : > { %v948_v59 = vmul.f32 %v946_v57, %v919_v55 }
 0x206   : > { %v949_v61 = vmul.f32 %v946_v57, %v940_v58 }
 0x207   : > { %v955_v62 = vadd.f32 %v953_v60, %v948_v59 }
 0x208   : > { %v956_v63 = vadd.f32 %v953_v60, %v949_v61 }
 0x209   : > { %v957_v0 = vmax.f32 %v955_v62, 0.0 }
 0x20a   : > { %v958_v2 = vmax.f32 %v956_v63, 0.0  ;;  %v920_v3 = vpop.f32.mrf.mxu2 }
 0x20b   : > { %v941_v4 = vpop.f32.mrf.mxu3  ;;  %983 = vmatpush.msrb.mxu2 %v957_v0 }
 0x20c   : > { %1004 = vmatpush.msrb.mxu3 %v958_v2  ;;  %1188 = vmatmul.msk.bf16.vlgmr.msrb.gmra.mxu2 %vm964_vm4, %v589_v1 }
 0x20d   : > { %1189 = vmatmul.msk.bf16.vlgmr.msrb.gmra.mxu3 %vm964_vm4, %v589_v1 }
 0x28f   : > { %v985_v6 = vpop.f32.mrf.mxu2 }
 0x290   : > { %v986_v7 = vadd.f32 %v985_v6, %v962_v5  ;;  %v1006_v8 = vpop.f32.mrf.mxu3 }
 0x291   : > { %v1007_v9 = vadd.f32 %v1006_v8, %v962_v5 }
 0x292   : > { %v1010_v10 = vmul.f32 %v986_v7, %v986_v7 }
 0x293   : > { %v1011_v11 = vadd.f32 %v1007_v9, %v986_v7  ;;  %v1012_v12 = vmul.f32 %v1007_v9, %v1007_v9 }
 0x295   : > { %v1013_v13 = vadd.f32 %v1012_v12, %v1010_v10  ;;  %1016 = vst [vmem:[%s554_s29] sm:$0xff] %v1011_v11 }
 0x297   : > { %v987_v14 = vpop.f32.mrf.mxu2  ;;  %1019 = vst [vmem:[%s561_s17] sm:$0xff] %v1013_v13 }
 0x298   : > { %v1008_v15 = vpop.f32.mrf.mxu3 }
 0x299 PF: > { %s26_s20 = sadd.s32 1, %s1266_s20   ;;  %s1503_s18 = smov %s1262_s19 }
 0x29a   : > { %p23_p5 = scmp.ge.s32.totalorder %s26_s20, 4   ;;  %s1504_s19 = smov %s1506_s21 }
 0x29c   :  { %25 = sbr.rel (!%p23_p5) target bundleno = 2 (0x2), region = 122 }

// kernel: cheaplab_forward.10
= control target key start
LH: loop header
LB: loop body
LE: loop exit
PB: predicated region body
PF: predicated region fallthrough
CT: control target
= control target key end

     0   :  { %s1551_s30 = smov 0   ;;  %s1553_s20 = smov 0   ;;  %s1703_s0 = inlined_call_operand.vmem [shape: bf16[2,4,256], index: 0, kind: input, shape index: {}]   ;;  %s1704_s1 = inlined_call_operand.vmem [shape: bf16[64,4], index: 1, kind: input, shape index: {}]   ;;  %s1705_s2 = inlined_call_operand.vmem [shape: f32[32,1], index: 2, kind: input, shape index: {}]   ;;  %s1706_s3 = inlined_call_operand.vmem [shape: bf16[16,32], index: 3, kind: input, shape index: {}]   ;;  %s1707_s4 = inlined_call_operand.vmem [shape: bf16[16,4], index: 4, kind: input, shape index: {}]   ;;  %s1708_s5 = inlined_call_operand.vmem [shape: f32[16,1], index: 5, kind: input, shape index: {}]   ;;  %s1709_s6 = inlined_call_operand.vmem [shape: f32[16,1], index: 6, kind: input, shape index: {}]   ;;  %s1710_s7 = inlined_call_operand.vmem [shape: f32[16,1], index: 7, kind: input, shape index: {}]   ;;  %s1711_s8 = inlined_call_operand.vmem [shape: bf16[8,16], index: 8, kind: input, shape index: {}]   ;;  %s1712_s9 = inlined_call_operand.vmem [shape: f32[8,1], index: 9, kind: input, shape index: {}]   ;;  %s1713_s10 = inlined_call_operand.vmem [shape: f32[8,1], index: 10, kind: input, shape index: {}]   ;;  %s1714_s11 = inlined_call_operand.vmem [shape: f32[8,1], index: 11, kind: input, shape index: {}]   ;;  %s1715_s12 = inlined_call_operand.vmem [shape: bf16[8,8], index: 12, kind: input, shape index: {}]   ;;  %s1716_s13 = inlined_call_operand.vmem [shape: f32[8,1], index: 13, kind: input, shape index: {}]   ;;  %s1717_s14 = inlined_call_operand.vmem [shape: f32[8,1], index: 14, kind: input, shape index: {}]   ;;  %s1718_s15 = inlined_call_operand.vmem [shape: f32[8,1], index: 15, kind: input, shape index: {}]   ;;  %s1719_s16 = inlined_call_operand.vmem [shape: bf16[8,8], index: 16, kind: input, shape index: {}]   ;;  %s1720_s17 = inlined_call_operand.vmem [shape: f32[8,1], index: 17, kind: input, shape index: {}]   ;;  %s1721_s18 = inlined_call_operand.vmem [shape: f32[2,1,8,128], index: 18, kind: output, shape index: {0}]   ;;  %s1722_s19 = inlined_call_operand.vmem [shape: f32[2,1,8,128], index: 19, kind: output, shape index: {1}]  }
   0x1   :  { %1725 = sst [smem:[#allocation3_spill]] %s1703_s0  ;;  %s1549_s0 = smov 0  }
   0x2   :  { %1726 = sst [smem:[#allocation4_spill]] %s1704_s1 }
   0x3   :  { %1727 = sst [smem:[#allocation5_spill]] %s1705_s2 }
   0x4   :  { %1728 = sst [smem:[#allocation6_spill]] %s1706_s3 }
   0x5 LB: > { %s49_s21 = sadd.s32 1, %s1442_s30  ;;  %p1323_p0 = scmp.ge.s32.totalorder %s1446_s20, 1  ;;  %s1446_s20 = sphi %s1553_s20, %s30_s20   ;;  %s1442_s30 = sphi %s1551_s30, %s1736_s30   ;;  %s1438_s0 = sphi %s1549_s0, %s1735_s0  }
   0x6   : > { %p51_p1 = scmp.ge.s32.totalorder %s49_s21, 2  ;;  %p574_p2 = scmp.lt.s32.totalorder %s1446_s20, 3 }
   0x8   : > { %s1738_s21 = smov (%p51_p1, %s49_s21), 0  ;;  %p575_p3 = pnand %p1323_p0, %p574_p2 }
   0x9   : > { %1729 = sst [smem:[#allocation2_spill]] %s1738_s21  ;;  %p646_p4 = scmp.lt.s32.totalorder (!%p575_p3), %s1438_s0, 1 }
   0xa   : > { %578 = sbr.rel (%p575_p3) target bundleno = 803 (0x323), region = 92  ;;  %s1730_s2 = sld [smem:[#allocation5_spill]] (!%p575_p3) }
   0xb   : > { %s1731_s27 = sld [smem:[#allocation3_spill]] (!%p575_p3) }
   0xc   : > { %s1732_s24 = sld [smem:[#allocation4_spill]] (!%p575_p3) }
   0xd   : > { %s1733_s21 = sld [smem:[#allocation6_spill]] (!%p575_p3) }
   0xf   : > { %s1740_s0 = smov (!%p646_p4, %s1438_s0), 1  ;;  %v1448_v2 = vmov 0   ;;  %vm747_vm0 = vcmask 1041408   ;;  %vm734_vm1 = vcmask 31744   ;;  %v690_v11 = vld [vmem:[%s1709_s6 + $0x8] sm:$0xff]  ;;  %v689_v12 = vld [vmem:[%s1709_s6] sm:$0xff] }
  0x10   : > { %v682_v0 = vld [vmem:[%s1730_s2 + $0x18] sm:$0xff]  ;;  %v680_v1 = vld [vmem:[%s1730_s2 + $0x8] sm:$0xff]  ;;  %s1372_s25 = sshll.u32 %s1740_s0, 2  ;;  %1405 = vset.pattern.permute.xlu0 %v1448_v2  ;;  %1406 = vset.pattern.permute.xlu1 %v1448_v2  ;;  %v681_v4 = vld [vmem:[%s1730_s2 + $0x10] sm:$0xff]  ;;  %vm910_vm2 = vcmask 261120   ;;  %vm1009_vm3 = vcmask 130048  }
  0x11   : > { %s653_s28 = scalar_lea.vmem %s1731_s27, %s1372_s25  ;;  %827 = vperm.xlu0 %1405, %v682_v0   ;;  %817 = vperm.xlu1 %1406, %v680_v1   ;;  %v679_v10 = vld [vmem:[%s1730_s2] sm:$0xff]  ;;  %v688_v41 = vld [vmem:[%s1708_s5 + $0x8] sm:$0xff]  ;;  %vm1076_vm4 = vcmask 64512   ;;  %s1326_s29 = sshll.u32 %s1740_s0, 3 }
  0x12   : > { %v709_v3 = vld [vmem:[%s653_s28] sm:$0xf]  ;;  %1407 = vset.pattern.permute.xlu2 %v1448_v2  ;;  %v1374_v14 = vld [vmem:[%s1732_s24 + $0x8] sm:$0xff]  ;;  %v1375_v19 = vld [vmem:[%s1732_s24 + $0x10] sm:$0xff]  ;;  %s662_s22 = scalar_lea.vmem %s1721_s18, %s1326_s29  ;;  %s669_s3 = scalar_lea.vmem %s1722_s19, %s1326_s29 }
  0x13   : > { %731 = vst [vmem:[#allocation1] ss:$4 sm:$0xff] %v709_v3  ;;  %v1373_v9 = vld [vmem:[%s1732_s24] sm:$0xff]  ;;  %v1376_v21 = vld [vmem:[%s1732_s24 + $0x18] sm:$0xff]  ;;  %965 = vperm.xlu2 %1407, %v688_v41   ;;  %v692_v63 = vld [vmem:[%s1710_s7 + $0x8] sm:$0xff] }
  0x14   : > { %v691_v13 = vld [vmem:[%s1710_s7] sm:$0xff] }
  0x15   : > { %v694_v15 = vld [vmem:[%s1712_s9] sm:$0xff] }
  0x16   : > { %v696_v16 = vld [vmem:[%s1714_s11] sm:$0xff] }
  0x17   : > { %v698_v17 = vld [vmem:[%s1716_s13] sm:$0xff] }
  0x18   : > { %v700_v18 = vld [vmem:[%s1718_s15] sm:$0xff] }
  0x19   : > { %822 = vperm.xlu0 %1405, %v681_v4   ;;  %812 = vperm.xlu1 %1406, %v679_v10   ;;  %v702_v20 = vld [vmem:[%s1720_s17] sm:$0xff] }
  0x1a   : > { %v732_v5 = vld.sshfl [vmem:[#allocation1] sm:$0xff pattern:$0x73625140]  ;;  %v733_v6 = vld.sshfl [vmem:[#allocation1 + $0x8] sm:$0xff pattern:$0x73625140] }
  0x1b   : > { %v748_v7 = vsel %vm747_vm0, %v732_v5, 0  ;;  %v750_v8 = vsel %vm747_vm0, %v733_v6, 0  ;;  %867 = vst [vmem:[#allocation1] ss:$4 sm:$0xff] %v709_v3  ;;  %v1378_v32 = vld [vmem:[%s1707_s4] sm:$0xff] }
  0x1c   : > { %759 = vmatpush.bf16.msra.mxu0 %v748_v7  ;;  %788 = vmatpush.bf16.msra.mxu1 %v750_v8  ;;  %v687_v47 = vld [vmem:[%s1708_s5] sm:$0xff] }
  0x1d   : > { %960 = vperm.xlu2 %1407, %v687_v47   ;;  %v695_v7 = vld [vmem:[%s1713_s10] sm:$0xff] }
  0x1f   : > { %1344 = vmatmul.msk.bf16.vlgmr.msra.gmra.mxu0 %vm734_vm1, %v1373_v9  ;;  %1348 = vmatmul.msk.bf16.vlgmr.msra.gmra.mxu1 %vm734_vm1, %v1373_v9 }
  0x21   : > { %979 = vperm.xlu0 %1405, %v690_v11   ;;  %974 = vperm.xlu1 %1406, %v689_v12  }
  0x22   : > { %v868_v28 = vld.sshfl [vmem:[#allocation1] sm:$0xff pattern:$0x73625140]  ;;  %v869_v29 = vld.sshfl [vmem:[#allocation1 + $0x8] sm:$0xff pattern:$0x73625140] }
  0x23   : > { %v873_v30 = vsel %vm747_vm0, %v868_v28, 0  ;;  %v875_v31 = vsel %vm747_vm0, %v869_v29, 0 }
  0x24   : > { %884 = vmatpush.bf16.msra.mxu2 %v873_v30  ;;  %898 = vmatpush.bf16.msra.mxu3 %v875_v31 }
  0x25   : > { %993 = vperm.xlu2 %1407, %v692_v63  }
  0x27   : > { %1356 = vmatmul.msk.bf16.vlgmr.msra.gmra.mxu2 %vm734_vm1, %v1378_v32  ;;  %1357 = vmatmul.msk.bf16.vlgmr.msra.gmra.mxu3 %vm734_vm1, %v1378_v32 }
  0x29   : > { %988 = vperm.xlu0 %1405, %v691_v13   ;;  %1006 = vperm.xlu1 %1406, %v694_v15  }
  0x2d   : > { %1057 = vperm.xlu2 %1407, %v695_v7  }
  0x2f   : > { %1345 = vmatmul.msk.bf16.gmra.mxu0 %vm734_vm1, %v1374_v14  ;;  %1349 = vmatmul.msk.bf16.gmra.mxu1 %vm734_vm1, %v1374_v14 }
  0x31   : > { %1064 = vperm.xlu0 %1405, %v696_v16   ;;  %1073 = vperm.xlu1 %1406, %v698_v17   ;;  %v1377_v17 = vld [vmem:[%s1733_s21] sm:$0xff] }
  0x39   : > { %1131 = vperm.xlu0 %1405, %v700_v18   ;;  %1140 = vperm.xlu1 %1406, %v702_v20   ;;  %v699_v20 = vld [vmem:[%s1717_s14] sm:$0xff] }
  0x3a   : > { %1124 = vperm.xlu2 %1407, %v699_v20   ;;  %v701_v20 = vld [vmem:[%s1719_s16] sm:$0xf] }
  0x3f   : > { %1346 = vmatmul.msk.bf16.gmra.mxu0 %vm734_vm1, %v1375_v19  ;;  %1350 = vmatmul.msk.bf16.gmra.mxu1 %vm734_vm1, %v1375_v19 }
  0x4f   : > { %1347 = vmatmul.msk.bf16.gmra.mxu0 %vm734_vm1, %v1376_v21  ;;  %1351 = vmatmul.msk.bf16.gmra.mxu1 %vm734_vm1, %v1376_v21 }
  0x83   : > { %v828_v37 = vpop.permute.xlu0 %827  ;;  %v818_v40 = vpop.permute.xlu1 %817 }
  0x8b   : > { %v823_v44 = vpop.permute.xlu0 %822  ;;  %v813_v48 = vpop.permute.xlu1 %812 }
  0x93   : > { %v980_v30 = vpop.permute.xlu0 %979 }
  0x9c   : > { %v1631_v22 = vpop.f32.mrf.mxu0  ;;  %v1633_v23 = vpop.f32.mrf.mxu1 }
  0xa4   : > { %v1635_v24 = vpop.f32.mrf.mxu0  ;;  %v1637_v25 = vpop.f32.mrf.mxu1 }
  0xaa   : > { %v886_v21 = vpop.f32.mrf.mxu2 }
  0xac   : > { %v1639_v26 = vpop.f32.mrf.mxu0  ;;  %v1641_v27 = vpop.f32.mrf.mxu1 }
  0xb4   : > { %v768_v33 = vpop.f32.mrf.mxu0  ;;  %v797_v34 = vpop.f32.mrf.mxu1 }
  0xbc   : > { %v771_v35 = vpop.f32.mrf.mxu0  ;;  %v800_v36 = vpop.f32.mrf.mxu1 }
  0xbd   : > { %v830_v55 = vadd.f32 %v813_v48, %v771_v35  ;;  %v831_v58 = vadd.f32 %v813_v48, %v800_v36 }
  0xbf   : > { %v838_v0 = vadd.f32 1e-07, %v830_v55  ;;  %v839_v1 = vadd.f32 1e-07, %v831_v58 }
  0xc4   : > { %v773_v38 = vpop.f32.mrf.mxu0  ;;  %v802_v39 = vpop.f32.mrf.mxu1 }
  0xc5   : > { %v832_v49 = vadd.f32 %v818_v40, %v773_v38  ;;  %v833_v51 = vadd.f32 %v818_v40, %v802_v39 }
  0xc7   : > { %v840_v59 = vadd.f32 1e-07, %v832_v49  ;;  %v841_v62 = vadd.f32 1e-07, %v833_v51 }
  0xcc   : > { %v776_v42 = vpop.f32.mrf.mxu0  ;;  %v805_v43 = vpop.f32.mrf.mxu1 }
  0xcd   : > { %v834_v45 = vadd.f32 %v823_v44, %v776_v42  ;;  %v835_v46 = vadd.f32 %v823_v44, %v805_v43  ;;  %v989_v44 = vpop.permute.xlu0 %988 }
  0xcf   : > { %v842_v50 = vadd.f32 1e-07, %v834_v45  ;;  %v843_v52 = vadd.f32 1e-07, %v835_v46 }
  0xd1   : > { %1408 = vrcp.f32 %v842_v50 }
  0xd2   : > { %1410 = vrcp.f32 %v843_v52 }
  0xd4   : > { %v778_v53 = vpop.f32.mrf.mxu0  ;;  %v807_v54 = vpop.f32.mrf.mxu1 }
  0xd5   : > { %v836_v56 = vadd.f32 %v828_v37, %v778_v53  ;;  %v837_v57 = vadd.f32 %v828_v37, %v807_v54  ;;  %v975_v37 = vpop.permute.xlu1 %974  ;;  %v693_v54 = vld [vmem:[%s1711_s8] sm:$0xf]  ;;  %v1065_v63 = vpop.permute.xlu0 %1064 }
  0xd7   : > { %v844_v60 = vadd.f32 1e-07, %v836_v56  ;;  %v845_v61 = vadd.f32 1e-07, %v837_v57  ;;  %v1409_v2 = vpop.eup %1408 }
  0xd8   : > { %v1411_v3 = vpop.eup %1410  ;;  %v858_v11 = vmul.f32 %v1409_v2, %v1639_v26 }
  0xd9   : > { %1412 = vrcp.f32 %v844_v60  ;;  %v859_v13 = vmul.f32 %v1411_v3, %v1641_v27  ;;  %v966_v27 = vpop.permute.xlu2 %965 }
  0xda   : > { %1414 = vrcp.f32 %v845_v61 }
  0xdb   : > { %1416 = vrcp.f32 %v840_v59 }
  0xdc   : > { %1418 = vrcp.f32 %v841_v62 }
  0xdd   : > { %1420 = vrcp.f32 %v838_v0  ;;  %v1007_v56 = vpop.permute.xlu1 %1006 }
  0xde   : > { %1422 = vrcp.f32 %v839_v1 }
  0xdf   : > { %v1413_v4 = vpop.eup %1412 }
  0xe0   : > { %v1415_v5 = vpop.eup %1414  ;;  %v860_v6 = vmul.f32 %v1413_v4, %v768_v33  ;;  %v697_v4 = vld [vmem:[%s1715_s12] sm:$0xf] }
  0xe1   : > { %v1417_v8 = vpop.eup %1416  ;;  %v861_v9 = vmul.f32 %v1415_v5, %v797_v34  ;;  %v961_v31 = vpop.permute.xlu2 %960 }
  0xe2   : > { %v1419_v10 = vpop.eup %1418  ;;  %926 = vmatpush.msrb.mxu2 %v860_v6  ;;  %v856_v15 = vmul.f32 %v1417_v8, %v1635_v24  ;;  %v900_v24 = vpop.f32.mrf.mxu3 }
  0xe3   : > { %v1421_v12 = vpop.eup %1420  ;;  %948 = vmatpush.msrb.mxu3 %v861_v9  ;;  %v857_v16 = vmul.f32 %v1419_v10, %v1637_v25  ;;  %v888_v25 = vpop.f32.mrf.mxu2 }
  0xe4   : > { %v1423_v14 = vpop.eup %1422  ;;  %927 = vmatpush.msrb.mxu2 %v858_v11  ;;  %v854_v18 = vmul.f32 %v1421_v12, %v1631_v22 }
  0xe5   : > { %949 = vmatpush.msrb.mxu3 %v859_v13  ;;  %v855_v19 = vmul.f32 %v1423_v14, %v1633_v23  ;;  %v1074_v8 = vpop.permute.xlu1 %1073 }
  0xe6   : > { %928 = vmatpush.msrb.mxu2 %v856_v15  ;;  %v1132_v15 = vpop.permute.xlu0 %1131 }
  0xe7   : > { %950 = vmatpush.msrb.mxu3 %v857_v16 }
  0xe8   : > { %929 = vmatpush.msrb.mxu2 %v854_v18 }
  0xe9   : > { %951 = vmatpush.msrb.mxu3 %v855_v19  ;;  %1362 = vmatmul.msk.bf16.vlgmr.msrb.gmra.mxu2 %vm910_vm2, %v1377_v17  ;;  %v994_v45 = vpop.permute.xlu2 %993 }
  0xea   : > { %1363 = vmatmul.msk.bf16.vlgmr.msrb.gmra.mxu3 %vm910_vm2, %v1377_v17  ;;  %v902_v26 = vpop.f32.mrf.mxu3 }
  0xf1   : > { %v1058_v60 = vpop.permute.xlu2 %1057 }
  0xf9   : > { %v1125_v12 = vpop.permute.xlu2 %1124 }
 0x16c   : > { %v931_v28 = vpop.f32.mrf.mxu2 }
 0x16d   : > { %v953_v22 = vpop.f32.mrf.mxu3  ;;  %v932_v29 = vadd.f32 %v931_v28, %v886_v21 }
 0x16e   : > { %v954_v23 = vadd.f32 %v953_v22, %v900_v24 }
 0x16f   : > { %v968_v32 = vadd.f32 %v961_v31, %v932_v29 }
 0x170   : > { %v969_v33 = vadd.f32 %v961_v31, %v954_v23 }
 0x171   : > { %v982_v39 = vmul.f32 %v975_v37, %v968_v32 }
 0x172   : > { %v983_v41 = vmul.f32 %v975_v37, %v969_v33 }
 0x173   : > { %v996_v48 = vadd.f32 %v989_v44, %v982_v39 }
 0x174   : > { %v933_v34 = vpop.f32.mrf.mxu2  ;;  %v997_v50 = vadd.f32 %v989_v44, %v983_v41 }
 0x175   : > { %v934_v35 = vadd.f32 %v933_v34, %v888_v25  ;;  %v955_v36 = vpop.f32.mrf.mxu3  ;;  %v1000_v53 = vmax.f32 %v996_v48, 0.0 }
 0x176   : > { %v956_v38 = vadd.f32 %v955_v36, %v902_v26  ;;  %v1001_v55 = vmax.f32 %v997_v50, 0.0  ;;  %v1141_v26 = vpop.permute.xlu1 %1140 }
 0x177   : > { %v970_v40 = vadd.f32 %v966_v27, %v934_v35 }
 0x178   : > { %v971_v42 = vadd.f32 %v966_v27, %v956_v38 }
 0x179   : > { %v984_v43 = vmul.f32 %v980_v30, %v970_v40 }
 0x17a   : > { %v985_v46 = vmul.f32 %v980_v30, %v971_v42 }
 0x17b   : > { %v998_v47 = vadd.f32 %v994_v45, %v984_v43 }
 0x17c   : > { %v999_v49 = vadd.f32 %v994_v45, %v985_v46 }
 0x17d   : > { %v1002_v51 = vmax.f32 %v998_v47, 0.0 }
 0x17e   : > { %v1003_v52 = vmax.f32 %v999_v49, 0.0 }
 0x17f   : > { %1027 = vmatpush.msra.mxu2 %v1002_v51 }
 0x180   : > { %1048 = vmatpush.msra.mxu3 %v1003_v52 }
 0x181   : > { %1028 = vmatpush.msra.mxu2 %v1000_v53 }
 0x182   : > { %1049 = vmatpush.msra.mxu3 %v1001_v55  ;;  %1364 = vmatmul.msk.bf16.vlgmr.msra.gmra.mxu2 %vm1009_vm3, %v693_v54 }
 0x183   : > { %1365 = vmatmul.msk.bf16.vlgmr.msra.gmra.mxu3 %vm1009_vm3, %v693_v54 }
 0x205   : > { %v1030_v57 = vpop.f32.mrf.mxu2 }
 0x206   : > { %v1031_v58 = vadd.f32 %v1030_v57, %v1007_v56  ;;  %v1051_v59 = vpop.f32.mrf.mxu3 }
 0x207   : > { %v1052_v61 = vadd.f32 %v1051_v59, %v1007_v56 }
 0x208   : > { %v1060_v62 = vmul.f32 %v1058_v60, %v1031_v58 }
 0x209   : > { %v1061_v0 = vmul.f32 %v1058_v60, %v1052_v61 }
 0x20a   : > { %v1067_v1 = vadd.f32 %v1065_v63, %v1060_v62 }
 0x20b   : > { %v1068_v2 = vadd.f32 %v1065_v63, %v1061_v0 }
 0x20c   : > { %v1069_v3 = vmax.f32 %v1067_v1, 0.0 }
 0x20d   : > { %v1070_v5 = vmax.f32 %v1068_v2, 0.0  ;;  %v1032_v6 = vpop.f32.mrf.mxu2 }
 0x20e   : > { %v1053_v7 = vpop.f32.mrf.mxu3  ;;  %1095 = vmatpush.msrb.mxu2 %v1069_v3 }
 0x20f   : > { %1116 = vmatpush.msrb.mxu3 %v1070_v5  ;;  %1366 = vmatmul.msk.bf16.vlgmr.msrb.gmra.mxu2 %vm1076_vm4, %v697_v4 }
 0x210   : > { %1367 = vmatmul.msk.bf16.vlgmr.msrb.gmra.mxu3 %vm1076_vm4, %v697_v4 }
 0x292   : > { %v1097_v9 = vpop.f32.mrf.mxu2 }
 0x293   : > { %v1098_v10 = vadd.f32 %v1097_v9, %v1074_v8  ;;  %v1118_v11 = vpop.f32.mrf.mxu3 }
 0x294   : > { %v1119_v13 = vadd.f32 %v1118_v11, %v1074_v8 }
 0x295   : > { %v1127_v14 = vmul.f32 %v1125_v12, %v1098_v10 }
 0x296   : > { %v1128_v16 = vmul.f32 %v1125_v12, %v1119_v13 }
 0x297   : > { %v1134_v17 = vadd.f32 %v1132_v15, %v1127_v14 }
 0x298   : > { %v1135_v18 = vadd.f32 %v1132_v15, %v1128_v16 }
 0x299   : > { %v1136_v19 = vmax.f32 %v1134_v17, 0.0 }
 0x29a   : > { %v1099_v21 = vpop.f32.mrf.mxu2  ;;  %v1137_v24 = vmax.f32 %v1135_v18, 0.0 }
 0x29b   : > { %v1120_v25 = vpop.f32.mrf.mxu3  ;;  %1161 = vmatpush.msrb.mxu0 %v1136_v19 }
 0x29c   : > { %1182 = vmatpush.msrb.mxu1 %v1137_v24  ;;  %1368 = vmatmul.msk.bf16.vlgmr.msrb.gmra.mxu0 %vm1076_vm4, %v701_v20 }
 0x29d   : > { %1369 = vmatmul.msk.bf16.vlgmr.msrb.gmra.mxu1 %vm1076_vm4, %v701_v20 }
 0x319   : > { %v1163_v27 = vpop.f32.mrf.mxu0 }
 0x31a   : > { %v1164_v28 = vadd.f32 %v1163_v27, %v1141_v26  ;;  %v1184_v22 = vpop.f32.mrf.mxu1 }
 0x31b   : > { %v1185_v29 = vadd.f32 %v1184_v22, %v1141_v26 }
 0x31c   : > { %v1188_v30 = vmul.f32 %v1164_v28, %v1164_v28 }
 0x31d   : > { %v1189_v31 = vadd.f32 %v1185_v29, %v1164_v28  ;;  %v1190_v23 = vmul.f32 %v1185_v29, %v1185_v29 }
 0x31f   : > { %v1191_v32 = vadd.f32 %v1190_v23, %v1188_v30  ;;  %1194 = vst [vmem:[%s662_s22] sm:$0xff] %v1189_v31 }
 0x321   : > { %v1165_v33 = vpop.f32.mrf.mxu0  ;;  %1197 = vst [vmem:[%s669_s3] sm:$0xff] %v1191_v32 }
 0x322   : > { %v1186_v34 = vpop.f32.mrf.mxu1 }
 0x323 PF: > { %s30_s20 = sadd.s32 1, %s1446_s20   ;;  %s1734_s26 = sld [smem:[#allocation2_spill]] }
 0x324   : > { %p27_p5 = scmp.ge.s32.totalorder %s30_s20, 4   ;;  %s1735_s0 = smov %s1442_s30 }
 0x326   :  { %29 = sbr.rel (!%p27_p5) target bundleno = 5 (0x5), region = 138 }
 0x329   : > { %s1736_s30 = smov %s1734_s26 }

// kernel: cheaplab_forward.11
= control target key start
LH: loop header
LB: loop body
LE: loop exit
PB: predicated region body
PF: predicated region fallthrough
CT: control target
= control target key end

     0   :  { %s1672_s28 = smov 0   ;;  %s1674_s29 = smov 0   ;;  %s1839_s0 = inlined_call_operand.vmem [shape: bf16[2,4,256], index: 0, kind: input, shape index: {}]   ;;  %s1840_s1 = inlined_call_operand.vmem [shape: bf16[64,4], index: 1, kind: input, shape index: {}]   ;;  %s1841_s2 = inlined_call_operand.vmem [shape: f32[32,1], index: 2, kind: input, shape index: {}]   ;;  %s1842_s3 = inlined_call_operand.vmem [shape: bf16[16,32], index: 3, kind: input, shape index: {}]   ;;  %s1843_s4 = inlined_call_operand.vmem [shape: bf16[16,4], index: 4, kind: input, shape index: {}]   ;;  %s1844_s5 = inlined_call_operand.vmem [shape: f32[16,1], index: 5, kind: input, shape index: {}]   ;;  %s1845_s6 = inlined_call_operand.vmem [shape: f32[16,1], index: 6, kind: input, shape index: {}]   ;;  %s1846_s7 = inlined_call_operand.vmem [shape: f32[16,1], index: 7, kind: input, shape index: {}]   ;;  %s1847_s8 = inlined_call_operand.vmem [shape: bf16[8,16], index: 8, kind: input, shape index: {}]   ;;  %s1848_s9 = inlined_call_operand.vmem [shape: f32[8,1], index: 9, kind: input, shape index: {}]   ;;  %s1849_s10 = inlined_call_operand.vmem [shape: f32[8,1], index: 10, kind: input, shape index: {}]   ;;  %s1850_s11 = inlined_call_operand.vmem [shape: f32[8,1], index: 11, kind: input, shape index: {}]   ;;  %s1851_s12 = inlined_call_operand.vmem [shape: bf16[8,8], index: 12, kind: input, shape index: {}]   ;;  %s1852_s13 = inlined_call_operand.vmem [shape: f32[8,1], index: 13, kind: input, shape index: {}]   ;;  %s1853_s14 = inlined_call_operand.vmem [shape: f32[8,1], index: 14, kind: input, shape index: {}]   ;;  %s1854_s15 = inlined_call_operand.vmem [shape: f32[8,1], index: 15, kind: input, shape index: {}]   ;;  %s1855_s16 = inlined_call_operand.vmem [shape: bf16[8,8], index: 16, kind: input, shape index: {}]   ;;  %s1856_s17 = inlined_call_operand.vmem [shape: f32[8,1], index: 17, kind: input, shape index: {}]   ;;  %s1857_s18 = inlined_call_operand.vmem [shape: f32[8,1], index: 18, kind: input, shape index: {}]   ;;  %s1858_s19 = inlined_call_operand.vmem [shape: f32[8,1], index: 19, kind: input, shape index: {}]   ;;  %s1859_s20 = inlined_call_operand.vmem [shape: bf16[8,8], index: 20, kind: input, shape index: {}]   ;;  %s1860_s21 = inlined_call_operand.vmem [shape: f32[8,1], index: 21, kind: input, shape index: {}]   ;;  %s1861_s22 = inlined_call_operand.vmem [shape: f32[2,2,256], index: 22, kind: output, shape index: {}]  }
   0x1   :  { %1868 = sst [smem:[#allocation3_spill]] %s1839_s0 }
   0x2   :  { %1869 = sst [smem:[#allocation4_spill]] %s1840_s1 }
   0x3   :  { %1870 = sst [smem:[#allocation5_spill]] %s1841_s2 }
   0x4   :  { %1871 = sst [smem:[#allocation6_spill]] %s1842_s3  ;;  %s1670_s3 = smov 0  }
   0x5   :  { %1872 = sst [smem:[#allocation7_spill]] %s1843_s4 }
   0x6   :  { %1873 = sst [smem:[#allocation8_spill]] %s1844_s5 }
   0x7   :  { %1874 = sst [smem:[#allocation9_spill]] %s1845_s6 }
   0x8 LB: > { %s51_s30 = sadd.s32 1, %s1548_s28  ;;  %p1427_p0 = scmp.ge.s32.totalorder %s1552_s29, 1  ;;  %s1552_s29 = sphi %s1674_s29, %s32_s29   ;;  %s1548_s28 = sphi %s1672_s28, %s1886_s28   ;;  %s1544_s3 = sphi %s1670_s3, %s1885_s3  }
   0x9   : > { %p53_p1 = scmp.ge.s32.totalorder %s51_s30, 2  ;;  %p646_p2 = scmp.lt.s32.totalorder %s1552_s29, 3 }
   0xb   : > { %s1888_s30 = smov (%p53_p1, %s51_s30), 0  ;;  %p647_p3 = pnand %p1427_p0, %p646_p2 }
   0xc   : > { %1875 = sst [smem:[#allocation2_spill]] %s1888_s30  ;;  %p720_p4 = scmp.lt.s32.totalorder (!%p647_p3), %s1544_s3, 1 }
   0xd   : > { %650 = sbr.rel (%p647_p3) target bundleno = 947 (0x3b3), region = 108  ;;  %s1876_s23 = sld [smem:[#allocation5_spill]] (!%p647_p3) }
   0xe   : > { %s1877_s26 = sld [smem:[#allocation3_spill]] (!%p647_p3) }
   0xf   : > { %s1878_s6 = sld [smem:[#allocation4_spill]] (!%p647_p3) }
  0x10   : > { %s1882_s25 = sld [smem:[#allocation6_spill]] (!%p647_p3) }
  0x12   : > { %v1554_v1 = vmov 0   ;;  %s1890_s3 = smov (!%p720_p4, %s1544_s3), 1  ;;  %vm817_vm0 = vcmask 1041408   ;;  %vm804_vm1 = vcmask 31744   ;;  %v763_v13 = vld [vmem:[%s1846_s7] sm:$0xff]  ;;  %v764_v60 = vld [vmem:[%s1846_s7 + $0x8] sm:$0xff] }
  0x13   : > { %v754_v0 = vld [vmem:[%s1876_s23 + $0x18] sm:$0xff]  ;;  %1511 = vset.pattern.permute.xlu0 %v1554_v1  ;;  %1512 = vset.pattern.permute.xlu1 %v1554_v1  ;;  %v752_v2 = vld [vmem:[%s1876_s23 + $0x8] sm:$0xff]  ;;  %s1866_s24 = sshll.u32 %s1890_s3, 2  ;;  %v753_v4 = vld [vmem:[%s1876_s23 + $0x10] sm:$0xff]  ;;  %vm980_vm2 = vcmask 261120   ;;  %vm1079_vm3 = vcmask 130048  }
  0x14   : > { %897 = vperm.xlu0 %1511, %v754_v0   ;;  %1513 = vset.pattern.permute.xlu2 %v1554_v1  ;;  %s727_s2 = scalar_lea.vmem %s1877_s26, %s1866_s24  ;;  %v751_v5 = vld [vmem:[%s1876_s23] sm:$0xff]  ;;  %s1880_s23 = sld [smem:[#allocation7_spill]]  ;;  %vm1146_vm4 = vcmask 64512  }
  0x15   : > { %887 = vperm.xlu1 %1512, %v752_v2   ;;  %v779_v3 = vld [vmem:[%s727_s2] sm:$0xf]  ;;  %s1879_s2 = sld [smem:[#allocation9_spill]]  ;;  %v1481_v15 = vld [vmem:[%s1878_s6 + $0x8] sm:$0xff]  ;;  %v1482_v20 = vld [vmem:[%s1878_s6 + $0x10] sm:$0xff]  ;;  %s1883_s0 = sshll.u32 %s1890_s3, 2 }
  0x16   : > { %801 = vst [vmem:[#allocation1] ss:$4 sm:$0xff] %v779_v3  ;;  %v1480_v10 = vld [vmem:[%s1878_s6] sm:$0xff]  ;;  %v1483_v23 = vld [vmem:[%s1878_s6 + $0x18] sm:$0xff]  ;;  %s1881_s26 = sld [smem:[#allocation8_spill]] }
  0x17   : > { %v766_v14 = vld [vmem:[%s1848_s9] sm:$0xff] }
  0x18   : > { %v768_v16 = vld [vmem:[%s1850_s11] sm:$0xff] }
  0x19   : > { %v770_v17 = vld [vmem:[%s1852_s13] sm:$0xff] }
  0x1a   : > { %v772_v18 = vld [vmem:[%s1854_s15] sm:$0xff] }
  0x1b   : > { %v762_v11 = vld [vmem:[%s1879_s2 + $0x8] sm:$0xff]  ;;  %v761_v12 = vld [vmem:[%s1879_s2] sm:$0xff] }
  0x1c   : > { %892 = vperm.xlu0 %1511, %v753_v4   ;;  %v774_v19 = vld [vmem:[%s1856_s17] sm:$0xff]  ;;  %v760_v42 = vld [vmem:[%s1881_s26 + $0x8] sm:$0xff] }
  0x1d   : > { %882 = vperm.xlu1 %1512, %v751_v5   ;;  %v802_v6 = vld.sshfl [vmem:[#allocation1] sm:$0xff pattern:$0x73625140]  ;;  %v803_v7 = vld.sshfl [vmem:[#allocation1 + $0x8] sm:$0xff pattern:$0x73625140]  ;;  %1035 = vperm.xlu2 %1513, %v760_v42  }
  0x1e   : > { %v818_v8 = vsel %vm817_vm0, %v802_v6, 0  ;;  %v820_v9 = vsel %vm817_vm0, %v803_v7, 0  ;;  %937 = vst [vmem:[#allocation1] ss:$4 sm:$0xff] %v779_v3  ;;  %v776_v21 = vld [vmem:[%s1858_s19] sm:$0xff] }
  0x1f   : > { %829 = vmatpush.bf16.msra.mxu0 %v818_v8  ;;  %858 = vmatpush.bf16.msra.mxu1 %v820_v9  ;;  %v778_v22 = vld [vmem:[%s1860_s21] sm:$0xff] }
  0x20   : > { %v1485_v34 = vld [vmem:[%s1880_s23] sm:$0xff]  ;;  %s739_s23 = scalar_lea.vmem %s1861_s22, %s1883_s0 }
  0x21   : > { %v759_v46 = vld [vmem:[%s1881_s26] sm:$0xff] }
  0x22   : > { %1448 = vmatmul.msk.bf16.vlgmr.msra.gmra.mxu0 %vm804_vm1, %v1480_v10  ;;  %1452 = vmatmul.msk.bf16.vlgmr.msra.gmra.mxu1 %vm804_vm1, %v1480_v10  ;;  %v767_v5 = vld [vmem:[%s1849_s10] sm:$0xff] }
  0x24   : > { %1049 = vperm.xlu0 %1511, %v762_v11  }
  0x25   : > { %1044 = vperm.xlu1 %1512, %v761_v12   ;;  %v938_v30 = vld.sshfl [vmem:[#allocation1] sm:$0xff pattern:$0x73625140]  ;;  %v939_v31 = vld.sshfl [vmem:[#allocation1 + $0x8] sm:$0xff pattern:$0x73625140]  ;;  %1030 = vperm.xlu2 %1513, %v759_v46  }
  0x26   : > { %v943_v32 = vsel %vm817_vm0, %v938_v30, 0  ;;  %v945_v33 = vsel %vm817_vm0, %v939_v31, 0 }
  0x27   : > { %954 = vmatpush.bf16.msra.mxu2 %v943_v32  ;;  %968 = vmatpush.bf16.msra.mxu3 %v945_v33 }
  0x2a   : > { %1460 = vmatmul.msk.bf16.vlgmr.msra.gmra.mxu2 %vm804_vm1, %v1485_v34  ;;  %1461 = vmatmul.msk.bf16.vlgmr.msra.gmra.mxu3 %vm804_vm1, %v1485_v34 }
  0x2c   : > { %1058 = vperm.xlu0 %1511, %v763_v13  }
  0x2d   : > { %1076 = vperm.xlu1 %1512, %v766_v14   ;;  %1063 = vperm.xlu2 %1513, %v764_v60  }
  0x32   : > { %1449 = vmatmul.msk.bf16.gmra.mxu0 %vm804_vm1, %v1481_v15  ;;  %1453 = vmatmul.msk.bf16.gmra.mxu1 %vm804_vm1, %v1481_v15 }
  0x34   : > { %1134 = vperm.xlu0 %1511, %v768_v16  }
  0x35   : > { %1143 = vperm.xlu1 %1512, %v770_v17   ;;  %1127 = vperm.xlu2 %1513, %v767_v5  }
  0x3c   : > { %1201 = vperm.xlu0 %1511, %v772_v18  }
  0x3d   : > { %1210 = vperm.xlu1 %1512, %v774_v19   ;;  %v1484_v19 = vld [vmem:[%s1882_s25] sm:$0xff] }
  0x42   : > { %1450 = vmatmul.msk.bf16.gmra.mxu0 %vm804_vm1, %v1482_v20  ;;  %1454 = vmatmul.msk.bf16.gmra.mxu1 %vm804_vm1, %v1482_v20  ;;  %v771_v20 = vld [vmem:[%s1853_s14] sm:$0xff] }
  0x43   : > { %1194 = vperm.xlu2 %1513, %v771_v20  }
  0x44   : > { %1267 = vperm.xlu0 %1511, %v776_v21  }
  0x45   : > { %1276 = vperm.xlu1 %1512, %v778_v22  }
  0x52   : > { %1451 = vmatmul.msk.bf16.gmra.mxu0 %vm804_vm1, %v1483_v23  ;;  %1455 = vmatmul.msk.bf16.gmra.mxu1 %vm804_vm1, %v1483_v23  ;;  %v775_v23 = vld [vmem:[%s1857_s18] sm:$0xff] }
  0x53   : > { %1260 = vperm.xlu2 %1513, %v775_v23   ;;  %v773_v23 = vld [vmem:[%s1855_s16] sm:$0xf] }
  0x77   : > { %v1036_v30 = vpop.permute.xlu2 %1035 }
  0x86   : > { %v898_v39 = vpop.permute.xlu0 %897 }
  0x87   : > { %v888_v43 = vpop.permute.xlu1 %887 }
  0x8e   : > { %v893_v47 = vpop.permute.xlu0 %892 }
  0x8f   : > { %v883_v50 = vpop.permute.xlu1 %882 }
  0x96   : > { %v1050_v33 = vpop.permute.xlu0 %1049 }
  0x9f   : > { %v1760_v24 = vpop.f32.mrf.mxu0  ;;  %v1762_v25 = vpop.f32.mrf.mxu1 }
  0xa7   : > { %v1764_v26 = vpop.f32.mrf.mxu0  ;;  %v1766_v27 = vpop.f32.mrf.mxu1 }
  0xaf   : > { %v1768_v28 = vpop.f32.mrf.mxu0  ;;  %v1770_v29 = vpop.f32.mrf.mxu1 }
  0xb7   : > { %v838_v35 = vpop.f32.mrf.mxu0  ;;  %v867_v36 = vpop.f32.mrf.mxu1 }
  0xbf   : > { %v841_v37 = vpop.f32.mrf.mxu0  ;;  %v870_v38 = vpop.f32.mrf.mxu1 }
  0xc0   : > { %v900_v57 = vadd.f32 %v883_v50, %v841_v37  ;;  %v901_v61 = vadd.f32 %v883_v50, %v870_v38 }
  0xc2   : > { %v908_v2 = vadd.f32 1e-07, %v900_v57  ;;  %v909_v3 = vadd.f32 1e-07, %v901_v61  ;;  %v765_v57 = vld [vmem:[%s1847_s8] sm:$0xf] }
  0xc7   : > { %v843_v40 = vpop.f32.mrf.mxu0  ;;  %v872_v41 = vpop.f32.mrf.mxu1 }
  0xc8   : > { %v902_v51 = vadd.f32 %v888_v43, %v843_v40  ;;  %v903_v53 = vadd.f32 %v888_v43, %v872_v41  ;;  %v1045_v40 = vpop.permute.xlu1 %1044 }
  0xca   : > { %v910_v62 = vadd.f32 1e-07, %v902_v51  ;;  %v911_v1 = vadd.f32 1e-07, %v903_v53 }
  0xcf   : > { %v846_v44 = vpop.f32.mrf.mxu0  ;;  %v875_v45 = vpop.f32.mrf.mxu1 }
  0xd0   : > { %v904_v48 = vadd.f32 %v893_v47, %v846_v44  ;;  %v905_v49 = vadd.f32 %v893_v47, %v875_v45  ;;  %v1059_v47 = vpop.permute.xlu0 %1058 }
  0xd2   : > { %v912_v52 = vadd.f32 1e-07, %v904_v48  ;;  %v913_v54 = vadd.f32 1e-07, %v905_v49 }
  0xd4   : > { %1514 = vrcp.f32 %v912_v52 }
  0xd5   : > { %1516 = vrcp.f32 %v913_v54 }
  0xd7   : > { %v848_v55 = vpop.f32.mrf.mxu0  ;;  %v877_v56 = vpop.f32.mrf.mxu1 }
  0xd8   : > { %v906_v58 = vadd.f32 %v898_v39, %v848_v55  ;;  %v907_v59 = vadd.f32 %v898_v39, %v877_v56 }
  0xda   : > { %v914_v63 = vadd.f32 1e-07, %v906_v58  ;;  %v915_v0 = vadd.f32 1e-07, %v907_v59  ;;  %v1515_v4 = vpop.eup %1514  ;;  %v1077_v59 = vpop.permute.xlu1 %1076 }
  0xdb   : > { %v1517_v6 = vpop.eup %1516  ;;  %v928_v13 = vmul.f32 %v1515_v4, %v1768_v28 }
  0xdc   : > { %1518 = vrcp.f32 %v914_v63  ;;  %v929_v15 = vmul.f32 %v1517_v6, %v1770_v29 }
  0xdd   : > { %1520 = vrcp.f32 %v915_v0 }
  0xde   : > { %1522 = vrcp.f32 %v910_v62 }
  0xdf   : > { %1524 = vrcp.f32 %v911_v1 }
  0xe0   : > { %1526 = vrcp.f32 %v908_v2  ;;  %v1135_v2 = vpop.permute.xlu0 %1134 }
  0xe1   : > { %1528 = vrcp.f32 %v909_v3 }
  0xe2   : > { %v1519_v7 = vpop.eup %1518 }
  0xe3   : > { %v1521_v8 = vpop.eup %1520  ;;  %v930_v9 = vmul.f32 %v1519_v7, %v838_v35  ;;  %v769_v7 = vld [vmem:[%s1851_s12] sm:$0xf] }
  0xe4   : > { %v1523_v10 = vpop.eup %1522  ;;  %v931_v11 = vmul.f32 %v1521_v8, %v867_v36 }
  0xe5   : > { %v1525_v12 = vpop.eup %1524  ;;  %996 = vmatpush.msrb.mxu2 %v930_v9  ;;  %v926_v17 = vmul.f32 %v1523_v10, %v1764_v26  ;;  %v956_v26 = vpop.f32.mrf.mxu2 }
  0xe6   : > { %v1527_v14 = vpop.eup %1526  ;;  %1018 = vmatpush.msrb.mxu3 %v931_v11  ;;  %v927_v18 = vmul.f32 %v1525_v12, %v1766_v27  ;;  %v970_v27 = vpop.f32.mrf.mxu3 }
  0xe7   : > { %v1529_v16 = vpop.eup %1528  ;;  %997 = vmatpush.msrb.mxu2 %v928_v13  ;;  %v924_v21 = vmul.f32 %v1527_v14, %v1760_v24  ;;  %v1144_v11 = vpop.permute.xlu1 %1143 }
  0xe8   : > { %1019 = vmatpush.msrb.mxu3 %v929_v15  ;;  %v925_v22 = vmul.f32 %v1529_v16, %v1762_v25  ;;  %v1031_v25 = vpop.permute.xlu2 %1030 }
  0xe9   : > { %998 = vmatpush.msrb.mxu2 %v926_v17 }
  0xea   : > { %1020 = vmatpush.msrb.mxu3 %v927_v18  ;;  %v1202_v18 = vpop.permute.xlu0 %1201 }
  0xeb   : > { %999 = vmatpush.msrb.mxu2 %v924_v21 }
  0xec   : > { %1021 = vmatpush.msrb.mxu3 %v925_v22  ;;  %1466 = vmatmul.msk.bf16.vlgmr.msrb.gmra.mxu2 %vm980_vm2, %v1484_v19 }
  0xed   : > { %1467 = vmatmul.msk.bf16.vlgmr.msrb.gmra.mxu3 %vm980_vm2, %v1484_v19  ;;  %v958_v28 = vpop.f32.mrf.mxu2 }
  0xee   : > { %v972_v29 = vpop.f32.mrf.mxu3 }
  0xf0   : > { %v1064_v48 = vpop.permute.xlu2 %1063 }
  0xf8   : > { %v1128_v63 = vpop.permute.xlu2 %1127 }
 0x100   : > { %v1195_v15 = vpop.permute.xlu2 %1194 }
 0x16f   : > { %v1001_v24 = vpop.f32.mrf.mxu2 }
 0x170   : > { %v1023_v31 = vpop.f32.mrf.mxu3  ;;  %v1002_v32 = vadd.f32 %v1001_v24, %v956_v26 }
 0x171   : > { %v1024_v34 = vadd.f32 %v1023_v31, %v970_v27 }
 0x172   : > { %v1038_v35 = vadd.f32 %v1031_v25, %v1002_v32  ;;  %v1261_v32 = vpop.permute.xlu2 %1260 }
 0x173   : > { %v1039_v36 = vadd.f32 %v1031_v25, %v1024_v34  ;;  %v1268_v34 = vpop.permute.xlu0 %1267 }
 0x174   : > { %v1052_v42 = vmul.f32 %v1045_v40, %v1038_v35 }
 0x175   : > { %v1053_v44 = vmul.f32 %v1045_v40, %v1039_v36 }
 0x176   : > { %v1066_v51 = vadd.f32 %v1059_v47, %v1052_v42 }
 0x177   : > { %v1003_v37 = vpop.f32.mrf.mxu2  ;;  %v1067_v53 = vadd.f32 %v1059_v47, %v1053_v44 }
 0x178   : > { %v1004_v38 = vadd.f32 %v1003_v37, %v958_v28  ;;  %v1025_v39 = vpop.f32.mrf.mxu3  ;;  %v1070_v56 = vmax.f32 %v1066_v51, 0.0 }
 0x179   : > { %v1026_v41 = vadd.f32 %v1025_v39, %v972_v29  ;;  %v1071_v58 = vmax.f32 %v1067_v53, 0.0  ;;  %v1211_v29 = vpop.permute.xlu1 %1210  ;;  %v777_v39 = vld [vmem:[%s1859_s20] sm:$0xf] }
 0x17a   : > { %v1040_v43 = vadd.f32 %v1036_v30, %v1004_v38 }
 0x17b   : > { %v1041_v45 = vadd.f32 %v1036_v30, %v1026_v41 }
 0x17c   : > { %v1054_v46 = vmul.f32 %v1050_v33, %v1040_v43 }
 0x17d   : > { %v1055_v49 = vmul.f32 %v1050_v33, %v1041_v45 }
 0x17e   : > { %v1068_v50 = vadd.f32 %v1064_v48, %v1054_v46 }
 0x17f   : > { %v1069_v52 = vadd.f32 %v1064_v48, %v1055_v49 }
 0x180   : > { %v1072_v54 = vmax.f32 %v1068_v50, 0.0 }
 0x181   : > { %v1073_v55 = vmax.f32 %v1069_v52, 0.0  ;;  %v1277_v44 = vpop.permute.xlu1 %1276 }
 0x182   : > { %1097 = vmatpush.msra.mxu2 %v1072_v54 }
 0x183   : > { %1118 = vmatpush.msra.mxu3 %v1073_v55 }
 0x184   : > { %1098 = vmatpush.msra.mxu2 %v1070_v56 }
 0x185   : > { %1119 = vmatpush.msra.mxu3 %v1071_v58  ;;  %1468 = vmatmul.msk.bf16.vlgmr.msra.gmra.mxu2 %vm1079_vm3, %v765_v57 }
 0x186   : > { %1469 = vmatmul.msk.bf16.vlgmr.msra.gmra.mxu3 %vm1079_vm3, %v765_v57 }
 0x208   : > { %v1100_v60 = vpop.f32.mrf.mxu2 }
 0x209   : > { %v1101_v61 = vadd.f32 %v1100_v60, %v1077_v59  ;;  %v1121_v62 = vpop.f32.mrf.mxu3 }
 0x20a   : > { %v1122_v0 = vadd.f32 %v1121_v62, %v1077_v59 }
 0x20b   : > { %v1130_v1 = vmul.f32 %v1128_v63, %v1101_v61 }
 0x20c   : > { %v1131_v3 = vmul.f32 %v1128_v63, %v1122_v0 }
 0x20d   : > { %v1137_v4 = vadd.f32 %v1135_v2, %v1130_v1 }
 0x20e   : > { %v1138_v5 = vadd.f32 %v1135_v2, %v1131_v3 }
 0x20f   : > { %v1139_v6 = vmax.f32 %v1137_v4, 0.0 }
 0x210   : > { %v1140_v8 = vmax.f32 %v1138_v5, 0.0  ;;  %v1102_v9 = vpop.f32.mrf.mxu2 }
 0x211   : > { %v1123_v10 = vpop.f32.mrf.mxu3  ;;  %1165 = vmatpush.msrb.mxu2 %v1139_v6 }
 0x212   : > { %1186 = vmatpush.msrb.mxu3 %v1140_v8  ;;  %1470 = vmatmul.msk.bf16.vlgmr.msrb.gmra.mxu2 %vm1146_vm4, %v769_v7 }
 0x213   : > { %1471 = vmatmul.msk.bf16.vlgmr.msrb.gmra.mxu3 %vm1146_vm4, %v769_v7 }
 0x295   : > { %v1167_v12 = vpop.f32.mrf.mxu2 }
 0x296   : > { %v1168_v13 = vadd.f32 %v1167_v12, %v1144_v11  ;;  %v1188_v14 = vpop.f32.mrf.mxu3 }
 0x297   : > { %v1189_v16 = vadd.f32 %v1188_v14, %v1144_v11 }
 0x298   : > { %v1197_v17 = vmul.f32 %v1195_v15, %v1168_v13 }
 0x299   : > { %v1198_v19 = vmul.f32 %v1195_v15, %v1189_v16 }
 0x29a   : > { %v1204_v20 = vadd.f32 %v1202_v18, %v1197_v17 }
 0x29b   : > { %v1205_v21 = vadd.f32 %v1202_v18, %v1198_v19 }
 0x29c   : > { %v1206_v22 = vmax.f32 %v1204_v20, 0.0 }
 0x29d   : > { %v1169_v26 = vpop.f32.mrf.mxu2  ;;  %v1207_v27 = vmax.f32 %v1205_v21, 0.0 }
 0x29e   : > { %v1190_v28 = vpop.f32.mrf.mxu3  ;;  %1231 = vmatpush.msrb.mxu0 %v1206_v22 }
 0x29f   : > { %1252 = vmatpush.msrb.mxu1 %v1207_v27  ;;  %1472 = vmatmul.msk.bf16.vlgmr.msrb.gmra.mxu0 %vm1146_vm4, %v773_v23 }
 0x2a0   : > { %1473 = vmatmul.msk.bf16.vlgmr.msrb.gmra.mxu1 %vm1146_vm4, %v773_v23 }
 0x31c   : > { %v1233_v30 = vpop.f32.mrf.mxu0 }
 0x31d   : > { %v1234_v24 = vadd.f32 %v1233_v30, %v1211_v29  ;;  %v1254_v31 = vpop.f32.mrf.mxu1 }
 0x31e   : > { %v1255_v33 = vadd.f32 %v1254_v31, %v1211_v29 }
 0x31f   : > { %v1263_v25 = vmul.f32 %v1261_v32, %v1234_v24 }
 0x320   : > { %v1264_v35 = vmul.f32 %v1261_v32, %v1255_v33 }
 0x321   : > { %v1270_v36 = vadd.f32 %v1268_v34, %v1263_v25 }
 0x322   : > { %v1271_v37 = vadd.f32 %v1268_v34, %v1264_v35 }
 0x323   : > { %v1272_v38 = vmax.f32 %v1270_v36, 0.0 }
 0x324   : > { %v1273_v40 = vmax.f32 %v1271_v37, 0.0  ;;  %v1235_v41 = vpop.f32.mrf.mxu0 }
 0x325   : > { %1297 = vmatpush.msra.mxu2 %v1272_v38  ;;  %v1256_v42 = vpop.f32.mrf.mxu1 }
 0x326   : > { %1318 = vmatpush.msra.mxu3 %v1273_v40  ;;  %1474 = vmatmul.msk.bf16.vlgmr.msra.gmra.mxu2 %vm1146_vm4, %v777_v39 }
 0x327   : > { %1475 = vmatmul.msk.bf16.vlgmr.msra.gmra.mxu3 %vm1146_vm4, %v777_v39 }
 0x3a9   : > { %v1299_v43 = vpop.f32.mrf.mxu2 }
 0x3aa   : > { %v1320_v45 = vpop.f32.mrf.mxu3  ;;  %v1300_v47 = vadd.f32 %v1299_v43, %v1277_v44 }
 0x3ab   : > { %v1321_v46 = vadd.f32 %v1320_v45, %v1277_v44 }
 0x3ad   : > { %v1326_v48 = vrot.slane %v1321_v46, 6 }
 0x3af   : > { %v1327_v49 = vsel %vm817_vm0, %v1300_v47, %v1326_v48 }
 0x3b0   : > { %1329 = vst [vmem:[%s739_s23] sm:$0xf] %v1327_v49 }
 0x3b1   : > { %v1301_v50 = vpop.f32.mrf.mxu2 }
 0x3b2   : > { %v1322_v51 = vpop.f32.mrf.mxu3 }
 0x3b3 PF: > { %s32_s29 = sadd.s32 1, %s1552_s29   ;;  %s1884_s24 = sld [smem:[#allocation2_spill]] }
 0x3b4   : > { %p29_p5 = scmp.ge.s32.totalorder %s32_s29, 4   ;;  %s1885_s3 = smov %s1548_s28 }
 0x3b6   :  { %31 = sbr.rel (!%p29_p5) target bundleno = 8 (0x8), region = 138 }
 0x3b9   : > { %s1886_s28 = smov %s1884_s24 }

</bundles_post_ra>
